<compile_context>
chip_gen: v5e
topology: v5e:2x2
jax: 0.10.0
libtpu: 0.0.40
codegen_flags: <defaults>
</compile_context>

<pallas_src>
import functools

import jax
import jax.numpy as jnp
from jax import lax
from jax.experimental import pallas as pl
from jax.experimental.pallas import tpu as pltpu


def _round_up(x, m):
    return (x + m - 1) // m * m


def _bottleneck_kernel(x_ref, w1_ref, w2_ref, prm_ref, out_ref, scr_ref, *,
                       H, W, Wa, Cp, Cr, nb, eps, out_transposed):
    # Re-zero ONLY the pad region of the halo scratch every grid step (top and
    # bottom halo rows plus the right pad columns).  This keeps every grid step
    # independent, so the batch axis can be "parallel" (v7x 2-TC sharding).
    # The interior (rows 1..H, cols 0..W-1) is fully rewritten per image below.
    scr_ref[0] = jnp.zeros((Wa, Cp), scr_ref.dtype)
    scr_ref[H + 1] = jnp.zeros((Wa, Cp), scr_ref.dtype)
    if Wa > W:
        scr_ref[1:H + 1, W:Wa, :] = jnp.zeros((H, Wa - W, Cp), scr_ref.dtype)

    inv_hw = 1.0 / float(H * W)
    HWa = H * Wa

    w1 = w1_ref[...]                                   # (Cin, Cp)  bf16
    prm = prm_ref[...]                                 # (4, Cp)    f32
    g1, b1, g2, b2 = prm[0:1], prm[1:2], prm[2:3], prm[3:4]

    def process_image(b):
        # ---- conv1x1 on the MXU -------------------------------------------
        y = jnp.dot(x_ref[b], w1, preferred_element_type=jnp.float32)  # (HW, Cp)

        # ---- InstanceNorm #1 + ReLU (single-pass stats, fused scale/shift) --
        # (single-pass E[x^2]-E[x]^2 in f32; post-conv means are ~0 so the
        #  cancellation risk is acceptable here)
        mean = jnp.sum(y, axis=0, keepdims=True) * inv_hw
        msq = jnp.sum(y * y, axis=0, keepdims=True) * inv_hw
        scale = g1 * lax.rsqrt(msq - mean * mean + eps)
        shift = b1 - mean * scale
        y = jnp.maximum(y * scale + shift, 0.0)

        # ---- write interior of the zero-padded scratch (halo stays zero) ----
        # Unmasked stores when W % 16 == 0 (bf16 sublane pack); still correct
        # (masked) otherwise.
        scr_ref[1:H + 1, 0:W, :] = y.reshape(H, W, Cp).astype(scr_ref.dtype)

        # ---- conv3x3: three accumulating MXU matmuls, one per kh tap --------
        # out3[:, kw*Cp + co] = sum_{kh,ci} scr[h+kh, w, ci] * w2[co, ci, kh, kw]
        out3 = jnp.dot(scr_ref[0:H].reshape(HWa, Cp), w2_ref[0],
                       preferred_element_type=jnp.float32)
        out3 = out3 + jnp.dot(scr_ref[1:H + 1].reshape(HWa, Cp), w2_ref[1],
                              preferred_element_type=jnp.float32)
        out3 = out3 + jnp.dot(scr_ref[2:H + 2].reshape(HWa, Cp), w2_ref[2],
                              preferred_element_type=jnp.float32)
        # Align the three kw taps with cyclic sublane rolls (XLU).  pltpu.roll
        # needs a non-negative shift, so "-1" is expressed as HWa - 1 (cyclic).
        # Wrapped-in rows originate from zero-pad columns of scr, so they are 0
        # wherever they land on a kept column.
        z_flat = (out3[:, Cp:2 * Cp]
                  + pltpu.roll(out3[:, 0:Cp], shift=1, axis=0)
                  + pltpu.roll(out3[:, 2 * Cp:3 * Cp], shift=HWa - 1, axis=0))
        # Drop the pad columns (aligned slice when W % 8 == 0).
        z = z_flat.reshape(H, Wa, Cp)[:, 0:W, :].reshape(H * W, Cp)

        # ---- InstanceNorm #2 + ReLU -----------------------------------------
        mean2 = jnp.sum(z, axis=0, keepdims=True) * inv_hw
        msq2 = jnp.sum(z * z, axis=0, keepdims=True) * inv_hw
        scale2 = g2 * lax.rsqrt(msq2 - mean2 * mean2 + eps)
        shift2 = b2 - mean2 * scale2
        res = jnp.maximum(z * scale2 + shift2, 0.0)                    # (HW, Cp)

        if out_transposed:
            # Channel-major bf16 store: only Cr channels leave the chip and the
            # wrapper's NCHW conversion is a free reshape (no extra HBM pass).
            out_ref[b] = jnp.transpose(res)[0:Cr, :].astype(out_ref.dtype)
        else:
            out_ref[b] = res.astype(out_ref.dtype)

    if nb == 1:
        process_image(0)
    else:
        # fori_loop (not a Python unroll): the images are serialized through
        # scr_ref anyway, and the loop bounds the live ranges of y/out3/z.
        def body(b, carry):
            process_image(b)
            return carry
        lax.fori_loop(0, nb, body, 0)


def _pick_batch_block(N, HW, Cin, Cp, Cr, Wa, H, out_transposed,
                      budget_bytes=32 << 20):
    """Images per grid step.

    Guarantees >= 2 grid steps (overlap for input DMA / output writeback and
    batch sharding across v7x's 2 TensorCores) and accounts for: lane-padding
    of the (HW, Cin) input block in VMEM, the persistent halo scratch, the
    double-buffered conv3x3 weight, and the live f32 intermediates.
    """
    fixed = (H + 2) * Wa * Cp * 2                 # persistent bf16 scratch
    fixed += 2 * (3 * Cp) * (3 * Cp) * 2          # w2 (bf16), double-buffered
    fixed += 2 * _round_up(Cin, 16) * Cp * 2      # w1 (bf16, sublane-padded)
    fixed += 8 * Cp * 4                           # packed IN params tile
    fixed += 5 * H * Wa * Cp * 4                  # live f32 intermediates / image
    out_elems = (Cr * HW) if out_transposed else (HW * Cp)
    best = 1
    for nb in range(1, max(1, min(8, N // 2)) + 1):
        if N % nb:
            continue
        per_in = 2 * nb * HW * 128 * 2            # lane-padded bf16 input, 2-buffered
        per_out = 2 * nb * out_elems * 2          # bf16 output, 2-buffered
        if fixed + per_in + per_out <= budget_bytes:
            best = nb
    return best


def bottleneck_shared(x_nchw, w1, w2, g1, b1, g2, b2, eps=1e-5):
    """Pallas implementation of BottleneckShared.forward (NCHW in, NCHW out, bf16)."""
    N, Cin, H, W = x_nchw.shape
    RP = w1.shape[0]
    HW = H * W
    Cp = _round_up(RP, 128)        # lane-dense channel width for compute
    Cr = _round_up(RP, 16)         # bf16-sublane-aligned output channel width
    Wa = _round_up(W + 1, 16)      # padded row width (>= W+1 zero cols, bf16 tile)
    out_transposed = (HW % 128 == 0)   # lane-dense channel-major output store

    # NCHW -> (N, HW, Cin) bf16 MXU operand.
    x = jnp.transpose(x_nchw, (0, 2, 3, 1)).reshape(N, HW, Cin).astype(jnp.bfloat16)

    w1k = jnp.transpose(w1[:, :, 0, 0], (1, 0))                        # (Cin, RP)
    w1k = jnp.pad(w1k, ((0, 0), (0, Cp - RP))).astype(jnp.bfloat16)    # (Cin, Cp)

    # (co, ci, kh, kw) -> (kh, ci, kw, co) -> pad ci,co -> (3, Cp, 3*Cp)
    # w2k[kh, ci, kw*Cp + co] = w2[co, ci, kh, kw]
    w2t = jnp.transpose(w2, (2, 1, 3, 0))
    w2t = jnp.pad(w2t, ((0, 0), (0, Cp - RP), (0, 0), (0, Cp - RP)))
    w2k = w2t.reshape(3, Cp, 3 * Cp).astype(jnp.bfloat16)

    pad_c = (0, Cp - RP)
    prm = jnp.stack([jnp.pad(g1, pad_c), jnp.pad(b1, pad_c),
                     jnp.pad(g2, pad_c), jnp.pad(b2, pad_c)]).astype(jnp.float32)

    nb = _pick_batch_block(N, HW, Cin, Cp, Cr, Wa, H, out_transposed)

    kernel = functools.partial(
        _bottleneck_kernel, H=H, W=W, Wa=Wa, Cp=Cp, Cr=Cr, nb=nb,
        eps=float(eps), out_transposed=out_transposed)

    if out_transposed:
        out_shape = jax.ShapeDtypeStruct((N, Cr, HW), jnp.bfloat16)
        out_spec = pl.BlockSpec((nb, Cr, HW), lambda n: (n, 0, 0))
    else:
        out_shape = jax.ShapeDtypeStruct((N, HW, Cp), jnp.bfloat16)
        out_spec = pl.BlockSpec((nb, HW, Cp), lambda n: (n, 0, 0))

    # TODO(synk): pipeline_mode=pl.Buffered(1) on the grid-invariant weight/param
    #             specs would shave their doubled VMEM reservation on v7x.
    out = pl.pallas_call(
        kernel,
        out_shape=out_shape,
        grid_spec=pltpu.PrefetchScalarGridSpec(
            num_scalar_prefetch=0,
            grid=(N // nb,),
            in_specs=[
                pl.BlockSpec((nb, HW, Cin), lambda n: (n, 0, 0)),
                pl.BlockSpec((Cin, Cp), lambda n: (0, 0)),
                pl.BlockSpec((3, Cp, 3 * Cp), lambda n: (0, 0, 0)),
                pl.BlockSpec((4, Cp), lambda n: (0, 0)),
            ],
            out_specs=out_spec,
            scratch_shapes=[pltpu.VMEM((H + 2, Wa, Cp), jnp.bfloat16)],
        ),
        compiler_params=pltpu.CompilerParams(
            dimension_semantics=("parallel",),
            vmem_limit_bytes=48 << 20),
    )(x, w1k, w2k, prm)

    if out_transposed:
        # Slice is a no-op when RP % 16 == 0; reshape is free (contiguous).
        out = out[:, :RP, :].reshape(N, RP, H, W)
    else:
        out = jnp.transpose(out.reshape(N, H, W, Cp)[..., :RP], (0, 3, 1, 2))
    return out


def reference(x, w1, w2, g1, b1, g2, b2, eps=1e-5):
    """Pure-JAX f32 reference matching the PyTorch module (NCHW)."""
    def inorm(y, g, b):
        m = jnp.mean(y, axis=(2, 3), keepdims=True)
        v = jnp.mean((y - m) ** 2, axis=(2, 3), keepdims=True)
        y = (y - m) / jnp.sqrt(v + eps)
        return y * g[None, :, None, None] + b[None, :, None, None]

    y = jax.lax.conv_general_dilated(
        x, w1, (1, 1), "VALID", dimension_numbers=("NCHW", "OIHW", "NCHW"))
    y = jnp.maximum(inorm(y, g1, b1), 0.0)
    y = jax.lax.conv_general_dilated(
        y, w2, (1, 1), ((1, 1), (1, 1)),
        dimension_numbers=("NCHW", "OIHW", "NCHW"))
    y = jnp.maximum(inorm(y, g2, b2), 0.0)
    return y


if __name__ == "__main__":
    # Small shapes consistent with the module: channels -> rp via conv1x1,
    # then rp -> rp via conv3x3 (g=1). Default rp in the module is 128.
    N, Cin, H, W = 2, 4, 16, 16
    RP = 32

    key = jax.random.PRNGKey(0)
    k1, k2, k3, k4, k5, k6, k7 = jax.random.split(key, 7)

    x = jax.random.normal(k1, (N, Cin, H, W), jnp.float32)
    w1 = jax.random.normal(k2, (RP, Cin, 1, 1), jnp.float32) / jnp.sqrt(Cin)
    w2 = jax.random.normal(k3, (RP, RP, 3, 3), jnp.float32) / jnp.sqrt(9 * RP)
    g1 = 1.0 + 0.1 * jax.random.normal(k4, (RP,), jnp.float32)
    b1 = 0.1 * jax.random.normal(k5, (RP,), jnp.float32)
    g2 = 1.0 + 0.1 * jax.random.normal(k6, (RP,), jnp.float32)
    b2 = 0.1 * jax.random.normal(k7, (RP,), jnp.float32)

    out = jax.block_until_ready(bottleneck_shared(x, w1, w2, g1, b1, g2, b2))
    ref = jax.block_until_ready(reference(x, w1, w2, g1, b1, g2, b2))

    assert out.shape == (N, RP, H, W), out.shape
    # bf16 MXU operands + bf16 inter-conv scratch + bf16 output (per perf review)
    # => compare against the pure-f32 reference at bf16-level tolerance;
    # normalized activations are O(1).
    out_f32 = out.astype(jnp.float32)
    max_err = float(jnp.max(jnp.abs(out_f32 - ref)))
    assert jnp.allclose(out_f32, ref, atol=5e-2, rtol=5e-2), max_err

    print("KERNEL_OK")
</pallas_src>

<mosaic_0001>
module attributes {stable_mosaic.version = 11 : i64} {
  func.func @_bottleneck_kernel(%arg0: i32, %arg1: memref<1x256x4xbf16, #tpu.memory_space<vmem>>, %arg2: memref<4x128xbf16, #tpu.memory_space<vmem>>, %arg3: memref<3x128x384xbf16, #tpu.memory_space<vmem>>, %arg4: memref<4x128xf32, #tpu.memory_space<vmem>>, %arg5: memref<1x32x256xbf16, #tpu.memory_space<vmem>>, %arg6: memref<18x32x128xbf16, #tpu.memory_space<vmem>>) attributes {dimension_semantics = [#tpu.dimension_semantics<parallel>], iteration_bounds = array<i64: 2>, scalar_prefetch = 0 : i64, scratch_operands = 1 : i64, tpu.core_type = #tpu.core_type<tc>, window_params = [{transform_indices = @transform_0, window_bounds = array<i64: 1, 256, 4>}, {pipeline_mode = #tpu.pipeline_mode<synchronous>, transform_indices = @transform_1, window_bounds = array<i64: 4, 128>}, {pipeline_mode = #tpu.pipeline_mode<synchronous>, transform_indices = @transform_2, window_bounds = array<i64: 3, 128, 384>}, {pipeline_mode = #tpu.pipeline_mode<synchronous>, transform_indices = @transform_3, window_bounds = array<i64: 4, 128>}, {transform_indices = @transform_4, window_bounds = array<i64: 1, 32, 256>}]} {
    %cst = arith.constant 0.000000e+00 : bf16
    %0 = vector.broadcast %cst : bf16 to vector<32x128xbf16>
    %c0 = arith.constant 0 : index
    %c0_0 = arith.constant 0 : index
    %c0_1 = arith.constant 0 : index
    %1 = vector.load %arg6[%c0, %c0_0, %c0_1] : memref<18x32x128xbf16, #tpu.memory_space<vmem>>, vector<1x32x128xbf16>
    %2 = vector.shape_cast %1 : vector<1x32x128xbf16> to vector<32x128xbf16>
    %3 = vector.shape_cast %0 : vector<32x128xbf16> to vector<1x32x128xbf16>
    tpu.vector_store %arg6[%c0, %c0_0, %c0_1], %3 {strides = array<i32>} : memref<18x32x128xbf16, #tpu.memory_space<vmem>>, vector<1x32x128xbf16>,
    %cst_2 = arith.constant 0.000000e+00 : bf16
    %4 = vector.broadcast %cst_2 : bf16 to vector<32x128xbf16>
    %c17 = arith.constant 17 : index
    %c0_3 = arith.constant 0 : index
    %c0_4 = arith.constant 0 : index
    %5 = vector.load %arg6[%c17, %c0_3, %c0_4] : memref<18x32x128xbf16, #tpu.memory_space<vmem>>, vector<1x32x128xbf16>
    %6 = vector.shape_cast %5 : vector<1x32x128xbf16> to vector<32x128xbf16>
    %7 = vector.shape_cast %4 : vector<32x128xbf16> to vector<1x32x128xbf16>
    tpu.vector_store %arg6[%c17, %c0_3, %c0_4], %7 {strides = array<i32>} : memref<18x32x128xbf16, #tpu.memory_space<vmem>>, vector<1x32x128xbf16>,
    %cst_5 = arith.constant 0.000000e+00 : bf16
    %8 = vector.broadcast %cst_5 : bf16 to vector<16x16x128xbf16>
    %c1 = arith.constant 1 : index
    %c16 = arith.constant 16 : index
    %c0_6 = arith.constant 0 : index
    %9 = vector.load %arg6[%c1, %c16, %c0_6] : memref<18x32x128xbf16, #tpu.memory_space<vmem>>, vector<16x16x128xbf16>
    tpu.vector_store %arg6[%c1, %c16, %c0_6], %8 {strides = array<i32>} : memref<18x32x128xbf16, #tpu.memory_space<vmem>>, vector<16x16x128xbf16>,
    %c0_7 = arith.constant 0 : index
    %c0_8 = arith.constant 0 : index
    %10 = vector.load %arg2[%c0_7, %c0_8] : memref<4x128xbf16, #tpu.memory_space<vmem>>, vector<4x128xbf16>
    %c0_9 = arith.constant 0 : index
    %c0_10 = arith.constant 0 : index
    %11 = vector.load %arg4[%c0_9, %c0_10] : memref<4x128xf32, #tpu.memory_space<vmem>>, vector<4x128xf32>
    %12 = vector.extract_strided_slice %11 {offsets = [0, 0], sizes = [1, 128], strides = [1, 1]} : vector<4x128xf32> to vector<1x128xf32>
    %13 = vector.extract_strided_slice %11 {offsets = [1, 0], sizes = [1, 128], strides = [1, 1]} : vector<4x128xf32> to vector<1x128xf32>
    %14 = vector.extract_strided_slice %11 {offsets = [2, 0], sizes = [1, 128], strides = [1, 1]} : vector<4x128xf32> to vector<1x128xf32>
    %15 = vector.extract_strided_slice %11 {offsets = [3, 0], sizes = [1, 128], strides = [1, 1]} : vector<4x128xf32> to vector<1x128xf32>
    %c0_11 = arith.constant 0 : index
    %c0_12 = arith.constant 0 : index
    %c0_13 = arith.constant 0 : index
    %16 = vector.load %arg1[%c0_11, %c0_12, %c0_13] : memref<1x256x4xbf16, #tpu.memory_space<vmem>>, vector<1x256x4xbf16>
    %17 = vector.shape_cast %16 : vector<1x256x4xbf16> to vector<256x4xbf16>
    %cst_14 = arith.constant dense<0.000000e+00> : vector<256x128xf32>
    %18 = tpu.matmul %17, %10, %cst_14 {dimension_numbers = #tpu.dot_dimension_numbers<[1], [0], [0], [1], [0, 0, 1, 1], [], []>} : vector<256x4xbf16>, vector<4x128xbf16>, vector<256x128xf32> -> vector<256x128xf32>
    %cst_15 = arith.constant dense<0.000000e+00> : vector<128xf32>
    %19 = vector.multi_reduction <add>, %18, %cst_15 [0] : vector<256x128xf32> to vector<128xf32>
    %20 = vector.shape_cast %19 : vector<128xf32> to vector<1x128xf32>
    %cst_16 = arith.constant 3.906250e-03 : f32
    %21 = vector.broadcast %cst_16 : f32 to vector<1x128xf32>
    %22 = arith.mulf %20, %21 : vector<1x128xf32>
    %23 = arith.mulf %18, %18 : vector<256x128xf32>
    %cst_17 = arith.constant dense<0.000000e+00> : vector<128xf32>
    %24 = vector.multi_reduction <add>, %23, %cst_17 [0] : vector<256x128xf32> to vector<128xf32>
    %25 = vector.shape_cast %24 : vector<128xf32> to vector<1x128xf32>
    %cst_18 = arith.constant 3.906250e-03 : f32
    %26 = vector.broadcast %cst_18 : f32 to vector<1x128xf32>
    %27 = arith.mulf %25, %26 : vector<1x128xf32>
    %28 = arith.mulf %22, %22 : vector<1x128xf32>
    %29 = arith.subf %27, %28 : vector<1x128xf32>
    %cst_19 = arith.constant 9.99999974E-6 : f32
    %30 = vector.broadcast %cst_19 : f32 to vector<1x128xf32>
    %31 = arith.addf %29, %30 : vector<1x128xf32>
    %32 = math.rsqrt %31 : vector<1x128xf32>
    %33 = arith.mulf %12, %32 : vector<1x128xf32>
    %34 = arith.mulf %22, %33 : vector<1x128xf32>
    %35 = arith.subf %13, %34 : vector<1x128xf32>
    %36 = vector.broadcast %33 : vector<1x128xf32> to vector<256x128xf32>
    %37 = arith.mulf %18, %36 : vector<256x128xf32>
    %38 = vector.broadcast %35 : vector<1x128xf32> to vector<256x128xf32>
    %39 = arith.addf %37, %38 : vector<256x128xf32>
    %cst_20 = arith.constant 0.000000e+00 : f32
    %40 = vector.broadcast %cst_20 : f32 to vector<256x128xf32>
    %41 = arith.maximumf %39, %40 : vector<256x128xf32>
    %42 = vector.shape_cast %41 : vector<256x128xf32> to vector<16x16x128xf32>
    %43 = arith.truncf %42 : vector<16x16x128xf32> to vector<16x16x128xbf16>
    %c1_21 = arith.constant 1 : index
    %c0_22 = arith.constant 0 : index
    %c0_23 = arith.constant 0 : index
    %44 = vector.load %arg6[%c1_21, %c0_22, %c0_23] : memref<18x32x128xbf16, #tpu.memory_space<vmem>>, vector<16x16x128xbf16>
    tpu.vector_store %arg6[%c1_21, %c0_22, %c0_23], %43 {strides = array<i32>} : memref<18x32x128xbf16, #tpu.memory_space<vmem>>, vector<16x16x128xbf16>,
    %c0_24 = arith.constant 0 : index
    %c0_25 = arith.constant 0 : index
    %c0_26 = arith.constant 0 : index
    %45 = vector.load %arg6[%c0_24, %c0_25, %c0_26] : memref<18x32x128xbf16, #tpu.memory_space<vmem>>, vector<16x32x128xbf16>
    %46 = vector.shape_cast %45 : vector<16x32x128xbf16> to vector<512x128xbf16>
    %c0_27 = arith.constant 0 : index
    %c0_28 = arith.constant 0 : index
    %c0_29 = arith.constant 0 : index
    %47 = vector.load %arg3[%c0_27, %c0_28, %c0_29] : memref<3x128x384xbf16, #tpu.memory_space<vmem>>, vector<1x128x384xbf16>
    %48 = vector.shape_cast %47 : vector<1x128x384xbf16> to vector<128x384xbf16>
    %cst_30 = arith.constant dense<0.000000e+00> : vector<512x384xf32>
    %49 = tpu.matmul %46, %48, %cst_30 {dimension_numbers = #tpu.dot_dimension_numbers<[1], [0], [0], [1], [0, 0, 1, 1], [], []>} : vector<512x128xbf16>, vector<128x384xbf16>, vector<512x384xf32> -> vector<512x384xf32>
    %c1_31 = arith.constant 1 : index
    %c0_32 = arith.constant 0 : index
    %c0_33 = arith.constant 0 : index
    %50 = vector.load %arg6[%c1_31, %c0_32, %c0_33] : memref<18x32x128xbf16, #tpu.memory_space<vmem>>, vector<16x32x128xbf16>
    %51 = vector.shape_cast %50 : vector<16x32x128xbf16> to vector<512x128xbf16>
    %c1_34 = arith.constant 1 : index
    %c0_35 = arith.constant 0 : index
    %c0_36 = arith.constant 0 : index
    %52 = vector.load %arg3[%c1_34, %c0_35, %c0_36] : memref<3x128x384xbf16, #tpu.memory_space<vmem>>, vector<1x128x384xbf16>
    %53 = vector.shape_cast %52 : vector<1x128x384xbf16> to vector<128x384xbf16>
    %cst_37 = arith.constant dense<0.000000e+00> : vector<512x384xf32>
    %54 = tpu.matmul %51, %53, %cst_37 {dimension_numbers = #tpu.dot_dimension_numbers<[1], [0], [0], [1], [0, 0, 1, 1], [], []>} : vector<512x128xbf16>, vector<128x384xbf16>, vector<512x384xf32> -> vector<512x384xf32>
    %55 = arith.addf %49, %54 : vector<512x384xf32>
    %c2 = arith.constant 2 : index
    %c0_38 = arith.constant 0 : index
    %c0_39 = arith.constant 0 : index
    %56 = vector.load %arg6[%c2, %c0_38, %c0_39] : memref<18x32x128xbf16, #tpu.memory_space<vmem>>, vector<16x32x128xbf16>
    %57 = vector.shape_cast %56 : vector<16x32x128xbf16> to vector<512x128xbf16>
    %c2_40 = arith.constant 2 : index
    %c0_41 = arith.constant 0 : index
    %c0_42 = arith.constant 0 : index
    %58 = vector.load %arg3[%c2_40, %c0_41, %c0_42] : memref<3x128x384xbf16, #tpu.memory_space<vmem>>, vector<1x128x384xbf16>
    %59 = vector.shape_cast %58 : vector<1x128x384xbf16> to vector<128x384xbf16>
    %cst_43 = arith.constant dense<0.000000e+00> : vector<512x384xf32>
    %60 = tpu.matmul %57, %59, %cst_43 {dimension_numbers = #tpu.dot_dimension_numbers<[1], [0], [0], [1], [0, 0, 1, 1], [], []>} : vector<512x128xbf16>, vector<128x384xbf16>, vector<512x384xf32> -> vector<512x384xf32>
    %61 = arith.addf %55, %60 : vector<512x384xf32>
    %62 = vector.extract_strided_slice %61 {offsets = [0, 128], sizes = [512, 128], strides = [1, 1]} : vector<512x384xf32> to vector<512x128xf32>
    %63 = vector.extract_strided_slice %61 {offsets = [0, 0], sizes = [512, 128], strides = [1, 1]} : vector<512x384xf32> to vector<512x128xf32>
    %c1_i32 = arith.constant 1 : i32
    %64 = tpu.dynamic_rotate %63 by %c1_i32 dim 0 : vector<512x128xf32>, i32 -> vector<512x128xf32>
    %65 = arith.addf %62, %64 : vector<512x128xf32>
    %66 = vector.extract_strided_slice %61 {offsets = [0, 256], sizes = [512, 128], strides = [1, 1]} : vector<512x384xf32> to vector<512x128xf32>
    %c511_i32 = arith.constant 511 : i32
    %67 = tpu.dynamic_rotate %66 by %c511_i32 dim 0 : vector<512x128xf32>, i32 -> vector<512x128xf32>
    %68 = arith.addf %65, %67 : vector<512x128xf32>
    %69 = vector.shape_cast %68 : vector<512x128xf32> to vector<16x32x128xf32>
    %70 = vector.extract_strided_slice %69 {offsets = [0, 0, 0], sizes = [16, 16, 128], strides = [1, 1, 1]} : vector<16x32x128xf32> to vector<16x16x128xf32>
    %71 = vector.shape_cast %70 : vector<16x16x128xf32> to vector<256x128xf32>
    %cst_44 = arith.constant dense<0.000000e+00> : vector<128xf32>
    %72 = vector.multi_reduction <add>, %71, %cst_44 [0] : vector<256x128xf32> to vector<128xf32>
    %73 = vector.shape_cast %72 : vector<128xf32> to vector<1x128xf32>
    %cst_45 = arith.constant 3.906250e-03 : f32
    %74 = vector.broadcast %cst_45 : f32 to vector<1x128xf32>
    %75 = arith.mulf %73, %74 : vector<1x128xf32>
    %76 = arith.mulf %71, %71 : vector<256x128xf32>
    %cst_46 = arith.constant dense<0.000000e+00> : vector<128xf32>
    %77 = vector.multi_reduction <add>, %76, %cst_46 [0] : vector<256x128xf32> to vector<128xf32>
    %78 = vector.shape_cast %77 : vector<128xf32> to vector<1x128xf32>
    %cst_47 = arith.constant 3.906250e-03 : f32
    %79 = vector.broadcast %cst_47 : f32 to vector<1x128xf32>
    %80 = arith.mulf %78, %79 : vector<1x128xf32>
    %81 = arith.mulf %75, %75 : vector<1x128xf32>
    %82 = arith.subf %80, %81 : vector<1x128xf32>
    %cst_48 = arith.constant 9.99999974E-6 : f32
    %83 = vector.broadcast %cst_48 : f32 to vector<1x128xf32>
    %84 = arith.addf %82, %83 : vector<1x128xf32>
    %85 = math.rsqrt %84 : vector<1x128xf32>
    %86 = arith.mulf %14, %85 : vector<1x128xf32>
    %87 = arith.mulf %75, %86 : vector<1x128xf32>
    %88 = arith.subf %15, %87 : vector<1x128xf32>
    %89 = vector.broadcast %86 : vector<1x128xf32> to vector<256x128xf32>
    %90 = arith.mulf %71, %89 : vector<256x128xf32>
    %91 = vector.broadcast %88 : vector<1x128xf32> to vector<256x128xf32>
    %92 = arith.addf %90, %91 : vector<256x128xf32>
    %cst_49 = arith.constant 0.000000e+00 : f32
    %93 = vector.broadcast %cst_49 : f32 to vector<256x128xf32>
    %94 = arith.maximumf %92, %93 : vector<256x128xf32>
    %95 = tpu.transpose %94, [1, 0] : vector<256x128xf32> -> vector<128x256xf32>
    %96 = vector.extract_strided_slice %95 {offsets = [0, 0], sizes = [32, 256], strides = [1, 1]} : vector<128x256xf32> to vector<32x256xf32>
    %97 = arith.truncf %96 : vector<32x256xf32> to vector<32x256xbf16>
    %c0_50 = arith.constant 0 : index
    %c0_51 = arith.constant 0 : index
    %c0_52 = arith.constant 0 : index
    %98 = vector.load %arg5[%c0_50, %c0_51, %c0_52] : memref<1x32x256xbf16, #tpu.memory_space<vmem>>, vector<1x32x256xbf16>
    %99 = vector.shape_cast %98 : vector<1x32x256xbf16> to vector<32x256xbf16>
    %100 = vector.shape_cast %97 : vector<32x256xbf16> to vector<1x32x256xbf16>
    tpu.vector_store %arg5[%c0_50, %c0_51, %c0_52], %100 {strides = array<i32>} : memref<1x32x256xbf16, #tpu.memory_space<vmem>>, vector<1x32x256xbf16>,
    return
  }
  func.func @transform_0(%arg0: i32) -> (i32, i32, i32) {
    %c0_i32 = arith.constant 0 : i32
    %c0_i32_0 = arith.constant 0 : i32
    %c0_i32_1 = arith.constant 0 : i32
    return %arg0, %c0_i32, %c0_i32_0 : i32, i32, i32
  }
  func.func @transform_1(%arg0: i32) -> (i32, i32) {
    %c0_i32 = arith.constant 0 : i32
    %c0_i32_0 = arith.constant 0 : i32
    %c0_i32_1 = arith.constant 0 : i32
    return %c0_i32, %c0_i32_0 : i32, i32
  }
  func.func @transform_2(%arg0: i32) -> (i32, i32, i32) {
    %c0_i32 = arith.constant 0 : i32
    %c0_i32_0 = arith.constant 0 : i32
    %c0_i32_1 = arith.constant 0 : i32
    %c0_i32_2 = arith.constant 0 : i32
    return %c0_i32, %c0_i32_0, %c0_i32_1 : i32, i32, i32
  }
  func.func @transform_3(%arg0: i32) -> (i32, i32) {
    %c0_i32 = arith.constant 0 : i32
    %c0_i32_0 = arith.constant 0 : i32
    %c0_i32_1 = arith.constant 0 : i32
    return %c0_i32, %c0_i32_0 : i32, i32
  }
  func.func @transform_4(%arg0: i32) -> (i32, i32, i32) {
    %c0_i32 = arith.constant 0 : i32
    %c0_i32_0 = arith.constant 0 : i32
    %c0_i32_1 = arith.constant 0 : i32
    return %arg0, %c0_i32, %c0_i32_0 : i32, i32, i32
  }
}

</mosaic_0001>

<bundles_post_ra>
// kernel: tpu_custom_call.1
= control target key start
LH: loop header
LB: loop body
LE: loop exit
PB: predicated region body
PF: predicated region fallthrough
CT: control target
= control target key end

     0   :  { %9 = vsyncpa [#allocation4], 0  ;;  %s7427_s0 = inlined_call_operand.vmem [shape: bf16[2,256,4], index: 0, kind: input, shape index: {}]   ;;  %s7428_s1 = inlined_call_operand.vmem [shape: bf16[4,128], index: 1, kind: input, shape index: {}]   ;;  %s7429_s2 = inlined_call_operand.hbm [shape: bf16[3,128,384], index: 2, kind: input, shape index: {}]   ;;  %s7430_s3 = inlined_call_operand.vmem [shape: f32[4,128], index: 3, kind: input, shape index: {}]   ;;  %s7431_s4 = inlined_call_operand.hbm [shape: bf16[2,32,256], index: 4, kind: output, shape index: {}]  }
   0x1   :  { %10 = vsyncpa [#allocation5], 0 }
   0x2   :  { %12 = vsyncpa [#allocation5 + $0x1], 0  ;;  %s5469_s15 = smov 0   ;;  %s5471_s16 = smov 0  }
   0x3   :  { %s5473_s17 = smov 0   ;;  %s5475_s18 = smov 0  }
   0x4 LB: > { %s5490_s19 = sadd.s32 4294967295, %s5436_s18   ;;  %s4124_s20 = sadd.s32 4294967294, %s5436_s18   ;;  %s5436_s18 = sphi %s5475_s18, %s7682_s18   ;;  %s5432_s17 = sphi %s5473_s17, %s7681_s17   ;;  %s5428_s16 = sphi %s5471_s16, %s7680_s16   ;;  %s5424_s15 = sphi %s5469_s15, %s7679_s15  }
   0x5   : > { %s5494_s21 = sadd.s32 1, %s5436_s18   ;;  %s114_s22 = sadd.s32 1, %s5432_s17 }
   0x6   : > { %s111_s23 = ssub.s32 %s5436_s18, %s5494_s21  ;;  %p124_p0 = scmp.ne.s32.totalorder %s5432_s17, %s5428_s16 }
   0x7   : > { %p112_p1 = scmp.eq.s32.totalorder %s111_s23, 0  ;;  %p125_p2 = scmp.eq.s32.totalorder %s5490_s19, 1 }
   0x8   : > { %p130_p3 = scmp.ne.s32.totalorder %s5428_s16, %s5424_s15  ;;  %p131_p4 = scmp.eq.s32.totalorder %s4124_s20, 1 }
   0x9   : > { %s5505_s24 = scalar_select %p112_p1, %s5432_s17, %s114_s22  }
   0xa   : > { %p5507_p5 = por %p125_p2, %p124_p0  ;;  %p5511_p6 = por %p131_p4, %p130_p3 }
   0xb   : > { %p4125_p7 = scmp.ge.s32.totalorder %s5436_s18, 1  ;;  %p138_p8 = scmp.lt.s32.totalorder %s5436_s18, 3 }
   0xc   : > { %p5202_p9 = scmp.eq.s32.totalorder %s5490_s19, 0  ;;  %s152_s29 = sshll.u32 %s7429_s2, 4  ;;  %s153_s29 = int_to_ptr.hbm [resolvable:$true] %s152_s29 }
   0xd   : > { %p139_p10 = pnand %p4125_p7, %p138_p8  ;;  %s5438_s30 = smov [#allocation3]  }
   0xe   : > { %s154_s5 = sshll.u32 %s5438_s30, 4  ;;  %s5439_s6 = smov 192   ;;  %s155_s5 = int_to_ptr.vmem [resolvable:$true] %s154_s5 }
   0xf   : > { %p5194_p11 = pneg %p139_p10  ;;  %s5440_s7 = smov 12  }
  0x10   : > { %181 = sbr.rel (%p139_p10) target bundleno = 2051 (0x803), region = 36 }
  0x11   : > { %p5195_p12 = pnand %p5202_p9, %p5194_p11 }
  0x13   : > { %5197 = dma.hbm_to_vmem [thread:$0]  (!%p5195_p12), %s153_s29, 9216, %s155_s5, [#allocation4], %s5439_s6, %s5439_s6, %s5440_s7  }
  0x15   : > { %5415 = dma.done.wait (%p5202_p9), [#allocation4], 9216  }
  0x16   : > { %5417 = vsyncadd (%p5202_p9), [#allocation4], 4294958080  ;;  %p208_p13 = scmp.lt.s32.totalorder %s5490_s19, 1  ;;  %vm419_vm0 = vcmask 1041408   ;;  %v256_v0 = vld [vmem:[%s7428_s1] sm:$0x3] }
  0x17   : > { %v421_v1 = vsel %vm419_vm0, %v256_v0, 0  ;;  %vm370_vm1 = vcmask 31744   ;;  %s205_s28 = sand.u32 1, %s5428_s16   ;;  %s5075_s5 = sshll.u32 %s5490_s19, 5 }
  0x18   : > { %s209_s8 = scalar_select %p208_p13, %s5490_s19, 1  ;;  %430 = vmatpush.bf16.msra.mxu0 %v421_v1  ;;  %5171 = vmatpush.bf16.msra.mxu3 %v421_v1 }
  0x19   : > { %s4130_s29 = sshll.u32 %s205_s28, 5  ;;  %s4035_s11 = scalar_lea.sflag [#allocation5], %s205_s28 }
  0x1a   : > { %s4890_s9 = sshll.u32 %s209_s8, 7  ;;  %s207_s30 = scalar_lea.vmem [#allocation6], %s4130_s29 }
  0x1b   : > { %s5532_s12 = scalar_lea.vmem %s7427_s0, %s4890_s9  ;;  %s4046_s8 = scalar_lea.hbm %s7431_s4, %s5075_s5 }
  0x1c   : > { %v4891_v2 = vld [vmem:[%s5532_s12] sm:$0xff]  ;;  %v4892_v3 = vld [vmem:[%s5532_s12 + $0x8] sm:$0xff]  ;;  %v4893_v4 = vld [vmem:[%s5532_s12 + $0x10] sm:$0xff]  ;;  %s4047_s9 = sshll.u32 %s207_s30, 4  ;;  %s4049_s10 = sshll.u32 %s4046_s8, 4  ;;  %s4048_s9 = int_to_ptr.vmem [resolvable:$true] %s4047_s9  ;;  %s4050_s10 = int_to_ptr.hbm [resolvable:$true] %s4049_s10 }
  0x1d   : > { %4197 = vmatmul.msk.bf16.vlgmr.msra.gmra.mxu0 %vm370_vm1, %v4891_v2  ;;  %v4894_v5 = vld [vmem:[%s5532_s12 + $0x18] sm:$0xff]  ;;  %v4895_v6 = vld [vmem:[%s5532_s12 + $0x20] sm:$0xff]  ;;  %v4896_v7 = vld [vmem:[%s5532_s12 + $0x28] sm:$0xff]  ;;  %s5390_s20 = scalar_lea.hbm %s7431_s4, 64 }
  0x1e   : > { %v4897_v8 = vld [vmem:[%s5532_s12 + $0x30] sm:$0xff]  ;;  %v4898_v9 = vld [vmem:[%s5532_s12 + $0x38] sm:$0xff]  ;;  %v4899_v10 = vld [vmem:[%s5532_s12 + $0x40] sm:$0xff] }
  0x1f   : > { %v4904_v11 = vld [vmem:[%s5532_s12 + $0x68] sm:$0xff]  ;;  %v4905_v15 = vld [vmem:[%s5532_s12 + $0x70] sm:$0xff]  ;;  %v4906_v19 = vld [vmem:[%s5532_s12 + $0x78] sm:$0xff] }
  0x20   : > { %4210 = vmatmul.msk.bf16.vlgmr.msra.gmra.mxu3 %vm370_vm1, %v4904_v11  ;;  %v4900_v14 = vld [vmem:[%s5532_s12 + $0x48] sm:$0xff]  ;;  %v4901_v18 = vld [vmem:[%s5532_s12 + $0x50] sm:$0xff]  ;;  %v4902_v22 = vld [vmem:[%s5532_s12 + $0x58] sm:$0xff] }
  0x21   : > { %v4903_v25 = vld [vmem:[%s5532_s12 + $0x60] sm:$0xff]  ;;  %s5384_s12 = sshra.s32 %s4050_s10, 4  ;;  %s5385_s12 = int_to_ptr.hbm [resolvable:$true] %s5384_s12 }
  0x22   : > { %s5386_s19 = scalar_lea.hbm %s5385_s12, 32  ;;  %p5391_p3 = scmp.lt.s32.totalorder %s5385_s12, %s7431_s4 }
  0x23   : > { %p5387_p0 = scmp.ne.s32.totalorder %s5385_s12, %s5386_s19  ;;  %p5392_p4 = scmp.lt.s32.totalorder %s5390_s20, %s5386_s19 }
  0x25   : > { %p5388_p1 = pnand %p5387_p0, %p5507_p5  ;;  %p5393_p7 = por %p5392_p4, %p5391_p3 }
  0x27   : > { %p5389_p2 = pneg %p5388_p1 }
  0x29   : > { %p5394_p8 = pnand %p5393_p7, %p5389_p2 }
  0x2d   : > { %4198 = vmatmul.msk.bf16.gmra.mxu0 %vm370_vm1, %v4892_v3 }
  0x30   : > { %4211 = vmatmul.msk.bf16.gmra.mxu3 %vm370_vm1, %v4905_v15 }
  0x3d   : > { %4199 = vmatmul.msk.bf16.gmra.mxu0 %vm370_vm1, %v4893_v4 }
  0x40   : > { %4212 = vmatmul.msk.bf16.gmra.mxu3 %vm370_vm1, %v4906_v19 }
  0x4d   : > { %4200 = vmatmul.msk.bf16.gmra.mxu0 %vm370_vm1, %v4894_v5 }
  0x5d   : > { %4201 = vmatmul.msk.bf16.gmra.mxu0 %vm370_vm1, %v4895_v6 }
  0x6d   : > { %4202 = vmatmul.msk.bf16.gmra.mxu0 %vm370_vm1, %v4896_v7 }
  0x7d   : > { %4203 = vmatmul.msk.bf16.gmra.mxu0 %vm370_vm1, %v4897_v8 }
  0x8d   : > { %4204 = vmatmul.msk.bf16.gmra.mxu0 %vm370_vm1, %v4898_v9 }
  0x9a   : > { %v5555_v12 = vpop.f32.mrf.mxu0 }
  0x9b   : > { %v550_v39 = vmul.f32 %v5555_v12, %v5555_v12 }
  0x9d   : > { %4205 = vmatmul.msk.bf16.gmra.mxu0 %vm370_vm1, %v4899_v10 }
  0xa2   : > { %v5559_v13 = vpop.f32.mrf.mxu0 }
  0xa3   : > { %v551_v37 = vmul.f32 %v5559_v13, %v5559_v13  ;;  %v512_v40 = vadd.f32 %v5559_v13, %v5555_v12  ;;  %v5628_v52 = vpop.f32.mrf.mxu3 }
  0xa5   : > { %v582_v43 = vadd.f32 %v551_v37, %v550_v39 }
  0xaa   : > { %v5563_v16 = vpop.f32.mrf.mxu0 }
  0xab   : > { %v552_v41 = vmul.f32 %v5563_v16, %v5563_v16  ;;  %v513_v42 = vadd.f32 %v512_v40, %v5563_v16  ;;  %v5647_v5 = vpop.f32.mrf.mxu3 }
  0xad   : > { %4206 = vmatmul.msk.bf16.gmra.mxu0 %vm370_vm1, %v4900_v14  ;;  %v583_v45 = vadd.f32 %v582_v43, %v552_v41 }
  0xb2   : > { %v5567_v17 = vpop.f32.mrf.mxu0 }
  0xb3   : > { %v553_v44 = vmul.f32 %v5567_v17, %v5567_v17  ;;  %v514_v46 = vadd.f32 %v513_v42, %v5567_v17  ;;  %v5666_v42 = vpop.f32.mrf.mxu3 }
  0xb5   : > { %v584_v49 = vadd.f32 %v583_v45, %v553_v44 }
  0xba   : > { %v5571_v20 = vpop.f32.mrf.mxu0 }
  0xbb   : > { %v554_v47 = vmul.f32 %v5571_v20, %v5571_v20  ;;  %v515_v48 = vadd.f32 %v514_v46, %v5571_v20 }
  0xbd   : > { %4207 = vmatmul.msk.bf16.gmra.mxu0 %vm370_vm1, %v4901_v18  ;;  %v585_v53 = vadd.f32 %v584_v49, %v554_v47 }
  0xc2   : > { %v5575_v21 = vpop.f32.mrf.mxu0 }
  0xc3   : > { %v555_v50 = vmul.f32 %v5575_v21, %v5575_v21  ;;  %v516_v54 = vadd.f32 %v515_v48, %v5575_v21 }
  0xc5   : > { %v586_v57 = vadd.f32 %v585_v53, %v555_v50 }
  0xca   : > { %v5578_v23 = vpop.f32.mrf.mxu0 }
  0xcb   : > { %v556_v55 = vmul.f32 %v5578_v23, %v5578_v23  ;;  %v517_v56 = vadd.f32 %v516_v54, %v5578_v23 }
  0xcd   : > { %4208 = vmatmul.msk.bf16.gmra.mxu0 %vm370_vm1, %v4902_v22  ;;  %v587_v59 = vadd.f32 %v586_v57, %v556_v55 }
  0xd2   : > { %v5581_v24 = vpop.f32.mrf.mxu0 }
  0xd3   : > { %v557_v58 = vmul.f32 %v5581_v24, %v5581_v24  ;;  %v518_v60 = vadd.f32 %v517_v56, %v5581_v24 }
  0xd5   : > { %v588_v63 = vadd.f32 %v587_v59, %v557_v58 }
  0xda   : > { %v5584_v26 = vpop.f32.mrf.mxu0 }
  0xdb   : > { %v558_v61 = vmul.f32 %v5584_v26, %v5584_v26  ;;  %v519_v62 = vadd.f32 %v518_v60, %v5584_v26 }
  0xdd   : > { %4209 = vmatmul.msk.bf16.gmra.mxu0 %vm370_vm1, %v4903_v25  ;;  %v589_v2 = vadd.f32 %v588_v63, %v558_v61  ;;  %v4651_v61 = vld [vmem:[#allocation3 + $0xa8] sm:$0xf]  ;;  %v5685_v63 = vpop.f32.mrf.mxu3 }
  0xe2   : > { %v5587_v27 = vpop.f32.mrf.mxu0 }
  0xe3   : > { %v559_v0 = vmul.f32 %v5587_v27, %v5587_v27  ;;  %v520_v3 = vadd.f32 %v519_v62, %v5587_v27  ;;  %v4961_v62 = vld [vmem:[#allocation3 + $0xb0] sm:$0xf0] }
  0xe5   : > { %v590_v7 = vadd.f32 %v589_v2, %v559_v0  ;;  %v4652_v0 = vor.u32 %v4961_v62, %v4651_v61 }
  0xe7   : > { %2077 = vmatpush.bf16.msrb.mxu0 %v4652_v0  ;;  %v579_v0 = vmul.f32 %v5685_v63, %v5685_v63 }
  0xea   : > { %v5589_v28 = vpop.f32.mrf.mxu0 }
  0xeb   : > { %v560_v4 = vmul.f32 %v5589_v28, %v5589_v28  ;;  %v521_v6 = vadd.f32 %v520_v3, %v5589_v28 }
  0xed   : > { %v591_v9 = vadd.f32 %v590_v7, %v560_v4 }
  0xf2   : > { %v5591_v29 = vpop.f32.mrf.mxu0 }
  0xf3   : > { %v561_v8 = vmul.f32 %v5591_v29, %v5591_v29  ;;  %v522_v10 = vadd.f32 %v521_v6, %v5591_v29 }
  0xf5   : > { %v592_v15 = vadd.f32 %v591_v9, %v561_v8 }
  0xfa   : > { %v5593_v30 = vpop.f32.mrf.mxu0 }
  0xfb   : > { %v562_v11 = vmul.f32 %v5593_v30, %v5593_v30  ;;  %v523_v14 = vadd.f32 %v522_v10, %v5593_v30 }
  0xfd   : > { %v593_v22 = vadd.f32 %v592_v15, %v562_v11  ;;  %v4639_v15 = vld [vmem:[#allocation3 + $0x90] sm:$0xf] }
 0x102   : > { %v5595_v31 = vpop.f32.mrf.mxu0 }
 0x103   : > { %v563_v18 = vmul.f32 %v5595_v31, %v5595_v31  ;;  %v524_v25 = vadd.f32 %v523_v14, %v5595_v31 }
 0x105   : > { %v594_v40 = vadd.f32 %v593_v22, %v563_v18  ;;  %v4958_v18 = vld [vmem:[#allocation3 + $0x98] sm:$0xf0] }
 0x106   : > { %v4640_v22 = vor.u32 %v4958_v18, %v4639_v15 }
 0x108   : > { %2078 = vmatpush.bf16.msrb.mxu0 %v4640_v22 }
 0x10a   : > { %v5597_v32 = vpop.f32.mrf.mxu0 }
 0x10b   : > { %v564_v37 = vmul.f32 %v5597_v32, %v5597_v32  ;;  %v525_v39 = vadd.f32 %v524_v25, %v5597_v32 }
 0x10d   : > { %v595_v43 = vadd.f32 %v594_v40, %v564_v37 }
 0x112   : > { %v5599_v33 = vpop.f32.mrf.mxu0 }
 0x113   : > { %v565_v41 = vmul.f32 %v5599_v33, %v5599_v33  ;;  %v526_v44 = vadd.f32 %v525_v39, %v5599_v33 }
 0x115   : > { %v596_v47 = vadd.f32 %v595_v43, %v565_v41  ;;  %v5702_v43 = vpop.f32.mrf.mxu3 }
 0x11a   : > { %v5601_v34 = vpop.f32.mrf.mxu0 }
 0x11b   : > { %v566_v45 = vmul.f32 %v5601_v34, %v5601_v34  ;;  %v527_v46 = vadd.f32 %v526_v44, %v5601_v34 }
 0x11d   : > { %v597_v50 = vadd.f32 %v596_v47, %v566_v45 }
 0x122   : > { %v5603_v35 = vpop.f32.mrf.mxu0 }
 0x123   : > { %v567_v48 = vmul.f32 %v5603_v35, %v5603_v35  ;;  %v528_v53 = vadd.f32 %v527_v46, %v5603_v35 }
 0x125   : > { %v598_v56 = vadd.f32 %v597_v50, %v567_v48  ;;  %v576_v48 = vmul.f32 %v5628_v52, %v5628_v52 }
 0x12a   : > { %v5605_v36 = vpop.f32.mrf.mxu0 }
 0x12b   : > { %v568_v54 = vmul.f32 %v5605_v36, %v5605_v36  ;;  %v529_v55 = vadd.f32 %v528_v53, %v5605_v36 }
 0x12d   : > { %v599_v58 = vadd.f32 %v598_v56, %v568_v54  ;;  %v4627_v54 = vld [vmem:[#allocation3 + $0x78] sm:$0xf]  ;;  %v577_v56 = vmul.f32 %v5647_v5, %v5647_v5 }
 0x132   : > { %v5609_v38 = vpop.f32.mrf.mxu0 }
 0x133   : > { %v569_v57 = vmul.f32 %v5609_v38, %v5609_v38  ;;  %v530_v59 = vadd.f32 %v529_v55, %v5609_v38  ;;  %v4955_v55 = vld [vmem:[#allocation3 + $0x80] sm:$0xf0] }
 0x135   : > { %v600_v3 = vadd.f32 %v599_v58, %v569_v57 }
 0x13a   : > { %v5626_v51 = vpop.f32.mrf.mxu0 }
 0x13b   : > { %v570_v60 = vmul.f32 %v5626_v51, %v5626_v51  ;;  %v531_v2 = vadd.f32 %v530_v59, %v5626_v51  ;;  %v4628_v59 = vor.u32 %v4955_v55, %v4627_v54  ;;  %v4603_v55 = vld [vmem:[#allocation3 + $0x48] sm:$0xf] }
 0x13d   : > { %v601_v7 = vadd.f32 %v600_v3, %v570_v60  ;;  %v578_v60 = vmul.f32 %v5666_v42, %v5666_v42  ;;  %2079 = vmatpush.bf16.msrb.mxu0 %v4628_v59 }
 0x142   : > { %v5642_v1 = vpop.f32.mrf.mxu0 }
 0x143   : > { %v571_v4 = vmul.f32 %v5642_v1, %v5642_v1  ;;  %v532_v8 = vadd.f32 %v531_v2, %v5642_v1 }
 0x145   : > { %v602_v11 = vadd.f32 %v601_v7, %v571_v4  ;;  %v5721_v4 = vpop.f32.mrf.mxu3  ;;  %v4615_v7 = vld [vmem:[#allocation3 + $0x60] sm:$0xf] }
 0x146   : > { %v581_v18 = vmul.f32 %v5721_v4, %v5721_v4 }
 0x14a   : > { %v5658_v19 = vpop.f32.mrf.mxu0 }
 0x14b   : > { %v572_v9 = vmul.f32 %v5658_v19, %v5658_v19  ;;  %v533_v10 = vadd.f32 %v532_v8, %v5658_v19  ;;  %v4952_v8 = vld [vmem:[#allocation3 + $0x68] sm:$0xf0] }
 0x14d   : > { %v603_v25 = vadd.f32 %v602_v11, %v572_v9  ;;  %v580_v9 = vmul.f32 %v5702_v43, %v5702_v43 }
 0x152   : > { %v5674_v49 = vpop.f32.mrf.mxu0 }
 0x153   : > { %v573_v14 = vmul.f32 %v5674_v49, %v5674_v49  ;;  %v534_v37 = vadd.f32 %v533_v10, %v5674_v49 }
 0x155   : > { %v604_v41 = vadd.f32 %v603_v25, %v573_v14  ;;  %v4616_v14 = vor.u32 %v4952_v8, %v4615_v7  ;;  %v4579_v8 = vld [vmem:[#allocation3 + $0x18] sm:$0xf] }
 0x157   : > { %2080 = vmatpush.bf16.msrb.mxu0 %v4616_v14  ;;  %v4567_v14 = vld [vmem:[#allocation3] sm:$0xf] }
 0x15a   : > { %v5690_v6 = vpop.f32.mrf.mxu0 }
 0x15b   : > { %v574_v39 = vmul.f32 %v5690_v6, %v5690_v6  ;;  %v535_v40 = vadd.f32 %v534_v37, %v5690_v6 }
 0x15d   : > { %v605_v45 = vadd.f32 %v604_v41, %v574_v39 }
 0x162   : > { %v5704_v44 = vpop.f32.mrf.mxu0 }
 0x163   : > { %v536_v46 = vadd.f32 %v535_v40, %v5704_v44  ;;  %v575_v47 = vmul.f32 %v5704_v44, %v5704_v44 }
 0x165   : > { %v537_v50 = vadd.f32 %v536_v46, %v5628_v52  ;;  %v606_v53 = vadd.f32 %v605_v45, %v575_v47 }
 0x167   : > { %v538_v57 = vadd.f32 %v537_v50, %v5647_v5  ;;  %v607_v58 = vadd.f32 %v606_v53, %v576_v48 }
 0x169   : > { %v608_v61 = vadd.f32 %v607_v58, %v577_v56  ;;  %v539_v62 = vadd.f32 %v538_v57, %v5666_v42  ;;  %v4949_v56 = vld [vmem:[#allocation3 + $0x50] sm:$0xf0] }
 0x16a   : > { %v4604_v57 = vor.u32 %v4949_v56, %v4603_v55  ;;  %v5011_v55 = vld [vmem:[#allocation3 + $0x140] sm:$0xf0]  ;;  %v257_v56 = vld [vmem:[%s7430_s3] sm:$0xf] }
 0x16b   : > { %v540_v2 = vadd.f32 %v539_v62, %v5685_v63  ;;  %v609_v3 = vadd.f32 %v608_v61, %v578_v60  ;;  %v4591_v62 = vld [vmem:[#allocation3 + $0x30] sm:$0xf] }
 0x16c   : > { %2081 = vmatpush.bf16.msrb.mxu0 %v4604_v57 }
 0x16d   : > { %v541_v10 = vadd.f32 %v540_v2, %v5702_v43  ;;  %v610_v11 = vadd.f32 %v609_v3, %v579_v0  ;;  %v4946_v0 = vld [vmem:[#allocation3 + $0x38] sm:$0xf0] }
 0x16e   : > { %v4592_v2 = vor.u32 %v4946_v0, %v4591_v62  ;;  %v4391_v62 = vld [vmem:[#allocation3 + $0x120] sm:$0xf]  ;;  %v5008_v0 = vld [vmem:[#allocation3 + $0x128] sm:$0xf0] }
 0x16f   : > { %v542_v15 = vadd.f32 %v541_v10, %v5721_v4  ;;  %v611_v22 = vadd.f32 %v610_v11, %v580_v9  ;;  %v4943_v9 = vld [vmem:[#allocation3 + $0x20] sm:$0xf0]  ;;  %v5441_v11 = vmov 0  }
 0x170   : > { %2082 = vmatpush.bf16.msrb.mxu0 %v4592_v2  ;;  %v4580_v10 = vor.u32 %v4943_v9, %v4579_v8  ;;  %214 = vst [vmem:[#allocation2] sm:$0xf] %v5441_v11  ;;  %v4392_v2 = vor.u32 %v5008_v0, %v4391_v62 }
 0x171   : > { %v543_v25 = vrot.slane %v542_v15, 4  ;;  %v612_v37 = vadd.f32 %v611_v22, %v581_v18  ;;  %215 = vst [vmem:[#allocation2 + $0x4] sm:$0xf] %v5441_v11 }
 0x172   : > { %216 = vst [vmem:[#allocation2 + $0x8] sm:$0xf] %v5441_v11 }
 0x173   : > { %v544_v39 = vadd.f32 %v543_v25, %v542_v15  ;;  %v613_v40 = vrot.slane %v612_v37, 4  ;;  %v4940_v15 = vld [vmem:[#allocation3 + $0x8] sm:$0xf0]  ;;  %217 = vst [vmem:[#allocation2 + $0xc] sm:$0xf] %v5441_v11 }
 0x174   : > { %2083 = vmatpush.bf16.msrb.mxu0 %v4580_v10  ;;  %v4568_v18 = vor.u32 %v4940_v15, %v4567_v14  ;;  %219 = vst [vmem:[#allocation2 + $0x110] sm:$0xf] %v5441_v11  ;;  %v4427_v25 = vld [vmem:[#allocation3 + $0x168] sm:$0xf] }
 0x175   : > { %v545_v41 = vrot.slane %v544_v39, 2  ;;  %v614_v45 = vadd.f32 %v613_v40, %v612_v37  ;;  %220 = vst [vmem:[#allocation2 + $0x114] sm:$0xf] %v5441_v11  ;;  %v5017_v37 = vld [vmem:[#allocation3 + $0x170] sm:$0xf0] }
 0x176   : > { %221 = vst [vmem:[#allocation2 + $0x118] sm:$0xf] %v5441_v11  ;;  %v4428_v40 = vor.u32 %v5017_v37, %v4427_v25 }
 0x177   : > { %v546_v46 = vadd.f32 %v545_v41, %v544_v39  ;;  %v615_v47 = vrot.slane %v614_v45, 2  ;;  %222 = vst [vmem:[#allocation2 + $0x11c] sm:$0xf] %v5441_v11 }
 0x178   : > { %2084 = vmatpush.bf16.msrb.mxu0 %v4568_v18  ;;  %v5741_v41 = vld [vmem:[#allocation2] sm:$0xff]  ;;  %224 = vst [vmem:[#allocation2 + $0x18] sm:$0xf] %v5441_v11  ;;  %5173 = vmatpush.bf16.msrb.mxu3 %v4428_v40 }
 0x179   : > { %v547_v48 = vrot.slane %v546_v46, 1  ;;  %v616_v50 = vadd.f32 %v615_v47, %v614_v45  ;;  %225 = vst [vmem:[#allocation2 + $0x1c] sm:$0xf] %v5441_v11  ;;  %1314 = vmatpush.bf16.msra.mxu1 %v4428_v40  ;;  %v5014_v47 = vld [vmem:[#allocation3 + $0x158] sm:$0xf0]  ;;  %5172 = vmatpush.bf16.msra.mxu2 %v4428_v40 }
 0x17a   : > { %226 = vst [vmem:[#allocation2 + $0x28] sm:$0xf] %v5441_v11  ;;  %v5763_v9 = vld [vmem:[#allocation2 + $0x8] sm:$0xff] }
 0x17b   : > { %v548_v53 = vadd.f32 %v547_v48, %v546_v46  ;;  %v617_v54 = vrot.slane %v616_v50, 1  ;;  %v4415_v46 = vld [vmem:[#allocation3 + $0x150] sm:$0xf]  ;;  %2085 = vmatmul.bf16.vlgmr.msrb.gmra.mxu0 %v5741_v41  ;;  %227 = vst [vmem:[#allocation2 + $0x2c] sm:$0xf] %v5441_v11 }
 0x17c   : > { %228 = vst [vmem:[#allocation2 + $0x38] sm:$0xf] %v5441_v11 }
 0x17d   : > { %v5729_v58 = vmul.f32 0.00390625, %v548_v53  ;;  %v618_v59 = vadd.f32 %v617_v54, %v616_v50  ;;  %v4416_v50 = vor.u32 %v5014_v47, %v4415_v46  ;;  %229 = vst [vmem:[#allocation2 + $0x3c] sm:$0xf] %v5441_v11  ;;  %v4403_v54 = vld [vmem:[#allocation3 + $0x138] sm:$0xf] }
 0x17e   : > { %230 = vst [vmem:[#allocation2 + $0x48] sm:$0xf] %v5441_v11 }
 0x17f   : > { %v619_v60 = vmul.f32 0.00390625, %v618_v59  ;;  %v620_v61 = vmul.f32 %v5729_v58, %v5729_v58  ;;  %5175 = vmatpush.bf16.msrb.mxu3 %v4416_v50  ;;  %1315 = vmatpush.bf16.msra.mxu1 %v4416_v50  ;;  %v4404_v59 = vor.u32 %v5011_v55, %v4403_v54  ;;  %231 = vst [vmem:[#allocation2 + $0x4c] sm:$0xf] %v5441_v11 }
 0x180   : > { %5174 = vmatpush.bf16.msra.mxu2 %v4416_v50  ;;  %232 = vst [vmem:[#allocation2 + $0x58] sm:$0xf] %v5441_v11 }
 0x181   : > { %v621_v3 = vsub.f32 %v619_v60, %v620_v61  ;;  %233 = vst [vmem:[#allocation2 + $0x5c] sm:$0xf] %v5441_v11 }
 0x182   : > { %234 = vst [vmem:[#allocation2 + $0x68] sm:$0xf] %v5441_v11 }
 0x183   : > { %v622_v7 = vadd.f32 1e-05, %v621_v3  ;;  %5177 = vmatpush.bf16.msrb.mxu3 %v4404_v59  ;;  %1316 = vmatpush.bf16.msra.mxu1 %v4404_v59  ;;  %235 = vst [vmem:[#allocation2 + $0x6c] sm:$0xf] %v5441_v11 }
 0x184   : > { %5176 = vmatpush.bf16.msra.mxu2 %v4404_v59  ;;  %236 = vst [vmem:[#allocation2 + $0x78] sm:$0xf] %v5441_v11 }
 0x185   : > { %5295 = vrsqrt.f32 %v622_v7  ;;  %vm629_vm3 = vweird.f32 %v622_v7  ;;  %237 = vst [vmem:[#allocation2 + $0x7c] sm:$0xf] %v5441_v11 }
 0x186   : > { %238 = vst [vmem:[#allocation2 + $0x88] sm:$0xf] %v5441_v11 }
 0x187   : > { %5179 = vmatpush.bf16.msrb.mxu3 %v4392_v2  ;;  %1317 = vmatpush.bf16.msra.mxu1 %v4392_v2  ;;  %239 = vst [vmem:[#allocation2 + $0x8c] sm:$0xf] %v5441_v11 }
 0x188   : > { %5178 = vmatpush.bf16.msra.mxu2 %v4392_v2  ;;  %240 = vst [vmem:[#allocation2 + $0x98] sm:$0xf] %v5441_v11 }
 0x189   : > { %241 = vst [vmem:[#allocation2 + $0x9c] sm:$0xf] %v5441_v11 }
 0x18a   : > { %242 = vst [vmem:[#allocation2 + $0xa8] sm:$0xf] %v5441_v11 }
 0x18b   : > { %v5296_v22 = vpop.eup %5295  ;;  %2090 = vmatmul.bf16.gmra.mxu0 %v5763_v9  ;;  %243 = vst [vmem:[#allocation2 + $0xac] sm:$0xf] %v5441_v11 }
 0x18c   : > { %v624_v39 = vmul.f32 %v5296_v22, %v622_v7  ;;  %vm630_vm2 = vweird.f32 %v5296_v22  ;;  %244 = vst [vmem:[#allocation2 + $0xb8] sm:$0xf] %v5441_v11 }
 0x18d   : > { %vm631_vm4 = vmor %vm629_vm3, %vm630_vm2  ;;  %245 = vst [vmem:[#allocation2 + $0xbc] sm:$0xf] %v5441_v11 }
 0x18e   : > { %v625_v45 = vmul.f32 %v5296_v22, %v624_v39  ;;  %246 = vst [vmem:[#allocation2 + $0xc8] sm:$0xf] %v5441_v11 }
 0x18f   : > { %247 = vst [vmem:[#allocation2 + $0xcc] sm:$0xf] %v5441_v11 }
 0x190   : > { %v626_v48 = vmul.f32 0.5, %v625_v45  ;;  %248 = vst [vmem:[#allocation2 + $0xd8] sm:$0xf] %v5441_v11 }
 0x191   : > { %249 = vst [vmem:[#allocation2 + $0xdc] sm:$0xf] %v5441_v11 }
 0x192   : > { %v627_v53 = vsub.f32 1.5, %v626_v48  ;;  %250 = vst [vmem:[#allocation2 + $0xe8] sm:$0xf] %v5441_v11 }
 0x193   : > { %251 = vst [vmem:[#allocation2 + $0xec] sm:$0xf] %v5441_v11 }
 0x194   : > { %v628_v57 = vmul.f32 %v5296_v22, %v627_v53  ;;  %252 = vst [vmem:[#allocation2 + $0xf8] sm:$0xf] %v5441_v11 }
 0x195   : > { %253 = vst [vmem:[#allocation2 + $0xfc] sm:$0xf] %v5441_v11 }
 0x196   : > { %v632_v60 = vsel %vm631_vm4, %v5296_v22, %v628_v57  ;;  %254 = vst [vmem:[#allocation2 + $0x108] sm:$0xf] %v5441_v11 }
 0x197   : > { %v633_v61 = vmul.f32 %v632_v60, %v257_v56  ;;  %255 = vst [vmem:[#allocation2 + $0x10c] sm:$0xf] %v5441_v11 }
 0x199   : > { %v634_v3 = vmul.f32 %v633_v61, %v5729_v58  ;;  %v639_v8 = vperm.slane %v633_v61, 0 }
 0x19b   : > { %v636_v7 = vrot.slane %v634_v3, 7  ;;  %v670_v58 = vmul.f32 %v639_v8, %v5702_v43  ;;  %v671_v14 = vmul.f32 %v639_v8, %v5721_v4  ;;  %v640_v25 = vmul.f32 %v639_v8, %v5555_v12 }
 0x19c   : > { %v641_v43 = vmul.f32 %v639_v8, %v5559_v13  ;;  %v642_v4 = vmul.f32 %v639_v8, %v5563_v16  ;;  %v643_v37 = vmul.f32 %v639_v8, %v5567_v17  ;;  %v644_v39 = vmul.f32 %v639_v8, %v5571_v20 }
 0x19d   : > { %v638_v10 = vsub.f32 %v257_v56, %v636_v7  ;;  %v645_v46 = vmul.f32 %v639_v8, %v5575_v21  ;;  %v646_v47 = vmul.f32 %v639_v8, %v5578_v23  ;;  %v647_v12 = vmul.f32 %v639_v8, %v5581_v24 }
 0x19e   : > { %v648_v13 = vmul.f32 %v639_v8, %v5584_v26  ;;  %v649_v16 = vmul.f32 %v639_v8, %v5587_v27  ;;  %v650_v17 = vmul.f32 %v639_v8, %v5589_v28  ;;  %v651_v48 = vmul.f32 %v639_v8, %v5591_v29 }
 0x19f   : > { %v5770_v15 = vperm.slane %v638_v10, 1  ;;  %v652_v50 = vmul.f32 %v639_v8, %v5593_v30  ;;  %v653_v21 = vmul.f32 %v639_v8, %v5595_v31  ;;  %v654_v23 = vmul.f32 %v639_v8, %v5597_v32 }
 0x1a0   : > { %v655_v24 = vmul.f32 %v639_v8, %v5599_v33  ;;  %v656_v26 = vmul.f32 %v639_v8, %v5601_v34  ;;  %v657_v27 = vmul.f32 %v639_v8, %v5603_v35  ;;  %v658_v28 = vmul.f32 %v639_v8, %v5605_v36 }
 0x1a1   : > { %v703_v18 = vadd.f32 %v5770_v15, %v670_v58  ;;  %v704_v22 = vadd.f32 %v5770_v15, %v671_v14  ;;  %v659_v29 = vmul.f32 %v639_v8, %v5609_v38  ;;  %v660_v30 = vmul.f32 %v639_v8, %v5626_v51 }
 0x1a2   : > { %v661_v31 = vmul.f32 %v639_v8, %v5642_v1  ;;  %v662_v53 = vmul.f32 %v639_v8, %v5658_v19  ;;  %v663_v32 = vmul.f32 %v639_v8, %v5674_v49  ;;  %v664_v33 = vmul.f32 %v639_v8, %v5690_v6 }
 0x1a3   : > { %v735_v40 = vmax.f32 %v703_v18, 0.0  ;;  %v736_v45 = vmax.f32 %v704_v22, 0.0  ;;  %v665_v34 = vmul.f32 %v639_v8, %v5704_v44  ;;  %v666_v35 = vmul.f32 %v639_v8, %v5628_v52 }
 0x1a4   : > { %v667_v36 = vmul.f32 %v639_v8, %v5647_v5  ;;  %v668_v38 = vmul.f32 %v639_v8, %v5666_v42  ;;  %v5814_v51 = vmul.f32 %v639_v8, %v5685_v63  ;;  %v673_v1 = vadd.f32 %v5770_v15, %v640_v25 }
 0x1a5   : > { %v5154_v20 = vpack.c.bf16 %v736_v45, %v735_v40  ;;  %v674_v19 = vadd.f32 %v5770_v15, %v641_v43  ;;  %v675_v49 = vadd.f32 %v5770_v15, %v642_v4  ;;  %v676_v6 = vadd.f32 %v5770_v15, %v643_v37 }
 0x1a6   : > { %v677_v52 = vadd.f32 %v5770_v15, %v644_v39  ;;  %v678_v5 = vadd.f32 %v5770_v15, %v645_v46  ;;  %v679_v42 = vadd.f32 %v5770_v15, %v646_v47  ;;  %v680_v63 = vadd.f32 %v5770_v15, %v647_v12 }
 0x1a7   : > { %5170 = vst [vmem:[#allocation2 + $0x100] sm:$0xff] %v5154_v20   ;;  %v681_v44 = vadd.f32 %v5770_v15, %v648_v13  ;;  %v682_v54 = vadd.f32 %v5770_v15, %v649_v16  ;;  %v683_v55 = vadd.f32 %v5770_v15, %v650_v17  ;;  %v684_v56 = vadd.f32 %v5770_v15, %v651_v48 }
 0x1a8   : > { %v685_v57 = vadd.f32 %v5770_v15, %v652_v50  ;;  %v686_v59 = vadd.f32 %v5770_v15, %v653_v21  ;;  %v687_v60 = vadd.f32 %v5770_v15, %v654_v23  ;;  %v688_v61 = vadd.f32 %v5770_v15, %v655_v24  ;;  %v4379_v21 = vld [vmem:[#allocation3 + $0x108] sm:$0xf]  ;;  %v5005_v23 = vld [vmem:[#allocation3 + $0x110] sm:$0xf0] }
 0x1a9   : > { %v689_v62 = vadd.f32 %v5770_v15, %v656_v26  ;;  %v690_v0 = vadd.f32 %v5770_v15, %v657_v27  ;;  %v5840_v2 = vadd.f32 %v5770_v15, %v658_v28  ;;  %v5843_v3 = vadd.f32 %v5770_v15, %v659_v29  ;;  %v4367_v29 = vld [vmem:[#allocation3 + $0xf0] sm:$0xf] }
 0x1aa   : > { %v5846_v7 = vadd.f32 %v5770_v15, %v660_v30  ;;  %v5849_v8 = vadd.f32 %v5770_v15, %v661_v31  ;;  %v705_v10 = vmax.f32 %v673_v1, 0.0  ;;  %v706_v58 = vmax.f32 %v674_v19, 0.0 }
 0x1ab   : > { %v707_v14 = vmax.f32 %v675_v49, 0.0  ;;  %v708_v11 = vmax.f32 %v676_v6, 0.0  ;;  %v709_v18 = vmax.f32 %v677_v52, 0.0  ;;  %v710_v22 = vmax.f32 %v678_v5, 0.0 }
 0x1ac   : > { %v695_v25 = vadd.f32 %v5770_v15, %v662_v53  ;;  %v696_v43 = vadd.f32 %v5770_v15, %v663_v32  ;;  %v711_v4 = vmax.f32 %v679_v42, 0.0  ;;  %v712_v37 = vmax.f32 %v680_v63, 0.0 }
 0x1ad   : > { %v5854_v39 = vadd.f32 %v5770_v15, %v664_v33  ;;  %v5857_v40 = vadd.f32 %v5770_v15, %v665_v34  ;;  %v713_v45 = vmax.f32 %v681_v44, 0.0  ;;  %v714_v46 = vmax.f32 %v682_v54, 0.0  ;;  %v5002_v33 = vld [vmem:[#allocation3 + $0xf8] sm:$0xf0]  ;;  %v4355_v44 = vld [vmem:[#allocation3 + $0xd8] sm:$0xf] }
 0x1ae   : > { %v5860_v47 = vadd.f32 %v5770_v15, %v666_v35  ;;  %v715_v12 = vmax.f32 %v683_v55, 0.0  ;;  %v716_v13 = vmax.f32 %v684_v56, 0.0  ;;  %v717_v16 = vmax.f32 %v685_v57, 0.0 }
 0x1af   : > { %v718_v17 = vmax.f32 %v686_v59, 0.0  ;;  %v5079_v20 = vpack.c.bf16 %v706_v58, %v705_v10  ;;  %v5084_v48 = vpack.c.bf16 %v708_v11, %v707_v14  ;;  %v5089_v50 = vpack.c.bf16 %v710_v22, %v709_v18  ;;  %v4435_v58 = vld [vmem:[#allocation3 + $0x170] sm:$0xf]  ;;  %v5018_v14 = vld [vmem:[#allocation3 + $0x178] sm:$0xf0] }
 0x1b0   : > { %v700_v24 = vadd.f32 %v5770_v15, %v667_v36  ;;  %v719_v26 = vmax.f32 %v687_v60, 0.0  ;;  %v720_v27 = vmax.f32 %v688_v61, 0.0  ;;  %v5094_v28 = vpack.c.bf16 %v712_v37, %v711_v4  ;;  %v5016_v18 = vld [vmem:[#allocation3 + $0x16c] sm:$0xf]  ;;  %v4429_v22 = vld [vmem:[#allocation3 + $0x174] sm:$0xf0] }
 0x1b1   : > { %v701_v30 = vadd.f32 %v5770_v15, %v668_v38  ;;  %v721_v31 = vmax.f32 %v689_v62, 0.0  ;;  %v722_v53 = vmax.f32 %v690_v0, 0.0  ;;  %v5099_v32 = vpack.c.bf16 %v714_v46, %v713_v45  ;;  %5080 = vst [vmem:[#allocation2 + $0x10] sm:$0xff] %v5079_v20   ;;  %v4653_v4 = vld [vmem:[#allocation3 + $0xb4] sm:$0xf0] }
 0x1b2   : > { %v723_v34 = vmax.f32 %v5840_v2, 0.0  ;;  %v724_v35 = vmax.f32 %v5843_v3, 0.0  ;;  %v5104_v1 = vpack.c.bf16 %v716_v13, %v715_v12  ;;  %5156 = vst [vmem:[#allocation2 + $0x20] sm:$0xff] %v5084_v48   ;;  %v4380_v19 = vor.u32 %v5005_v23, %v4379_v21  ;;  %v4343_v3 = vld [vmem:[#allocation3 + $0xc0] sm:$0xf]  ;;  %v5882_v21 = vld [vmem:[#allocation2 + $0x18] sm:$0xff] }
 0x1b3   : > { %v702_v36 = vadd.f32 %v5770_v15, %v5814_v51  ;;  %v725_v49 = vmax.f32 %v5846_v7, 0.0  ;;  %v726_v6 = vmax.f32 %v5849_v8, 0.0  ;;  %v5109_v38 = vpack.c.bf16 %v718_v17, %v717_v16  ;;  %5157 = vst [vmem:[#allocation2 + $0x30] sm:$0xff] %v5089_v50   ;;  %v4999_v15 = vld [vmem:[#allocation3 + $0xe0] sm:$0xf0] }
 0x1b4   : > { %v727_v52 = vmax.f32 %v695_v25, 0.0  ;;  %v728_v5 = vmax.f32 %v696_v43, 0.0  ;;  %v5114_v42 = vpack.c.bf16 %v720_v27, %v719_v26  ;;  %5158 = vst [vmem:[#allocation2 + $0x40] sm:$0xff] %v5094_v28   ;;  %5181 = vmatpush.bf16.msrb.mxu3 %v4380_v19  ;;  %v4368_v63 = vor.u32 %v5002_v33, %v4367_v29  ;;  %1318 = vmatpush.bf16.msra.mxu1 %v4380_v19  ;;  %v4996_v7 = vld [vmem:[#allocation3 + $0xc8] sm:$0xf0] }
 0x1b5   : > { %v729_v54 = vmax.f32 %v5854_v39, 0.0  ;;  %v730_v55 = vmax.f32 %v5857_v40, 0.0  ;;  %v5119_v56 = vpack.c.bf16 %v722_v53, %v721_v31  ;;  %5159 = vst [vmem:[#allocation2 + $0x50] sm:$0xff] %v5099_v32   ;;  %5180 = vmatpush.bf16.msra.mxu2 %v4380_v19  ;;  %v731_v51 = vmax.f32 %v5860_v47, 0.0  ;;  %v4960_v43 = vld [vmem:[#allocation3 + $0xac] sm:$0xf] }
 0x1b6   : > { %v732_v57 = vmax.f32 %v700_v24, 0.0  ;;  %v5124_v59 = vpack.c.bf16 %v724_v35, %v723_v34  ;;  %5160 = vst [vmem:[#allocation2 + $0x60] sm:$0xff] %v5104_v1   ;;  %v733_v60 = vmax.f32 %v701_v30, 0.0  ;;  %v734_v61 = vmax.f32 %v702_v36, 0.0  ;;  %v4423_v46 = vld [vmem:[#allocation3 + $0x158] sm:$0xf] }
 0x1b7   : > { %v5129_v62 = vpack.c.bf16 %v726_v6, %v725_v49  ;;  %5161 = vst [vmem:[#allocation2 + $0x70] sm:$0xff] %v5109_v38   ;;  %v5134_v0 = vpack.c.bf16 %v728_v5, %v727_v52  ;;  %v4356_v2 = vor.u32 %v4999_v15, %v4355_v44  ;;  %v5139_v10 = vpack.c.bf16 %v730_v55, %v729_v54  ;;  %v5015_v47 = vld [vmem:[#allocation3 + $0x160] sm:$0xf0]  ;;  %v5013_v13 = vld [vmem:[#allocation3 + $0x154] sm:$0xf]  ;;  %v5885_v30 = vld [vmem:[#allocation2 + $0x18] sm:$0xff] }
 0x1b8   : > { %5162 = vst [vmem:[#allocation2 + $0x80] sm:$0xff] %v5114_v42   ;;  %5183 = vmatpush.bf16.msrb.mxu3 %v4368_v63  ;;  %1319 = vmatpush.bf16.msra.mxu1 %v4368_v63  ;;  %v5873_v8 = vld [vmem:[#allocation2 + $0x10] sm:$0xff]  ;;  %v5144_v11 = vpack.c.bf16 %v732_v57, %v731_v51  ;;  %v5149_v25 = vpack.c.bf16 %v734_v61, %v733_v60  ;;  %v4417_v16 = vld [vmem:[#allocation3 + $0x15c] sm:$0xf0]  ;;  %v5012_v24 = vld [vmem:[#allocation3 + $0x148] sm:$0xf0] }
 0x1b9   : > { %5163 = vst [vmem:[#allocation2 + $0x90] sm:$0xff] %v5119_v56   ;;  %5182 = vmatpush.bf16.msra.mxu2 %v4368_v63  ;;  %2094 = vmatmul.bf16.gmra.mxu0 %v5873_v8  ;;  %v4344_v37 = vor.u32 %v4996_v7, %v4343_v3  ;;  %v4436_v39 = vor.u32 %v5018_v14, %v4435_v58  ;;  %v5876_v12 = vld [vmem:[#allocation2 + $0x10] sm:$0xff]  ;;  %v4411_v23 = vld [vmem:[#allocation3 + $0x140] sm:$0xf]  ;;  %v5887_v31 = vld [vmem:[#allocation2 + $0x78] sm:$0xff] }
 0x1ba   : > { %5164 = vst [vmem:[#allocation2 + $0xa0] sm:$0xff] %v5124_v59   ;;  %v4432_v40 = vor.u32 %v5016_v18, %v4429_v22  ;;  %v4656_v45 = vor.u32 %v4960_v43, %v4653_v4  ;;  %v4424_v20 = vor.u32 %v5015_v47, %v4423_v46  ;;  %v4420_v48 = vor.u32 %v5013_v13, %v4417_v16  ;;  %v4957_v26 = vld [vmem:[#allocation3 + $0x94] sm:$0xf]  ;;  %v4641_v28 = vld [vmem:[#allocation3 + $0x9c] sm:$0xf0]  ;;  %v4988_v53 = vld [vmem:[#allocation2 + $0xd8] sm:$0xff] }
 0x1bb   : > { %5165 = vst [vmem:[#allocation2 + $0xb0] sm:$0xff] %v5129_v62   ;;  %v4412_v27 = vor.u32 %v5012_v24, %v4411_v23  ;;  %v4644_v29 = vor.u32 %v4957_v26, %v4641_v28  ;;  %v4399_v32 = vld [vmem:[#allocation3 + $0x128] sm:$0xf]  ;;  %v5009_v33 = vld [vmem:[#allocation3 + $0x130] sm:$0xf0]  ;;  %v5891_v36 = vld [vmem:[#allocation2 + $0x20] sm:$0xff] }
 0x1bc   : > { %5166 = vst [vmem:[#allocation2 + $0xc0] sm:$0xff] %v5134_v0   ;;  %5185 = vmatpush.bf16.msrb.mxu3 %v4356_v2  ;;  %1320 = vmatpush.bf16.msra.mxu1 %v4356_v2  ;;  %v4400_v34 = vor.u32 %v5009_v33, %v4399_v32  ;;  %v5010_v35 = vld [vmem:[#allocation3 + $0x13c] sm:$0xf]  ;;  %v4405_v1 = vld [vmem:[#allocation3 + $0x144] sm:$0xf0]  ;;  %v5894_v52 = vld [vmem:[#allocation2 + $0x20] sm:$0xff] }
 0x1bd   : > { %5167 = vst [vmem:[#allocation2 + $0xd0] sm:$0xff] %v5139_v10   ;;  %5184 = vmatpush.bf16.msra.mxu2 %v4356_v2  ;;  %v4954_v19 = vld [vmem:[#allocation3 + $0x7c] sm:$0xf]  ;;  %v4408_v49 = vor.u32 %v5010_v35, %v4405_v1  ;;  %v4629_v6 = vld [vmem:[#allocation3 + $0x84] sm:$0xf0]  ;;  %v5909_v7 = vld [vmem:[#allocation2 + $0x30] sm:$0xff] }
 0x1be   : > { %5168 = vst [vmem:[#allocation2 + $0xe0] sm:$0xff] %v5144_v11   ;;  %v5878_v17 = vld [vmem:[#allocation2 + $0x70] sm:$0xff]  ;;  %v4632_v38 = vor.u32 %v4954_v19, %v4629_v6  ;;  %v5900_v63 = vld [vmem:[#allocation2 + $0x28] sm:$0xff]  ;;  %v5006_v54 = vld [vmem:[#allocation3 + $0x118] sm:$0xf0] }
 0x1bf   : > { %5169 = vst [vmem:[#allocation2 + $0xf0] sm:$0xff] %v5149_v25   ;;  %v5896_v5 = vld [vmem:[#allocation2 + $0x80] sm:$0xff]  ;;  %v4387_v44 = vld [vmem:[#allocation3 + $0x110] sm:$0xf]  ;;  %v5903_v57 = vld [vmem:[#allocation2 + $0x28] sm:$0xff] }
 0x1c0   : > { %5187 = vmatpush.bf16.msrb.mxu3 %v4344_v37  ;;  %1321 = vmatpush.bf16.msra.mxu1 %v4344_v37  ;;  %v5007_v55 = vld [vmem:[#allocation3 + $0x124] sm:$0xf]  ;;  %v4388_v56 = vor.u32 %v5006_v54, %v4387_v44  ;;  %v4393_v15 = vld [vmem:[#allocation3 + $0x12c] sm:$0xf0]  ;;  %v5905_v59 = vld [vmem:[#allocation2 + $0x88] sm:$0xff] }
 0x1c1   : > { %5186 = vmatpush.bf16.msra.mxu2 %v4344_v37  ;;  %v4396_v51 = vor.u32 %v5007_v55, %v4393_v15  ;;  %v4990_v60 = vld [vmem:[#allocation2 + $0xe8] sm:$0xff]  ;;  %v4375_v61 = vld [vmem:[#allocation3 + $0xf8] sm:$0xf]  ;;  %v5003_v62 = vld [vmem:[#allocation3 + $0x100] sm:$0xf0] }
 0x1c2   : > { %v4376_v0 = vor.u32 %v5003_v62, %v4375_v61  ;;  %v4951_v2 = vld [vmem:[#allocation3 + $0x64] sm:$0xf]  ;;  %v4617_v3 = vld [vmem:[#allocation3 + $0x6c] sm:$0xf0]  ;;  %v5918_v18 = vld [vmem:[#allocation2 + $0x38] sm:$0xff] }
 0x1c3   : > { %1322 = vmatmul.bf16.vlgmr.msra.gmra.mxu1 %v5876_v12  ;;  %v4620_v10 = vor.u32 %v4951_v2, %v4617_v3  ;;  %v5912_v58 = vld [vmem:[#allocation2 + $0x30] sm:$0xff]  ;;  %v4363_v22 = vld [vmem:[#allocation3 + $0xe0] sm:$0xf]  ;;  %v5000_v25 = vld [vmem:[#allocation3 + $0xe8] sm:$0xf0] }
 0x1c4   : > { %1604 = vmatpush.bf16.msra.mxu3 %v4436_v39  ;;  %2230 = vmatpush.bf16.msrb.mxu1 %v4656_v45  ;;  %v4987_v50 = vld [vmem:[#allocation2 + $0xd0] sm:$0xff]  ;;  %v5004_v43 = vld [vmem:[#allocation3 + $0x10c] sm:$0xf]  ;;  %v4364_v37 = vor.u32 %v5000_v25, %v4363_v22  ;;  %v4381_v39 = vld [vmem:[#allocation3 + $0x114] sm:$0xf0] }
 0x1c5   : > { %1467 = vmatpush.bf16.msrb.mxu2 %v4432_v40  ;;  %1430 = vmatmul.bf16.vlgmr.msrb.gmra.mxu3 %v4987_v50  ;;  %v4989_v42 = vld [vmem:[#allocation2 + $0xe0] sm:$0xff]  ;;  %v5914_v14 = vld [vmem:[#allocation2 + $0x90] sm:$0xff]  ;;  %v4948_v40 = vld [vmem:[#allocation3 + $0x4c] sm:$0xf]  ;;  %v4384_v46 = vor.u32 %v5004_v43, %v4381_v39 }
 0x1c6   : > { %1376 = vmatmul.bf16.vlgmr.msra.gmra.mxu2 %v5878_v17  ;;  %v4991_v11 = vld [vmem:[#allocation2 + $0xf0] sm:$0xff]  ;;  %v4605_v45 = vld [vmem:[#allocation3 + $0x54] sm:$0xf0]  ;;  %v4351_v50 = vld [vmem:[#allocation3 + $0xc8] sm:$0xf] }
 0x1c7   : > { %v4608_v47 = vor.u32 %v4948_v40, %v4605_v45  ;;  %v5921_v13 = vld [vmem:[#allocation2 + $0x38] sm:$0xff]  ;;  %v4997_v23 = vld [vmem:[#allocation3 + $0xd0] sm:$0xf0]  ;;  %v4369_v28 = vld [vmem:[#allocation3 + $0xfc] sm:$0xf0] }
 0x1c8   : > { %1605 = vmatpush.bf16.msra.mxu3 %v4424_v20  ;;  %2231 = vmatpush.bf16.msrb.mxu1 %v4644_v29  ;;  %v5925_v20 = vld [vmem:[#allocation2 + $0x98] sm:$0xff]  ;;  %v4352_v26 = vor.u32 %v4997_v23, %v4351_v50  ;;  %v5929_v29 = vld [vmem:[#allocation2 + $0x40] sm:$0xff]  ;;  %v5938_v35 = vld [vmem:[#allocation2 + $0x48] sm:$0xff] }
 0x1c9   : > { %1468 = vmatpush.bf16.msrb.mxu2 %v4420_v48  ;;  %2099 = vmatmul.bf16.gmra.mxu0 %v5882_v21  ;;  %v4992_v48 = vld [vmem:[#allocation2 + $0xf8] sm:$0xff]  ;;  %v5932_v32 = vld [vmem:[#allocation2 + $0x40] sm:$0xff]  ;;  %v4875_v1 = vld [vmem:[#allocation3 + $0x228] sm:$0xf] }
 0x1ca   : > { %v5934_v33 = vld [vmem:[#allocation2 + $0xa0] sm:$0xff]  ;;  %v5073_v19 = vld [vmem:[#allocation3 + $0x230] sm:$0xf0]  ;;  %v5941_v54 = vld [vmem:[#allocation2 + $0x48] sm:$0xff] }
 0x1cb   : > { %v4945_v6 = vld [vmem:[#allocation3 + $0x34] sm:$0xf]  ;;  %v5943_v55 = vld [vmem:[#allocation2 + $0xa8] sm:$0xff]  ;;  %v5974_v23 = vld [vmem:[#allocation2 + $0xb8] sm:$0xff] }
 0x1cc   : > { %1606 = vmatpush.bf16.msra.mxu3 %v4412_v27  ;;  %2232 = vmatpush.bf16.msrb.mxu1 %v4632_v38  ;;  %v5001_v27 = vld [vmem:[#allocation3 + $0xf4] sm:$0xf]  ;;  %v4593_v38 = vld [vmem:[#allocation3 + $0x3c] sm:$0xf0]  ;;  %v4357_v61 = vld [vmem:[#allocation3 + $0xe4] sm:$0xf0] }
 0x1cd   : > { %1469 = vmatpush.bf16.msrb.mxu2 %v4408_v49  ;;  %v4876_v49 = vor.u32 %v5073_v19, %v4875_v1  ;;  %v4581_v22 = vld [vmem:[#allocation3 + $0x24] sm:$0xf0]  ;;  %v5954_v25 = vld [vmem:[#allocation2 + $0xb0] sm:$0xff]  ;;  %v5983_v19 = vld [vmem:[#allocation2 + $0x60] sm:$0xff] }
 0x1d0   : > { %1607 = vmatpush.bf16.msra.mxu3 %v4400_v34  ;;  %2233 = vmatpush.bf16.msrb.mxu1 %v4620_v10  ;;  %v4993_v34 = vld [vmem:[#allocation2 + $0x100] sm:$0xff]  ;;  %v5952_v10 = vld [vmem:[#allocation2 + $0x50] sm:$0xff] }
 0x1d1   : > { %1470 = vmatpush.bf16.msrb.mxu2 %v4396_v51  ;;  %v5947_v51 = vld [vmem:[#allocation2 + $0x50] sm:$0xff] }
 0x1d3   : > { %1327 = vmatmul.bf16.gmra.mxu1 %v5885_v30 }
 0x1d4   : > { %1608 = vmatpush.bf16.msra.mxu3 %v4388_v56  ;;  %2234 = vmatpush.bf16.msrb.mxu1 %v4608_v47  ;;  %v4994_v56 = vld [vmem:[#allocation2 + $0x108] sm:$0xff]  ;;  %v5970_v47 = vld [vmem:[#allocation2 + $0x58] sm:$0xff] }
 0x1d5   : > { %1435 = vmatmul.bf16.gmra.mxu3 %v4988_v53  ;;  %1471 = vmatpush.bf16.msrb.mxu2 %v4384_v46  ;;  %v4372_v53 = vor.u32 %v5001_v27, %v4369_v28  ;;  %v4345_v27 = vld [vmem:[#allocation3 + $0xcc] sm:$0xf0] }
 0x1d6   : > { %1381 = vmatmul.bf16.gmra.mxu2 %v5887_v31 }
 0x1d8   : > { %1609 = vmatpush.bf16.msra.mxu3 %v4376_v0 }
 0x1d9   : > { %2103 = vmatmul.bf16.gmra.mxu0 %v5891_v36  ;;  %1472 = vmatpush.bf16.msrb.mxu2 %v4372_v53 }
 0x1dc   : > { %1610 = vmatpush.bf16.msra.mxu3 %v4364_v37  ;;  %v5959_v37 = vld [vmem:[#allocation2 + $0x58] sm:$0xff] }
 0x1e0   : > { %1611 = vmatpush.bf16.msra.mxu3 %v4352_v26  ;;  %v4995_v26 = vld [vmem:[#allocation3 + $0xc4] sm:$0xf] }
 0x1e1   : > { %v4348_v28 = vor.u32 %v4995_v26, %v4345_v27 }
 0x1e3   : > { %1331 = vmatmul.bf16.gmra.mxu1 %v5894_v52 }
 0x1e4   : > { %2938 = vmatpush.bf16.msrb.mxu3 %v4876_v49 }
 0x1e5   : > { %1439 = vmatmul.bf16.gmra.mxu3 %v4989_v42  ;;  %v4596_v42 = vor.u32 %v4945_v6, %v4593_v38  ;;  %v4939_v38 = vld [vmem:[#allocation3 + $0x4] sm:$0xf] }
 0x1e6   : > { %1385 = vmatmul.bf16.gmra.mxu2 %v5896_v5 }
 0x1e7   : > { %2235 = vmatpush.bf16.msrb.mxu1 %v4596_v42  ;;  %v4569_v42 = vld [vmem:[#allocation3 + $0xc] sm:$0xf0] }
 0x1e9   : > { %2108 = vmatmul.bf16.gmra.mxu0 %v5900_v63 }
 0x1f3   : > { %1336 = vmatmul.bf16.gmra.mxu1 %v5903_v57 }
 0x1f5   : > { %1444 = vmatmul.bf16.gmra.mxu3 %v4990_v60  ;;  %v4998_v60 = vld [vmem:[#allocation3 + $0xdc] sm:$0xf] }
 0x1f6   : > { %1390 = vmatmul.bf16.gmra.mxu2 %v5905_v59  ;;  %v4360_v62 = vor.u32 %v4998_v60, %v4357_v61 }
 0x1f8   : > { %v2086_v4 = vpop.f32.mrf.mxu0  ;;  %1473 = vmatpush.bf16.msrb.mxu2 %v4360_v62 }
 0x1f9   : > { %2112 = vmatmul.bf16.gmra.mxu0 %v5909_v7 }
 0x1fc   : > { %1474 = vmatpush.bf16.msrb.mxu2 %v4348_v28 }
 0x200   : > { %v5923_v16 = vpop.f32.mrf.mxu0 }
 0x203   : > { %1340 = vmatmul.bf16.gmra.mxu1 %v5912_v58 }
 0x205   : > { %1448 = vmatmul.bf16.gmra.mxu3 %v4991_v11  ;;  %v4942_v11 = vld [vmem:[#allocation3 + $0x1c] sm:$0xf] }
 0x206   : > { %1394 = vmatmul.bf16.gmra.mxu2 %v5914_v14  ;;  %v4584_v43 = vor.u32 %v4942_v11, %v4581_v22  ;;  %v5994_v22 = vld [vmem:[#allocation2 + $0x60] sm:$0xff] }
 0x208   : > { %v2091_v24 = vpop.f32.mrf.mxu0  ;;  %2236 = vmatpush.bf16.msrb.mxu1 %v4584_v43  ;;  %v5996_v43 = vld [vmem:[#allocation2 + $0xc0] sm:$0xff] }
 0x209   : > { %2117 = vmatmul.bf16.gmra.mxu0 %v5918_v18 }
 0x210   : > { %v2092_v44 = vpop.f32.mrf.mxu0 }
 0x213   : > { %1345 = vmatmul.bf16.gmra.mxu1 %v5921_v13 }
 0x215   : > { %1453 = vmatmul.bf16.gmra.mxu3 %v4992_v48 }
 0x216   : > { %1399 = vmatmul.bf16.gmra.mxu2 %v5925_v20 }
 0x219   : > { %2121 = vmatmul.bf16.gmra.mxu0 %v5929_v29 }
 0x223   : > { %1349 = vmatmul.bf16.gmra.mxu1 %v5932_v32 }
 0x225   : > { %1457 = vmatmul.bf16.gmra.mxu3 %v4993_v34 }
 0x226   : > { %1403 = vmatmul.bf16.gmra.mxu2 %v5934_v33 }
 0x229   : > { %2126 = vmatmul.bf16.gmra.mxu0 %v5938_v35 }
 0x233   : > { %1354 = vmatmul.bf16.gmra.mxu1 %v5941_v54 }
 0x235   : > { %1462 = vmatmul.bf16.gmra.mxu3 %v4994_v56  ;;  %v4572_v56 = vor.u32 %v4939_v38, %v4569_v42  ;;  %v4962_v38 = vld [vmem:[#allocation3 + $0xb8] sm:$0xf0] }
 0x236   : > { %1408 = vmatmul.bf16.gmra.mxu2 %v5943_v55  ;;  %v2095_v15 = vpop.f32.mrf.mxu0 }
 0x237   : > { %2237 = vmatpush.bf16.msrb.mxu1 %v4572_v56 }
 0x239   : > { %2130 = vmatmul.bf16.gmra.mxu0 %v5947_v51 }
 0x23e   : > { %v2097_v0 = vpop.f32.mrf.mxu0 }
 0x240   : > { %v1323_v2 = vpop.f32.mrf.mxu1 }
 0x241   : > { %v5950_v3 = vadd.f32 %v2086_v4, %v1323_v2 }
 0x243   : > { %1358 = vmatmul.bf16.gmra.mxu1 %v5952_v10 }
 0x245   : > { %1612 = vmatmul.bf16.vlgmr.msra.gmra.mxu3 %v5876_v12 }
 0x246   : > { %1412 = vmatmul.bf16.gmra.mxu2 %v5954_v25  ;;  %v2100_v4 = vpop.f32.mrf.mxu0 }
 0x247   : > { %v4863_v4 = vld [vmem:[#allocation3 + $0x210] sm:$0xf] }
 0x248   : > { %v5963_v40 = vpop.f32.mrf.mxu1  ;;  %v5965_v45 = vpop.f32.mrf.mxu3 }
 0x249   : > { %v5961_v39 = vpop.f32.mrf.mxu2  ;;  %7437 = vst [vmem:[#allocation10_spill] sm:$0xff] %v5965_v45  ;;  %2135 = vmatmul.bf16.gmra.mxu0 %v5959_v37  ;;  %v4877_v45 = vld [vmem:[#allocation3 + $0x234] sm:$0xf0] }
 0x24a   : > { %7436 = vst [vmem:[#allocation9_spill] sm:$0xff] %v5961_v39 }
 0x24e   : > { %v5972_v48 = vpop.f32.mrf.mxu0 }
 0x250   : > { %v1328_v50 = vpop.f32.mrf.mxu1  ;;  %v5976_v24 = vpop.f32.mrf.mxu3 }
 0x251   : > { %v5968_v46 = vpop.f32.mrf.mxu2  ;;  %7439 = vst [vmem:[#allocation12_spill] sm:$0xff] %v5976_v24  ;;  %v5070_v50 = vld [vmem:[#allocation3 + $0x218] sm:$0xf0] }
 0x252   : > { %7438 = vst [vmem:[#allocation11_spill] sm:$0xff] %v5968_v46  ;;  %v4864_v28 = vor.u32 %v5070_v50, %v4863_v4  ;;  %v4883_v50 = vld [vmem:[#allocation3 + $0x230] sm:$0xf] }
 0x253   : > { %1363 = vmatmul.bf16.gmra.mxu1 %v5970_v47 }
 0x254   : > { %2939 = vmatpush.bf16.msrb.mxu3 %v4864_v28 }
 0x255   : > { %1617 = vmatmul.bf16.gmra.mxu3 %v5885_v30 }
 0x256   : > { %1417 = vmatmul.bf16.gmra.mxu2 %v5974_v23  ;;  %v5981_v34 = vpop.f32.mrf.mxu0 }
 0x258   : > { %v1329_v1 = vpop.f32.mrf.mxu1  ;;  %v1436_v49 = vpop.f32.mrf.mxu3 }
 0x259   : > { %v1382_v53 = vpop.f32.mrf.mxu2  ;;  %v5985_v6 = vadd.f32 %v2092_v44, %v1329_v1  ;;  %2139 = vmatmul.bf16.gmra.mxu0 %v5983_v19  ;;  %v6001_v44 = vld [vmem:[#allocation2 + $0x68] sm:$0xff]  ;;  %v4659_v49 = vld [vmem:[#allocation3 + $0xb0] sm:$0xf] }
 0x25a   : > { %v4660_v42 = vor.u32 %v4962_v38, %v4659_v49 }
 0x25c   : > { %2367 = vmatpush.bf16.msra.mxu2 %v4660_v42  ;;  %v6021_v42 = vld [vmem:[#allocation2 + $0x70] sm:$0xff] }
 0x25e   : > { %v2106_v61 = vpop.f32.mrf.mxu0 }
 0x260   : > { %v1332_v62 = vpop.f32.mrf.mxu1  ;;  %v5990_v2 = vpop.f32.mrf.mxu3 }
 0x261   : > { %v5988_v60 = vpop.f32.mrf.mxu2  ;;  %7441 = vst [vmem:[#allocation14_spill] sm:$0xff] %v5990_v2  ;;  %v5992_v11 = vadd.f32 %v2095_v15, %v1332_v62  ;;  %v6012_v62 = vld [vmem:[#allocation2 + $0x68] sm:$0xff] }
 0x262   : > { %7440 = vst [vmem:[#allocation13_spill] sm:$0xff] %v5988_v60 }
 0x263   : > { %1367 = vmatmul.bf16.gmra.mxu1 %v5994_v22 }
 0x265   : > { %1621 = vmatmul.bf16.gmra.mxu3 %v5894_v52 }
 0x266   : > { %1421 = vmatmul.bf16.gmra.mxu2 %v5996_v43  ;;  %v2109_v27 = vpop.f32.mrf.mxu0 }
 0x267   : > { %v6014_v27 = vld [vmem:[#allocation2 + $0xc8] sm:$0xff] }
 0x268   : > { %v1334_v15 = vpop.f32.mrf.mxu1  ;;  %v6005_v53 = vpop.f32.mrf.mxu3 }
 0x269   : > { %v6003_v26 = vpop.f32.mrf.mxu2  ;;  %7443 = vst [vmem:[#allocation16_spill] sm:$0xff] %v6005_v53  ;;  %v6007_v1 = vadd.f32 %v2097_v0, %v1334_v15  ;;  %2144 = vmatmul.bf16.gmra.mxu0 %v6001_v44  ;;  %v5074_v0 = vld [vmem:[#allocation3 + $0x238] sm:$0xf0] }
 0x26a   : > { %7442 = vst [vmem:[#allocation15_spill] sm:$0xff] %v6003_v26  ;;  %v4884_v15 = vor.u32 %v5074_v0, %v4883_v50 }
 0x26c   : > { %3228 = vmatpush.bf16.msra.mxu1 %v4884_v15 }
 0x26e   : > { %v2110_v2 = vpop.f32.mrf.mxu0 }
 0x270   : > { %v1337_v24 = vpop.f32.mrf.mxu1  ;;  %v6016_v4 = vpop.f32.mrf.mxu3 }
 0x271   : > { %v6010_v56 = vpop.f32.mrf.mxu2  ;;  %7445 = vst [vmem:[#allocation18_spill] sm:$0xff] %v6016_v4  ;;  %v5072_v4 = vld [vmem:[#allocation3 + $0x22c] sm:$0xf] }
 0x272   : > { %7444 = vst [vmem:[#allocation17_spill] sm:$0xff] %v6010_v56  ;;  %v4880_v50 = vor.u32 %v5072_v4, %v4877_v45 }
 0x273   : > { %1372 = vmatmul.bf16.gmra.mxu1 %v6012_v62 }
 0x274   : > { %3091 = vmatpush.bf16.msra.mxu0 %v4880_v50 }
 0x275   : > { %1626 = vmatmul.bf16.gmra.mxu3 %v5903_v57 }
 0x276   : > { %1426 = vmatmul.bf16.gmra.mxu2 %v6014_v27  ;;  %v2113_v49 = vpop.f32.mrf.mxu0 }
 0x278   : > { %v1338_v38 = vpop.f32.mrf.mxu1  ;;  %v1445_v24 = vpop.f32.mrf.mxu3 }
 0x279   : > { %v1391_v28 = vpop.f32.mrf.mxu2  ;;  %v6024_v53 = vadd.f32 %v5972_v48, %v1338_v38  ;;  %2148 = vmatmul.bf16.gmra.mxu0 %v6021_v42  ;;  %v6037_v48 = vld [vmem:[#allocation2 + $0x78] sm:$0xff] }
 0x27e   : > { %v2115_v15 = vpop.f32.mrf.mxu0 }
 0x280   : > { %v1341_v56 = vpop.f32.mrf.mxu1  ;;  %v6029_v26 = vpop.f32.mrf.mxu3 }
 0x281   : > { %v6027_v0 = vpop.f32.mrf.mxu2  ;;  %7447 = vst [vmem:[#allocation20_spill] sm:$0xff] %v6029_v26  ;;  %v6032_v28 = vadd.f32 %v5981_v34, %v1341_v56 }
 0x282   : > { %7446 = vst [vmem:[#allocation19_spill] sm:$0xff] %v6027_v0 }
 0x283   : > { %2238 = vmatmul.bf16.vlgmr.msrb.gmra.mxu1 %v5741_v41 }
 0x285   : > { %1630 = vmatmul.bf16.gmra.mxu3 %v5912_v58 }
 0x286   : > { %1475 = vmatmul.bf16.vlgmr.msrb.gmra.mxu2 %v5876_v12  ;;  %v2118_v45 = vpop.f32.mrf.mxu0 }
 0x288   : > { %v1343_v4 = vpop.f32.mrf.mxu1  ;;  %v6041_v24 = vpop.f32.mrf.mxu3 }
 0x289   : > { %v6039_v38 = vpop.f32.mrf.mxu2  ;;  %7449 = vst [vmem:[#allocation22_spill] sm:$0xff] %v6041_v24  ;;  %v6043_v50 = vadd.f32 %v2106_v61, %v1343_v4  ;;  %2153 = vmatmul.bf16.gmra.mxu0 %v6037_v48  ;;  %v6053_v24 = vld [vmem:[#allocation2 + $0x80] sm:$0xff] }
 0x28a   : > { %7448 = vst [vmem:[#allocation21_spill] sm:$0xff] %v6039_v38 }
 0x28e   : > { %v2119_v56 = vpop.f32.mrf.mxu0 }
 0x290   : > { %v1346_v41 = vpop.f32.mrf.mxu1  ;;  %v6048_v26 = vpop.f32.mrf.mxu3 }
 0x291   : > { %v6046_v34 = vpop.f32.mrf.mxu2  ;;  %7451 = vst [vmem:[#allocation24_spill] sm:$0xff] %v6048_v26 }
 0x292   : > { %7450 = vst [vmem:[#allocation23_spill] sm:$0xff] %v6046_v34 }
 0x293   : > { %2243 = vmatmul.bf16.gmra.mxu1 %v5763_v9 }
 0x295   : > { %1635 = vmatmul.bf16.gmra.mxu3 %v5921_v13 }
 0x296   : > { %1480 = vmatmul.bf16.gmra.mxu2 %v5885_v30  ;;  %v2122_v45 = vpop.f32.mrf.mxu0  ;;  %v6067_v30 = vld [vmem:[#allocation2 + $0x88] sm:$0xff] }
 0x298   : > { %v1347_v38 = vpop.f32.mrf.mxu1  ;;  %v1454_v61 = vpop.f32.mrf.mxu3 }
 0x299   : > { %v1400_v12 = vpop.f32.mrf.mxu2  ;;  %v6055_v4 = vadd.f32 %v2110_v2, %v1347_v38  ;;  %2157 = vmatmul.bf16.gmra.mxu0 %v6053_v24  ;;  %v4851_v2 = vld [vmem:[#allocation3 + $0x1f8] sm:$0xf]  ;;  %v5067_v38 = vld [vmem:[#allocation3 + $0x200] sm:$0xf0] }
 0x29b   : > { %7452 = vst [vmem:[#allocation25_spill] sm:$0xff] %v6055_v4 }
 0x29e   : > { %v2124_v41 = vpop.f32.mrf.mxu0 }
 0x2a0   : > { %v1350_v26 = vpop.f32.mrf.mxu1  ;;  %v6060_v0 = vpop.f32.mrf.mxu3 }
 0x2a1   : > { %v6058_v34 = vpop.f32.mrf.mxu2  ;;  %7454 = vst [vmem:[#allocation27_spill] sm:$0xff] %v6060_v0  ;;  %v6062_v9 = vadd.f32 %v2113_v49, %v1350_v26  ;;  %v4647_v26 = vld [vmem:[#allocation3 + $0x98] sm:$0xf] }
 0x2a2   : > { %7453 = vst [vmem:[#allocation26_spill] sm:$0xff] %v6058_v34  ;;  %v4852_v34 = vor.u32 %v5067_v38, %v4851_v2  ;;  %v5071_v2 = vld [vmem:[#allocation3 + $0x220] sm:$0xf0] }
 0x2a3   : > { %7455 = vst [vmem:[#allocation28_spill] sm:$0xff] %v6062_v9  ;;  %2246 = vmatmul.bf16.gmra.mxu1 %v5873_v8  ;;  %v4959_v8 = vld [vmem:[#allocation3 + $0xa0] sm:$0xf0] }
 0x2a4   : > { %2940 = vmatpush.bf16.msrb.mxu3 %v4852_v34 }
 0x2a5   : > { %1639 = vmatmul.bf16.gmra.mxu3 %v5932_v32 }
 0x2a6   : > { %1483 = vmatmul.bf16.gmra.mxu2 %v5894_v52  ;;  %v2127_v61 = vpop.f32.mrf.mxu0  ;;  %v4648_v52 = vor.u32 %v4959_v8, %v4647_v26  ;;  %v6083_v26 = vld [vmem:[#allocation2 + $0x90] sm:$0xff] }
 0x2a7   : > { %v4871_v61 = vld [vmem:[#allocation3 + $0x218] sm:$0xf] }
 0x2a8   : > { %v1352_v60 = vpop.f32.mrf.mxu1  ;;  %v6071_v46 = vpop.f32.mrf.mxu3  ;;  %2368 = vmatpush.bf16.msra.mxu2 %v4648_v52  ;;  %v4872_v38 = vor.u32 %v5071_v2, %v4871_v61 }
 0x2a9   : > { %v6069_v12 = vpop.f32.mrf.mxu2  ;;  %7457 = vst [vmem:[#allocation30_spill] sm:$0xff] %v6071_v46  ;;  %v6073_v0 = vadd.f32 %v2115_v15, %v1352_v60  ;;  %2162 = vmatmul.bf16.gmra.mxu0 %v6067_v30 }
 0x2aa   : > { %7456 = vst [vmem:[#allocation29_spill] sm:$0xff] %v6069_v12  ;;  %3229 = vmatpush.bf16.msra.mxu1 %v4872_v38 }
 0x2ab   : > { %7458 = vst [vmem:[#allocation31_spill] sm:$0xff] %v6073_v0 }
 0x2ae   : > { %v2128_v39 = vpop.f32.mrf.mxu0 }
 0x2b0   : > { %v1355_v9 = vpop.f32.mrf.mxu1  ;;  %v6078_v4 = vpop.f32.mrf.mxu3 }
 0x2b1   : > { %v6076_v49 = vpop.f32.mrf.mxu2  ;;  %7460 = vst [vmem:[#allocation33_spill] sm:$0xff] %v6078_v4  ;;  %v5069_v9 = vld [vmem:[#allocation3 + $0x214] sm:$0xf]  ;;  %v4865_v4 = vld [vmem:[#allocation3 + $0x21c] sm:$0xf0] }
 0x2b2   : > { %7459 = vst [vmem:[#allocation32_spill] sm:$0xff] %v6076_v49  ;;  %v4868_v61 = vor.u32 %v5069_v9, %v4865_v4 }
 0x2b3   : > { %2251 = vmatmul.bf16.gmra.mxu1 %v5882_v21 }
 0x2b4   : > { %3092 = vmatpush.bf16.msra.mxu0 %v4868_v61 }
 0x2b5   : > { %1644 = vmatmul.bf16.gmra.mxu3 %v5941_v54 }
 0x2b6   : > { %1488 = vmatmul.bf16.gmra.mxu2 %v5903_v57  ;;  %v2131_v15 = vpop.f32.mrf.mxu0 }
 0x2b8   : > { %v1356_v34 = vpop.f32.mrf.mxu1  ;;  %v1463_v8 = vpop.f32.mrf.mxu3 }
 0x2b9   : > { %v1409_v60 = vpop.f32.mrf.mxu2  ;;  %v6085_v52 = vadd.f32 %v2119_v56, %v1356_v34  ;;  %2166 = vmatmul.bf16.gmra.mxu0 %v6083_v26  ;;  %v6097_v56 = vld [vmem:[#allocation2 + $0x98] sm:$0xff] }
 0x2bb   : > { %7461 = vst [vmem:[#allocation34_spill] sm:$0xff] %v6085_v52 }
 0x2be   : > { %v2133_v57 = vpop.f32.mrf.mxu0 }
 0x2c0   : > { %v1359_v2 = vpop.f32.mrf.mxu1  ;;  %v6090_v38 = vpop.f32.mrf.mxu3 }
 0x2c1   : > { %v6088_v21 = vpop.f32.mrf.mxu2  ;;  %7463 = vst [vmem:[#allocation36_spill] sm:$0xff] %v6090_v38  ;;  %v6092_v60 = vadd.f32 %v2122_v45, %v1359_v2 }
 0x2c2   : > { %7462 = vst [vmem:[#allocation35_spill] sm:$0xff] %v6088_v21 }
 0x2c3   : > { %7464 = vst [vmem:[#allocation37_spill] sm:$0xff] %v6092_v60  ;;  %2254 = vmatmul.bf16.gmra.mxu1 %v5891_v36 }
 0x2c5   : > { %1648 = vmatmul.bf16.gmra.mxu3 %v5952_v10 }
 0x2c6   : > { %1491 = vmatmul.bf16.gmra.mxu2 %v5912_v58  ;;  %v2136_v4 = vpop.f32.mrf.mxu0 }
 0x2c8   : > { %v1361_v8 = vpop.f32.mrf.mxu1  ;;  %v6101_v9 = vpop.f32.mrf.mxu3 }
 0x2c9   : > { %v6099_v34 = vpop.f32.mrf.mxu2  ;;  %v6103_v61 = vadd.f32 %v2124_v41, %v1361_v8  ;;  %2171 = vmatmul.bf16.gmra.mxu0 %v6097_v56  ;;  %v6115_v41 = vld [vmem:[#allocation2 + $0xa0] sm:$0xff] }
 0x2ca   : > { %7465 = vst [vmem:[#allocation38_spill] sm:$0xff] %v6099_v34 }
 0x2cb   : > { %7466 = vst [vmem:[#allocation39_spill] sm:$0xff] %v6103_v61 }
 0x2ce   : > { %v2137_v2 = vpop.f32.mrf.mxu0 }
 0x2d0   : > { %v1364_v36 = vpop.f32.mrf.mxu1  ;;  %v6108_v38 = vpop.f32.mrf.mxu3 }
 0x2d1   : > { %v6106_v45 = vpop.f32.mrf.mxu2 }
 0x2d2   : > { %7467 = vst [vmem:[#allocation40_spill] sm:$0xff] %v6106_v45 }
 0x2d3   : > { %2259 = vmatmul.bf16.gmra.mxu1 %v5900_v63 }
 0x2d5   : > { %1653 = vmatmul.bf16.gmra.mxu3 %v5970_v47 }
 0x2d6   : > { %1496 = vmatmul.bf16.gmra.mxu2 %v5921_v13  ;;  %v6113_v4 = vpop.f32.mrf.mxu0 }
 0x2d7   : > { %7468 = vst [vmem:[#allocation41_spill] sm:$0xff] %v6113_v4 }
 0x2d8   : > { %v1365_v46 = vpop.f32.mrf.mxu1  ;;  %v6117_v8 = vpop.f32.mrf.mxu3 }
 0x2d9   : > { %v1418_v58 = vpop.f32.mrf.mxu2  ;;  %v6119_v34 = vadd.f32 %v2128_v39, %v1365_v46  ;;  %2175 = vmatmul.bf16.gmra.mxu0 %v6115_v41  ;;  %v4839_v39 = vld [vmem:[#allocation3 + $0x1e0] sm:$0xf]  ;;  %v5064_v46 = vld [vmem:[#allocation3 + $0x1e8] sm:$0xf0] }
 0x2da   : > { %v6131_v58 = vld [vmem:[#allocation2 + $0xa8] sm:$0xff] }
 0x2db   : > { %7469 = vst [vmem:[#allocation42_spill] sm:$0xff] %v6119_v34 }
 0x2de   : > { %v6124_v45 = vpop.f32.mrf.mxu0 }
 0x2df   : > { %7471 = vst [vmem:[#allocation44_spill] sm:$0xff] %v6124_v45 }
 0x2e0   : > { %v1368_v63 = vpop.f32.mrf.mxu1  ;;  %v1620_v13 = vpop.f32.mrf.mxu3 }
 0x2e1   : > { %v6122_v36 = vpop.f32.mrf.mxu2  ;;  %v6126_v21 = vadd.f32 %v2131_v15, %v1368_v63  ;;  %v4635_v15 = vld [vmem:[#allocation3 + $0x80] sm:$0xf] }
 0x2e2   : > { %7470 = vst [vmem:[#allocation43_spill] sm:$0xff] %v6122_v36  ;;  %v4840_v36 = vor.u32 %v5064_v46, %v4839_v39  ;;  %v5068_v39 = vld [vmem:[#allocation3 + $0x208] sm:$0xf0] }
 0x2e3   : > { %7472 = vst [vmem:[#allocation45_spill] sm:$0xff] %v6126_v21  ;;  %2262 = vmatmul.bf16.gmra.mxu1 %v5909_v7  ;;  %v4956_v7 = vld [vmem:[#allocation3 + $0x88] sm:$0xf0] }
 0x2e4   : > { %2941 = vmatpush.bf16.msrb.mxu3 %v4840_v36 }
 0x2e5   : > { %1657 = vmatmul.bf16.gmra.mxu3 %v5994_v22 }
 0x2e6   : > { %1499 = vmatmul.bf16.gmra.mxu2 %v5932_v32  ;;  %v2145_v12 = vpop.f32.mrf.mxu0  ;;  %v4636_v32 = vor.u32 %v4956_v7, %v4635_v15  ;;  %v6151_v15 = vld [vmem:[#allocation2 + $0xb0] sm:$0xff] }
 0x2e7   : > { %v4859_v12 = vld [vmem:[#allocation3 + $0x200] sm:$0xf] }
 0x2e8   : > { %v1370_v4 = vpop.f32.mrf.mxu1  ;;  %v6135_v45 = vpop.f32.mrf.mxu3  ;;  %2369 = vmatpush.bf16.msra.mxu2 %v4636_v32  ;;  %v4860_v46 = vor.u32 %v5068_v39, %v4859_v12  ;;  %v5066_v32 = vld [vmem:[#allocation3 + $0x1fc] sm:$0xf] }
 0x2e9   : > { %v6133_v49 = vpop.f32.mrf.mxu2  ;;  %v6137_v13 = vadd.f32 %v2133_v57, %v1370_v4  ;;  %2180 = vmatmul.bf16.gmra.mxu0 %v6131_v58 }
 0x2ea   : > { %7473 = vst [vmem:[#allocation46_spill] sm:$0xff] %v6133_v49  ;;  %3230 = vmatpush.bf16.msra.mxu1 %v4860_v46 }
 0x2eb   : > { %7474 = vst [vmem:[#allocation47_spill] sm:$0xff] %v6137_v13 }
 0x2ee   : > { %v6142_v21 = vpop.f32.mrf.mxu0 }
 0x2ef   : > { %7476 = vst [vmem:[#allocation49_spill] sm:$0xff] %v6142_v21 }
 0x2f0   : > { %v1373_v34 = vpop.f32.mrf.mxu1  ;;  %v6144_v49 = vpop.f32.mrf.mxu3 }
 0x2f1   : > { %v6140_v63 = vpop.f32.mrf.mxu2  ;;  %7477 = vst [vmem:[#allocation50_spill] sm:$0xff] %v6144_v49  ;;  %v4799_v49 = vld [vmem:[#allocation3 + $0x188] sm:$0xf] }
 0x2f2   : > { %7475 = vst [vmem:[#allocation48_spill] sm:$0xff] %v6140_v63  ;;  %v4853_v63 = vld [vmem:[#allocation3 + $0x204] sm:$0xf0] }
 0x2f3   : > { %2267 = vmatmul.bf16.gmra.mxu1 %v5918_v18  ;;  %v4856_v18 = vor.u32 %v5066_v32, %v4853_v63 }
 0x2f5   : > { %1662 = vmatmul.bf16.gmra.mxu3 %v6012_v62  ;;  %3093 = vmatpush.bf16.msra.mxu0 %v4856_v18 }
 0x2f6   : > { %1504 = vmatmul.bf16.gmra.mxu2 %v5941_v54  ;;  %v6149_v4 = vpop.f32.mrf.mxu0 }
 0x2f7   : > { %7478 = vst [vmem:[#allocation51_spill] sm:$0xff] %v6149_v4 }
 0x2f8   : > { %v1374_v36 = vpop.f32.mrf.mxu1  ;;  %v6153_v7 = vpop.f32.mrf.mxu3 }
 0x2f9   : > { %v1427_v57 = vpop.f32.mrf.mxu2  ;;  %7479 = vst [vmem:[#allocation52_spill] sm:$0xff] %v6153_v7  ;;  %v6155_v34 = vadd.f32 %v2137_v2, %v1374_v36  ;;  %2184 = vmatmul.bf16.gmra.mxu0 %v6151_v15  ;;  %v6165_v2 = vld [vmem:[#allocation2 + $0xb8] sm:$0xff] }
 0x2fb   : > { %7480 = vst [vmem:[#allocation53_spill] sm:$0xff] %v6155_v34 }
 0x2fe   : > { %v6160_v12 = vpop.f32.mrf.mxu0 }
 0x2ff   : > { %7482 = vst [vmem:[#allocation55_spill] sm:$0xff] %v6160_v12  ;;  %v6183_v12 = vld [vmem:[#allocation2 + $0xc0] sm:$0xff] }
 0x300   : > { %v2239_v39 = vpop.f32.mrf.mxu1  ;;  %v1629_v46 = vpop.f32.mrf.mxu3 }
 0x301   : > { %v6158_v54 = vpop.f32.mrf.mxu2 }
 0x302   : > { %7481 = vst [vmem:[#allocation54_spill] sm:$0xff] %v6158_v54 }
 0x303   : > { %2270 = vmatmul.bf16.gmra.mxu1 %v5929_v29 }
 0x305   : > { %1666 = vmatmul.bf16.gmra.mxu3 %v5878_v17 }
 0x306   : > { %1507 = vmatmul.bf16.gmra.mxu2 %v5952_v10  ;;  %v2154_v36 = vpop.f32.mrf.mxu0 }
 0x308   : > { %v2241_v63 = vpop.f32.mrf.mxu1  ;;  %v6169_v32 = vpop.f32.mrf.mxu3 }
 0x309   : > { %v1476_v57 = vpop.f32.mrf.mxu2  ;;  %7483 = vst [vmem:[#allocation56_spill] sm:$0xff] %v6169_v32  ;;  %2189 = vmatmul.bf16.gmra.mxu0 %v6165_v2 }
 0x30a   : > { %v6167_v4 = vadd.f32 %v2239_v39, %v1476_v57 }
 0x30e   : > { %v6172_v54 = vpop.f32.mrf.mxu0 }
 0x30f   : > { %7484 = vst [vmem:[#allocation57_spill] sm:$0xff] %v6172_v54 }
 0x310   : > { %v2244_v29 = vpop.f32.mrf.mxu1  ;;  %v6176_v10 = vpop.f32.mrf.mxu3 }
 0x311   : > { %v1478_v18 = vpop.f32.mrf.mxu2  ;;  %7485 = vst [vmem:[#allocation58_spill] sm:$0xff] %v6176_v10 }
 0x312   : > { %v6174_v46 = vadd.f32 %v2241_v63, %v1478_v18 }
 0x313   : > { %2275 = vmatmul.bf16.gmra.mxu1 %v5938_v35  ;;  %v6193_v35 = vld [vmem:[#allocation2 + $0xc8] sm:$0xff] }
 0x315   : > { %1671 = vmatmul.bf16.gmra.mxu3 %v5887_v31 }
 0x316   : > { %1512 = vmatmul.bf16.gmra.mxu2 %v5970_v47  ;;  %v6181_v57 = vpop.f32.mrf.mxu0  ;;  %v4827_v47 = vld [vmem:[#allocation3 + $0x1c8] sm:$0xf] }
 0x317   : > { %7486 = vst [vmem:[#allocation59_spill] sm:$0xff] %v6181_v57 }
 0x318   : > { %v2245_v36 = vpop.f32.mrf.mxu1  ;;  %v6185_v21 = vpop.f32.mrf.mxu3 }
 0x319   : > { %v1481_v39 = vpop.f32.mrf.mxu2  ;;  %7487 = vst [vmem:[#allocation60_spill] sm:$0xff] %v6185_v21  ;;  %2193 = vmatmul.bf16.gmra.mxu0 %v6183_v12 }
 0x31a   : > { %v5061_v39 = vld [vmem:[#allocation3 + $0x1d0] sm:$0xf0] }
 0x31b   : > { %v4828_v34 = vor.u32 %v5061_v39, %v4827_v47  ;;  %v5065_v47 = vld [vmem:[#allocation3 + $0x1f0] sm:$0xf0] }
 0x31d   : > { %2942 = vmatpush.bf16.msrb.mxu3 %v4828_v34 }
 0x31e   : > { %v6188_v18 = vpop.f32.mrf.mxu0 }
 0x31f   : > { %7488 = vst [vmem:[#allocation61_spill] sm:$0xff] %v6188_v18  ;;  %v4953_v18 = vld [vmem:[#allocation3 + $0x70] sm:$0xf0] }
 0x320   : > { %v2247_v29 = vpop.f32.mrf.mxu1  ;;  %v1638_v54 = vpop.f32.mrf.mxu3 }
 0x321   : > { %v1482_v63 = vpop.f32.mrf.mxu2  ;;  %v4623_v54 = vld [vmem:[#allocation3 + $0x68] sm:$0xf] }
 0x323   : > { %2278 = vmatmul.bf16.gmra.mxu1 %v5947_v51  ;;  %v4624_v51 = vor.u32 %v4953_v18, %v4623_v54  ;;  %v6211_v54 = vld [vmem:[#allocation2 + $0xd0] sm:$0xff] }
 0x325   : > { %1675 = vmatmul.bf16.gmra.mxu3 %v5896_v5  ;;  %2370 = vmatpush.bf16.msra.mxu2 %v4624_v51  ;;  %v4841_v51 = vld [vmem:[#allocation3 + $0x1ec] sm:$0xf0] }
 0x326   : > { %1515 = vmatmul.bf16.gmra.mxu2 %v5994_v22  ;;  %v2163_v57 = vpop.f32.mrf.mxu0 }
 0x328   : > { %v2249_v63 = vpop.f32.mrf.mxu1  ;;  %v6197_v21 = vpop.f32.mrf.mxu3 }
 0x329   : > { %v1484_v36 = vpop.f32.mrf.mxu2  ;;  %7489 = vst [vmem:[#allocation62_spill] sm:$0xff] %v6197_v21  ;;  %2198 = vmatmul.bf16.gmra.mxu0 %v6193_v35 }
 0x32a   : > { %v6195_v13 = vadd.f32 %v2247_v29, %v1484_v36  ;;  %v4847_v29 = vld [vmem:[#allocation3 + $0x1e8] sm:$0xf] }
 0x32b   : > { %v4848_v39 = vor.u32 %v5065_v47, %v4847_v29 }
 0x32d   : > { %3231 = vmatpush.bf16.msra.mxu1 %v4848_v39  ;;  %v6221_v39 = vld [vmem:[#allocation2 + $0xd8] sm:$0xff] }
 0x32e   : > { %v6200_v61 = vpop.f32.mrf.mxu0 }
 0x32f   : > { %7490 = vst [vmem:[#allocation63_spill] sm:$0xff] %v6200_v61 }
 0x330   : > { %v2252_v60 = vpop.f32.mrf.mxu1  ;;  %v6204_v57 = vpop.f32.mrf.mxu3 }
 0x331   : > { %v1486_v22 = vpop.f32.mrf.mxu2  ;;  %7491 = vst [vmem:[#allocation64_spill] sm:$0xff] %v6204_v57  ;;  %v5063_v60 = vld [vmem:[#allocation3 + $0x1e4] sm:$0xf] }
 0x332   : > { %v6202_v10 = vadd.f32 %v2249_v63, %v1486_v22  ;;  %v4844_v22 = vor.u32 %v5063_v60, %v4841_v51 }
 0x333   : > { %2283 = vmatmul.bf16.gmra.mxu1 %v5959_v37 }
 0x334   : > { %3094 = vmatpush.bf16.msra.mxu0 %v4844_v22 }
 0x335   : > { %1680 = vmatmul.bf16.gmra.mxu3 %v5905_v59 }
 0x336   : > { %1520 = vmatmul.bf16.gmra.mxu2 %v6012_v62  ;;  %v6209_v18 = vpop.f32.mrf.mxu0 }
 0x337   : > { %7492 = vst [vmem:[#allocation65_spill] sm:$0xff] %v6209_v18 }
 0x338   : > { %v2253_v36 = vpop.f32.mrf.mxu1  ;;  %v6213_v63 = vpop.f32.mrf.mxu3 }
 0x339   : > { %v1489_v34 = vpop.f32.mrf.mxu2  ;;  %7493 = vst [vmem:[#allocation66_spill] sm:$0xff] %v6213_v63  ;;  %2202 = vmatmul.bf16.gmra.mxu0 %v6211_v54 }
 0x33e   : > { %v6216_v29 = vpop.f32.mrf.mxu0 }
 0x33f   : > { %7494 = vst [vmem:[#allocation67_spill] sm:$0xff] %v6216_v29 }
 0x340   : > { %v2255_v62 = vpop.f32.mrf.mxu1  ;;  %v1647_v47 = vpop.f32.mrf.mxu3 }
 0x341   : > { %v1490_v37 = vpop.f32.mrf.mxu2 }
 0x343   : > { %2286 = vmatmul.bf16.gmra.mxu1 %v5983_v19 }
 0x345   : > { %1684 = vmatmul.bf16.gmra.mxu3 %v5914_v14 }
 0x346   : > { %1523 = vmatmul.bf16.gmra.mxu2 %v5878_v17  ;;  %v2172_v36 = vpop.f32.mrf.mxu0 }
 0x347   : > { %v6239_v36 = vld [vmem:[#allocation2 + $0xe0] sm:$0xff] }
 0x348   : > { %v2257_v61 = vpop.f32.mrf.mxu1  ;;  %v6225_v60 = vpop.f32.mrf.mxu3 }
 0x349   : > { %v1492_v34 = vpop.f32.mrf.mxu2  ;;  %7495 = vst [vmem:[#allocation68_spill] sm:$0xff] %v6225_v60  ;;  %2207 = vmatmul.bf16.gmra.mxu0 %v6221_v39 }
 0x34a   : > { %v6223_v18 = vadd.f32 %v2255_v62, %v1492_v34 }
 0x34e   : > { %v6228_v22 = vpop.f32.mrf.mxu0 }
 0x34f   : > { %7496 = vst [vmem:[#allocation69_spill] sm:$0xff] %v6228_v22 }
 0x350   : > { %v2260_v19 = vpop.f32.mrf.mxu1  ;;  %v6232_v17 = vpop.f32.mrf.mxu3 }
 0x351   : > { %v1494_v51 = vpop.f32.mrf.mxu2  ;;  %7497 = vst [vmem:[#allocation70_spill] sm:$0xff] %v6232_v17 }
 0x352   : > { %v6230_v37 = vadd.f32 %v2257_v61, %v1494_v51 }
 0x353   : > { %2291 = vmatmul.bf16.gmra.mxu1 %v6001_v44  ;;  %v4815_v44 = vld [vmem:[#allocation3 + $0x1b0] sm:$0xf] }
 0x355   : > { %1689 = vmatmul.bf16.gmra.mxu3 %v5925_v20 }
 0x356   : > { %1528 = vmatmul.bf16.gmra.mxu2 %v5887_v31  ;;  %v6237_v47 = vpop.f32.mrf.mxu0  ;;  %v6249_v31 = vld [vmem:[#allocation2 + $0xe8] sm:$0xff] }
 0x357   : > { %7498 = vst [vmem:[#allocation71_spill] sm:$0xff] %v6237_v47 }
 0x358   : > { %v2261_v34 = vpop.f32.mrf.mxu1  ;;  %v6241_v29 = vpop.f32.mrf.mxu3 }
 0x359   : > { %v1497_v62 = vpop.f32.mrf.mxu2  ;;  %7499 = vst [vmem:[#allocation72_spill] sm:$0xff] %v6241_v29  ;;  %2211 = vmatmul.bf16.gmra.mxu0 %v6239_v36 }
 0x35a   : > { %v5058_v62 = vld [vmem:[#allocation3 + $0x1b8] sm:$0xf0] }
 0x35b   : > { %v4816_v29 = vor.u32 %v5058_v62, %v4815_v44  ;;  %v5062_v44 = vld [vmem:[#allocation3 + $0x1d8] sm:$0xf0] }
 0x35d   : > { %2943 = vmatpush.bf16.msrb.mxu3 %v4816_v29  ;;  %v5060_v29 = vld [vmem:[#allocation3 + $0x1cc] sm:$0xf] }
 0x35e   : > { %v6244_v51 = vpop.f32.mrf.mxu0 }
 0x35f   : > { %7500 = vst [vmem:[#allocation73_spill] sm:$0xff] %v6244_v51  ;;  %v4950_v51 = vld [vmem:[#allocation3 + $0x58] sm:$0xf0] }
 0x360   : > { %v2263_v19 = vpop.f32.mrf.mxu1  ;;  %v1656_v22 = vpop.f32.mrf.mxu3 }
 0x361   : > { %v1498_v61 = vpop.f32.mrf.mxu2  ;;  %v4611_v22 = vld [vmem:[#allocation3 + $0x50] sm:$0xf] }
 0x363   : > { %2294 = vmatmul.bf16.gmra.mxu1 %v6021_v42 }
 0x365   : > { %1693 = vmatmul.bf16.gmra.mxu3 %v5934_v33 }
 0x366   : > { %1531 = vmatmul.bf16.gmra.mxu2 %v5896_v5  ;;  %v2181_v47 = vpop.f32.mrf.mxu0  ;;  %v4612_v5 = vor.u32 %v4950_v51, %v4611_v22  ;;  %v4829_v51 = vld [vmem:[#allocation3 + $0x1d4] sm:$0xf0] }
 0x368   : > { %v2265_v61 = vpop.f32.mrf.mxu1  ;;  %v6253_v60 = vpop.f32.mrf.mxu3  ;;  %2371 = vmatpush.bf16.msra.mxu2 %v4612_v5 }
 0x369   : > { %v1500_v34 = vpop.f32.mrf.mxu2  ;;  %7501 = vst [vmem:[#allocation74_spill] sm:$0xff] %v6253_v60  ;;  %2216 = vmatmul.bf16.gmra.mxu0 %v6249_v31 }
 0x36a   : > { %v6251_v17 = vadd.f32 %v2263_v19, %v1500_v34  ;;  %v4835_v19 = vld [vmem:[#allocation3 + $0x1d0] sm:$0xf] }
 0x36b   : > { %v4836_v62 = vor.u32 %v5062_v44, %v4835_v19  ;;  %v5057_v19 = vld [vmem:[#allocation3 + $0x1b4] sm:$0xf]  ;;  %v4817_v44 = vld [vmem:[#allocation3 + $0x1bc] sm:$0xf0] }
 0x36d   : > { %3232 = vmatpush.bf16.msra.mxu1 %v4836_v62  ;;  %v4805_v62 = vld [vmem:[#allocation3 + $0x1a4] sm:$0xf0] }
 0x36e   : > { %v6256_v63 = vpop.f32.mrf.mxu0 }
 0x36f   : > { %7502 = vst [vmem:[#allocation75_spill] sm:$0xff] %v6256_v63 }
 0x370   : > { %v2268_v21 = vpop.f32.mrf.mxu1  ;;  %v6260_v47 = vpop.f32.mrf.mxu3 }
 0x371   : > { %v1502_v42 = vpop.f32.mrf.mxu2  ;;  %7503 = vst [vmem:[#allocation76_spill] sm:$0xff] %v6260_v47  ;;  %v6267_v21 = vld [vmem:[#allocation2 + $0xf0] sm:$0xff] }
 0x372   : > { %v6258_v57 = vadd.f32 %v2265_v61, %v1502_v42  ;;  %v4832_v61 = vor.u32 %v5060_v29, %v4829_v51  ;;  %v5051_v51 = vld [vmem:[#allocation3 + $0x184] sm:$0xf] }
 0x373   : > { %2299 = vmatmul.bf16.gmra.mxu1 %v6037_v48  ;;  %v5054_v48 = vld [vmem:[#allocation3 + $0x19c] sm:$0xf] }
 0x374   : > { %3095 = vmatpush.bf16.msra.mxu0 %v4832_v61  ;;  %v4808_v63 = vor.u32 %v5054_v48, %v4805_v62  ;;  %v6277_v61 = vld [vmem:[#allocation2 + $0xf8] sm:$0xff] }
 0x375   : > { %1698 = vmatmul.bf16.gmra.mxu3 %v5943_v55 }
 0x376   : > { %1536 = vmatmul.bf16.gmra.mxu2 %v5905_v59  ;;  %v6265_v22 = vpop.f32.mrf.mxu0  ;;  %v4820_v59 = vor.u32 %v5057_v19, %v4817_v44 }
 0x377   : > { %7504 = vst [vmem:[#allocation77_spill] sm:$0xff] %v6265_v22 }
 0x378   : > { %v2269_v5 = vpop.f32.mrf.mxu1  ;;  %v6269_v42 = vpop.f32.mrf.mxu3  ;;  %3096 = vmatpush.bf16.msra.mxu0 %v4820_v59 }
 0x379   : > { %v1505_v34 = vpop.f32.mrf.mxu2  ;;  %7505 = vst [vmem:[#allocation78_spill] sm:$0xff] %v6269_v42  ;;  %2220 = vmatmul.bf16.gmra.mxu0 %v6267_v21  ;;  %v4793_v5 = vld [vmem:[#allocation3 + $0x18c] sm:$0xf0] }
 0x37a   : > { %v4796_v60 = vor.u32 %v5051_v51, %v4793_v5  ;;  %v6295_v5 = vld [vmem:[#allocation2 + $0x20] sm:$0xff] }
 0x37c   : > { %3097 = vmatpush.bf16.msra.mxu0 %v4808_v63 }
 0x37e   : > { %v6272_v34 = vpop.f32.mrf.mxu0 }
 0x37f   : > { %7506 = vst [vmem:[#allocation79_spill] sm:$0xff] %v6272_v34 }
 0x380   : > { %v2271_v22 = vpop.f32.mrf.mxu1  ;;  %v1665_v29 = vpop.f32.mrf.mxu3  ;;  %3098 = vmatpush.bf16.msra.mxu0 %v4796_v60 }
 0x381   : > { %v1506_v47 = vpop.f32.mrf.mxu2 }
 0x383   : > { %2302 = vmatmul.bf16.gmra.mxu1 %v6053_v24 }
 0x385   : > { %1702 = vmatmul.bf16.gmra.mxu3 %v5954_v25 }
 0x386   : > { %1539 = vmatmul.bf16.gmra.mxu2 %v5914_v14  ;;  %v2190_v44 = vpop.f32.mrf.mxu0 }
 0x388   : > { %v2273_v59 = vpop.f32.mrf.mxu1  ;;  %v6281_v48 = vpop.f32.mrf.mxu3 }
 0x389   : > { %v1508_v19 = vpop.f32.mrf.mxu2  ;;  %7507 = vst [vmem:[#allocation80_spill] sm:$0xff] %v6281_v48  ;;  %2225 = vmatmul.bf16.gmra.mxu0 %v6277_v61 }
 0x38a   : > { %v6279_v47 = vadd.f32 %v2271_v22, %v1508_v19 }
 0x38e   : > { %v6284_v62 = vpop.f32.mrf.mxu0 }
 0x38f   : > { %7508 = vst [vmem:[#allocation81_spill] sm:$0xff] %v6284_v62 }
 0x390   : > { %v2276_v14 = vpop.f32.mrf.mxu1  ;;  %v6288_v60 = vpop.f32.mrf.mxu3 }
 0x391   : > { %v1510_v63 = vpop.f32.mrf.mxu2  ;;  %7509 = vst [vmem:[#allocation82_spill] sm:$0xff] %v6288_v60 }
 0x392   : > { %v6286_v24 = vadd.f32 %v2273_v59, %v1510_v63 }
 0x393   : > { %2307 = vmatmul.bf16.gmra.mxu1 %v6067_v30  ;;  %v4803_v30 = vld [vmem:[#allocation3 + $0x198] sm:$0xf] }
 0x395   : > { %1707 = vmatmul.bf16.gmra.mxu3 %v5974_v23 }
 0x396   : > { %1544 = vmatmul.bf16.gmra.mxu2 %v5925_v20  ;;  %v6293_v29 = vpop.f32.mrf.mxu0  ;;  %v6305_v20 = vld [vmem:[#allocation2 + $0x28] sm:$0xff] }
 0x397   : > { %7510 = vst [vmem:[#allocation83_spill] sm:$0xff] %v6293_v29 }
 0x398   : > { %v2277_v51 = vpop.f32.mrf.mxu1  ;;  %v6297_v19 = vpop.f32.mrf.mxu3 }
 0x399   : > { %v1513_v22 = vpop.f32.mrf.mxu2  ;;  %7511 = vst [vmem:[#allocation84_spill] sm:$0xff] %v6297_v19  ;;  %3099 = vmatmul.bf16.vlgmr.msra.gmra.mxu0 %v6295_v5 }
 0x39a   : > { %v5055_v22 = vld [vmem:[#allocation3 + $0x1a0] sm:$0xf0] }
 0x39b   : > { %v4804_v62 = vor.u32 %v5055_v22, %v4803_v30  ;;  %v5059_v30 = vld [vmem:[#allocation3 + $0x1c0] sm:$0xf0] }
 0x39d   : > { %2944 = vmatpush.bf16.msrb.mxu3 %v4804_v62 }
 0x39e   : > { %v6300_v59 = vpop.f32.mrf.mxu0 }
 0x39f   : > { %7512 = vst [vmem:[#allocation85_spill] sm:$0xff] %v6300_v59  ;;  %v4947_v59 = vld [vmem:[#allocation3 + $0x40] sm:$0xf0] }
 0x3a0   : > { %v2279_v63 = vpop.f32.mrf.mxu1  ;;  %v1674_v14 = vpop.f32.mrf.mxu3 }
 0x3a1   : > { %v1514_v44 = vpop.f32.mrf.mxu2  ;;  %v4599_v14 = vld [vmem:[#allocation3 + $0x38] sm:$0xf] }
 0x3a3   : > { %2310 = vmatmul.bf16.gmra.mxu1 %v6083_v26 }
 0x3a5   : > { %1711 = vmatmul.bf16.gmra.mxu3 %v5996_v43 }
 0x3a6   : > { %1547 = vmatmul.bf16.gmra.mxu2 %v5934_v33  ;;  %v2199_v29 = vpop.f32.mrf.mxu0  ;;  %v4600_v33 = vor.u32 %v4947_v59, %v4599_v14  ;;  %v6323_v14 = vld [vmem:[#allocation2 + $0x30] sm:$0xff] }
 0x3a8   : > { %v2281_v44 = vpop.f32.mrf.mxu1  ;;  %v6309_v19 = vpop.f32.mrf.mxu3  ;;  %2372 = vmatpush.bf16.msra.mxu2 %v4600_v33 }
 0x3a9   : > { %v1516_v51 = vpop.f32.mrf.mxu2  ;;  %7513 = vst [vmem:[#allocation86_spill] sm:$0xff] %v6309_v19  ;;  %3104 = vmatmul.bf16.gmra.mxu0 %v6305_v20 }
 0x3aa   : > { %v6307_v34 = vadd.f32 %v2279_v63, %v1516_v51  ;;  %v4823_v63 = vld [vmem:[#allocation3 + $0x1b8] sm:$0xf] }
 0x3ab   : > { %v4824_v22 = vor.u32 %v5059_v30, %v4823_v63  ;;  %v6335_v63 = vld [vmem:[#allocation2 + $0x38] sm:$0xff] }
 0x3ad   : > { %3233 = vmatpush.bf16.msra.mxu1 %v4824_v22 }
 0x3ae   : > { %v6312_v60 = vpop.f32.mrf.mxu0 }
 0x3af   : > { %7514 = vst [vmem:[#allocation87_spill] sm:$0xff] %v6312_v60 }
 0x3b0   : > { %v2284_v42 = vpop.f32.mrf.mxu1  ;;  %v6316_v29 = vpop.f32.mrf.mxu3 }
 0x3b1   : > { %v1518_v26 = vpop.f32.mrf.mxu2  ;;  %7515 = vst [vmem:[#allocation88_spill] sm:$0xff] %v6316_v29 }
 0x3b2   : > { %v6314_v48 = vadd.f32 %v2281_v44, %v1518_v26 }
 0x3b3   : > { %2315 = vmatmul.bf16.gmra.mxu1 %v6097_v56 }
 0x3b5   : > { %1716 = vmatmul.bf16.gmra.mxu3 %v6014_v27 }
 0x3b6   : > { %1552 = vmatmul.bf16.gmra.mxu2 %v5943_v55  ;;  %v6321_v59 = vpop.f32.mrf.mxu0  ;;  %v6332_v55 = vld [vmem:[#allocation2 + $0xd0] sm:$0xff] }
 0x3b7   : > { %7516 = vst [vmem:[#allocation89_spill] sm:$0xff] %v6321_v59 }
 0x3b8   : > { %v2285_v51 = vpop.f32.mrf.mxu1  ;;  %v6325_v44 = vpop.f32.mrf.mxu3 }
 0x3b9   : > { %v1521_v62 = vpop.f32.mrf.mxu2  ;;  %7517 = vst [vmem:[#allocation90_spill] sm:$0xff] %v6325_v44  ;;  %3107 = vmatmul.bf16.gmra.mxu0 %v6323_v14 }
 0x3be   : > { %v6328_v33 = vpop.f32.mrf.mxu0 }
 0x3bf   : > { %7518 = vst [vmem:[#allocation91_spill] sm:$0xff] %v6328_v33 }
 0x3c0   : > { %v2287_v26 = vpop.f32.mrf.mxu1  ;;  %v1683_v56 = vpop.f32.mrf.mxu3 }
 0x3c1   : > { %v1522_v42 = vpop.f32.mrf.mxu2 }
 0x3c3   : > { %2318 = vmatmul.bf16.gmra.mxu1 %v6115_v41 }
 0x3c5   : > { %1720 = vmatmul.bf16.gmra.mxu3 %v6332_v55 }
 0x3c6   : > { %1555 = vmatmul.bf16.gmra.mxu2 %v5954_v25  ;;  %v2208_v22 = vpop.f32.mrf.mxu0 }
 0x3c7   : > { %v6350_v22 = vld [vmem:[#allocation2 + $0xd8] sm:$0xff] }
 0x3c8   : > { %v2289_v51 = vpop.f32.mrf.mxu1  ;;  %v6339_v42 = vpop.f32.mrf.mxu3 }
 0x3c9   : > { %v1524_v30 = vpop.f32.mrf.mxu2  ;;  %7519 = vst [vmem:[#allocation92_spill] sm:$0xff] %v6339_v42  ;;  %3112 = vmatmul.bf16.gmra.mxu0 %v6335_v63  ;;  %v6355_v42 = vld [vmem:[#allocation2 + $0x40] sm:$0xff] }
 0x3ca   : > { %v6337_v62 = vadd.f32 %v2287_v26, %v1524_v30 }
 0x3ce   : > { %v6342_v33 = vpop.f32.mrf.mxu0 }
 0x3cf   : > { %7520 = vst [vmem:[#allocation93_spill] sm:$0xff] %v6342_v33 }
 0x3d0   : > { %v2292_v25 = vpop.f32.mrf.mxu1  ;;  %v6346_v59 = vpop.f32.mrf.mxu3 }
 0x3d1   : > { %v1526_v56 = vpop.f32.mrf.mxu2  ;;  %7521 = vst [vmem:[#allocation94_spill] sm:$0xff] %v6346_v59 }
 0x3d2   : > { %v6344_v41 = vadd.f32 %v2289_v51, %v1526_v56 }
 0x3d3   : > { %2323 = vmatmul.bf16.gmra.mxu1 %v6131_v58 }
 0x3d5   : > { %1725 = vmatmul.bf16.gmra.mxu3 %v6350_v22 }
 0x3d6   : > { %1560 = vmatmul.bf16.gmra.mxu2 %v5974_v23  ;;  %v6353_v30 = vpop.f32.mrf.mxu0  ;;  %v6364_v23 = vld [vmem:[#allocation2 + $0xe0] sm:$0xff] }
 0x3d7   : > { %7522 = vst [vmem:[#allocation95_spill] sm:$0xff] %v6353_v30  ;;  %v5052_v30 = vld [vmem:[#allocation3 + $0x188] sm:$0xf0] }
 0x3d8   : > { %v2293_v60 = vpop.f32.mrf.mxu1  ;;  %v6357_v33 = vpop.f32.mrf.mxu3 }
 0x3d9   : > { %v1529_v26 = vpop.f32.mrf.mxu2  ;;  %7523 = vst [vmem:[#allocation96_spill] sm:$0xff] %v6357_v33  ;;  %3115 = vmatmul.bf16.gmra.mxu0 %v6355_v42  ;;  %v6367_v60 = vld [vmem:[#allocation2 + $0x48] sm:$0xff] }
 0x3da   : > { %v4791_v26 = vld [vmem:[#allocation3 + $0x180] sm:$0xf] }
 0x3db   : > { %v4792_v44 = vor.u32 %v5052_v30, %v4791_v26  ;;  %v5056_v30 = vld [vmem:[#allocation3 + $0x1a8] sm:$0xf0] }
 0x3dd   : > { %2945 = vmatpush.bf16.msrb.mxu3 %v4792_v44  ;;  %v6382_v44 = vld [vmem:[#allocation2 + $0xe8] sm:$0xff] }
 0x3de   : > { %v6360_v56 = vpop.f32.mrf.mxu0 }
 0x3df   : > { %7524 = vst [vmem:[#allocation97_spill] sm:$0xff] %v6360_v56 }
 0x3e0   : > { %v2295_v58 = vpop.f32.mrf.mxu1  ;;  %v1692_v25 = vpop.f32.mrf.mxu3 }
 0x3e1   : > { %v1530_v51 = vpop.f32.mrf.mxu2  ;;  %v4944_v25 = vld [vmem:[#allocation3 + $0x28] sm:$0xf0] }
 0x3e3   : > { %2326 = vmatmul.bf16.gmra.mxu1 %v6151_v15  ;;  %v4587_v15 = vld [vmem:[#allocation3 + $0x20] sm:$0xf] }
 0x3e5   : > { %1729 = vmatmul.bf16.gmra.mxu3 %v6364_v23 }
 0x3e6   : > { %1563 = vmatmul.bf16.gmra.mxu2 %v5996_v43  ;;  %v2217_v59 = vpop.f32.mrf.mxu0  ;;  %v4588_v43 = vor.u32 %v4944_v25, %v4587_v15 }
 0x3e8   : > { %v2297_v56 = vpop.f32.mrf.mxu1  ;;  %v6371_v29 = vpop.f32.mrf.mxu3  ;;  %2373 = vmatpush.bf16.msra.mxu2 %v4588_v43 }
 0x3e9   : > { %v1532_v33 = vpop.f32.mrf.mxu2  ;;  %7525 = vst [vmem:[#allocation98_spill] sm:$0xff] %v6371_v29  ;;  %3120 = vmatmul.bf16.gmra.mxu0 %v6367_v60 }
 0x3ea   : > { %v6369_v51 = vadd.f32 %v2295_v58, %v1532_v33  ;;  %v4811_v33 = vld [vmem:[#allocation3 + $0x1a0] sm:$0xf] }
 0x3eb   : > { %v4812_v58 = vor.u32 %v5056_v30, %v4811_v33  ;;  %v6396_v33 = vld [vmem:[#allocation2 + $0xf0] sm:$0xff]  ;;  %v6399_v30 = vld [vmem:[#allocation2 + $0x58] sm:$0xff] }
 0x3ed   : > { %3234 = vmatpush.bf16.msra.mxu1 %v4812_v58 }
 0x3ee   : > { %v6374_v32 = vpop.f32.mrf.mxu0 }
 0x3ef   : > { %7526 = vst [vmem:[#allocation99_spill] sm:$0xff] %v6374_v32 }
 0x3f0   : > { %v2300_v7 = vpop.f32.mrf.mxu1  ;;  %v6378_v59 = vpop.f32.mrf.mxu3 }
 0x3f1   : > { %v1534_v19 = vpop.f32.mrf.mxu2  ;;  %7527 = vst [vmem:[#allocation100_spill] sm:$0xff] %v6378_v59 }
 0x3f2   : > { %v6376_v52 = vadd.f32 %v2297_v56, %v1534_v19  ;;  %v6387_v56 = vld [vmem:[#allocation2 + $0x50] sm:$0xff] }
 0x3f3   : > { %2331 = vmatmul.bf16.gmra.mxu1 %v6165_v2 }
 0x3f5   : > { %1734 = vmatmul.bf16.gmra.mxu3 %v6382_v44 }
 0x3f6   : > { %1568 = vmatmul.bf16.gmra.mxu2 %v6014_v27  ;;  %v6385_v15 = vpop.f32.mrf.mxu0 }
 0x3f7   : > { %7528 = vst [vmem:[#allocation101_spill] sm:$0xff] %v6385_v15 }
 0x3f8   : > { %v2301_v19 = vpop.f32.mrf.mxu1  ;;  %v6389_v7 = vpop.f32.mrf.mxu3 }
 0x3f9   : > { %v1537_v26 = vpop.f32.mrf.mxu2  ;;  %7529 = vst [vmem:[#allocation102_spill] sm:$0xff] %v6389_v7  ;;  %3123 = vmatmul.bf16.gmra.mxu0 %v6387_v56 }
 0x3fe   : > { %v6392_v43 = vpop.f32.mrf.mxu0 }
 0x3ff   : > { %7530 = vst [vmem:[#allocation103_spill] sm:$0xff] %v6392_v43 }
 0x400   : > { %v2303_v2 = vpop.f32.mrf.mxu1  ;;  %v1701_v27 = vpop.f32.mrf.mxu3 }
 0x401   : > { %v1538_v25 = vpop.f32.mrf.mxu2 }
 0x403   : > { %2334 = vmatmul.bf16.gmra.mxu1 %v6183_v12 }
 0x405   : > { %1738 = vmatmul.bf16.gmra.mxu3 %v6396_v33 }
 0x406   : > { %1571 = vmatmul.bf16.gmra.mxu2 %v6332_v55  ;;  %v2226_v26 = vpop.f32.mrf.mxu0 }
 0x407   : > { %v6414_v26 = vld [vmem:[#allocation2 + $0xf8] sm:$0xff] }
 0x408   : > { %v2305_v15 = vpop.f32.mrf.mxu1  ;;  %v6403_v25 = vpop.f32.mrf.mxu3 }
 0x409   : > { %v1540_v58 = vpop.f32.mrf.mxu2  ;;  %7531 = vst [vmem:[#allocation104_spill] sm:$0xff] %v6403_v25  ;;  %3128 = vmatmul.bf16.gmra.mxu0 %v6399_v30 }
 0x40a   : > { %v6401_v19 = vadd.f32 %v2303_v2, %v1540_v58 }
 0x40e   : > { %v6406_v43 = vpop.f32.mrf.mxu0 }
 0x40f   : > { %7532 = vst [vmem:[#allocation105_spill] sm:$0xff] %v6406_v43  ;;  %v6420_v43 = vld [vmem:[#allocation2 + $0x60] sm:$0xff] }
 0x410   : > { %v2308_v55 = vpop.f32.mrf.mxu1  ;;  %v6410_v32 = vpop.f32.mrf.mxu3 }
 0x411   : > { %v1542_v27 = vpop.f32.mrf.mxu2  ;;  %7533 = vst [vmem:[#allocation106_spill] sm:$0xff] %v6410_v32 }
 0x412   : > { %v6408_v12 = vadd.f32 %v2305_v15, %v1542_v27 }
 0x413   : > { %2339 = vmatmul.bf16.gmra.mxu1 %v6193_v35 }
 0x415   : > { %1743 = vmatmul.bf16.gmra.mxu3 %v6414_v26 }
 0x416   : > { %1576 = vmatmul.bf16.gmra.mxu2 %v6350_v22  ;;  %v3100_v58 = vpop.f32.mrf.mxu0 }
 0x417   : > { %v6418_v7 = vadd.f32 %v3100_v58, %v6167_v4  ;;  %v6433_v4 = vld [vmem:[#allocation2 + $0x68] sm:$0xff] }
 0x418   : > { %v2309_v25 = vpop.f32.mrf.mxu1  ;;  %v6422_v15 = vpop.f32.mrf.mxu3 }
 0x419   : > { %v1545_v2 = vpop.f32.mrf.mxu2  ;;  %7534 = vst [vmem:[#allocation107_spill] sm:$0xff] %v6418_v7  ;;  %3131 = vmatmul.bf16.gmra.mxu0 %v6420_v43  ;;  %v6430_v25 = vld [vmem:[#allocation2 + $0x100] sm:$0xff] }
 0x41a   : > { %7535 = vst [vmem:[#allocation108_spill] sm:$0xff] %v6422_v15 }
 0x41e   : > { %v3102_v35 = vpop.f32.mrf.mxu0 }
 0x41f   : > { %v6426_v22 = vadd.f32 %v3102_v35, %v6174_v46  ;;  %v4575_v46 = vld [vmem:[#allocation3 + $0x8] sm:$0xf]  ;;  %v4941_v35 = vld [vmem:[#allocation3 + $0x10] sm:$0xf0] }
 0x420   : > { %v2311_v55 = vpop.f32.mrf.mxu1  ;;  %v1710_v32 = vpop.f32.mrf.mxu3 }
 0x421   : > { %v1546_v27 = vpop.f32.mrf.mxu2  ;;  %v4576_v32 = vor.u32 %v4941_v35, %v4575_v46 }
 0x423   : > { %2342 = vmatmul.bf16.gmra.mxu1 %v6211_v54  ;;  %2374 = vmatpush.bf16.msra.mxu2 %v4576_v32 }
 0x425   : > { %1747 = vmatmul.bf16.gmra.mxu3 %v6430_v25 }
 0x426   : > { %1579 = vmatmul.bf16.gmra.mxu2 %v6364_v23  ;;  %v3105_v58 = vpop.f32.mrf.mxu0 }
 0x427   : > { %v5053_v58 = vld [vmem:[#allocation3 + $0x190] sm:$0xf0] }
 0x428   : > { %v2313_v27 = vpop.f32.mrf.mxu1  ;;  %v6437_v15 = vpop.f32.mrf.mxu3 }
 0x429   : > { %v1548_v2 = vpop.f32.mrf.mxu2  ;;  %7536 = vst [vmem:[#allocation109_spill] sm:$0xff] %v6437_v15  ;;  %3136 = vmatmul.bf16.gmra.mxu0 %v6433_v4 }
 0x42a   : > { %v6435_v7 = vadd.f32 %v2311_v55, %v1548_v2  ;;  %v4800_v55 = vor.u32 %v5053_v58, %v4799_v49  ;;  %v5306_v2 = vld [vmem:[#allocation2 + $0x108] sm:$0xff] }
 0x42c   : > { %3235 = vmatpush.bf16.msra.mxu1 %v4800_v55 }
 0x42e   : > { %v3106_v23 = vpop.f32.mrf.mxu0 }
 0x430   : > { %v2316_v29 = vpop.f32.mrf.mxu1  ;;  %v6442_v0 = vpop.f32.mrf.mxu3 }
 0x431   : > { %v1550_v54 = vpop.f32.mrf.mxu2  ;;  %7537 = vst [vmem:[#allocation110_spill] sm:$0xff] %v6442_v0  ;;  %v6530_v0 = vld [vmem:[#allocation2 + $0xa0] sm:$0xff] }
 0x432   : > { %v6440_v59 = vadd.f32 %v2313_v27, %v1550_v54  ;;  %v6449_v27 = vld [vmem:[#allocation2 + $0x70] sm:$0xff] }
 0x433   : > { %2347 = vmatmul.bf16.gmra.mxu1 %v6221_v39 }
 0x435   : > { %1752 = vmatmul.bf16.gmra.mxu3 %v5306_v2 }
 0x436   : > { %1584 = vmatmul.bf16.gmra.mxu2 %v6382_v44  ;;  %v3108_v46 = vpop.f32.mrf.mxu0 }
 0x437   : > { %v6447_v32 = vadd.f32 %v3108_v46, %v6195_v13  ;;  %v6460_v13 = vld [vmem:[#allocation2 + $0x78] sm:$0xff] }
 0x438   : > { %v2317_v35 = vpop.f32.mrf.mxu1  ;;  %v6451_v29 = vpop.f32.mrf.mxu3 }
 0x439   : > { %v1553_v15 = vpop.f32.mrf.mxu2  ;;  %7538 = vst [vmem:[#allocation111_spill] sm:$0xff] %v6451_v29  ;;  %3139 = vmatmul.bf16.gmra.mxu0 %v6449_v27 }
 0x43e   : > { %v3110_v54 = vpop.f32.mrf.mxu0 }
 0x43f   : > { %v6455_v44 = vadd.f32 %v3110_v54, %v6202_v10 }
 0x440   : > { %v2319_v39 = vpop.f32.mrf.mxu1  ;;  %v1719_v23 = vpop.f32.mrf.mxu3 }
 0x441   : > { %v1554_v49 = vpop.f32.mrf.mxu2 }
 0x443   : > { %2350 = vmatmul.bf16.gmra.mxu1 %v6239_v36 }
 0x445   : > { %2946 = vmatmul.bf16.vlgmr.msrb.gmra.mxu3 %v6295_v5 }
 0x446   : > { %1587 = vmatmul.bf16.gmra.mxu2 %v6396_v33  ;;  %v3113_v58 = vpop.f32.mrf.mxu0 }
 0x448   : > { %v2321_v46 = vpop.f32.mrf.mxu1  ;;  %v6464_v35 = vpop.f32.mrf.mxu3 }
 0x449   : > { %v1556_v15 = vpop.f32.mrf.mxu2  ;;  %7539 = vst [vmem:[#allocation112_spill] sm:$0xff] %v6464_v35  ;;  %3144 = vmatmul.bf16.gmra.mxu0 %v6460_v13  ;;  %v6477_v35 = vld [vmem:[#allocation2 + $0x80] sm:$0xff] }
 0x44a   : > { %v6462_v55 = vadd.f32 %v2319_v39, %v1556_v15 }
 0x44e   : > { %v3114_v49 = vpop.f32.mrf.mxu0 }
 0x450   : > { %v2324_v36 = vpop.f32.mrf.mxu1  ;;  %v6469_v23 = vpop.f32.mrf.mxu3 }
 0x451   : > { %v1558_v10 = vpop.f32.mrf.mxu2  ;;  %7540 = vst [vmem:[#allocation113_spill] sm:$0xff] %v6469_v23 }
 0x452   : > { %v6467_v54 = vadd.f32 %v2321_v46, %v1558_v10 }
 0x453   : > { %2355 = vmatmul.bf16.gmra.mxu1 %v6249_v31 }
 0x455   : > { %2951 = vmatmul.bf16.gmra.mxu3 %v6305_v20 }
 0x456   : > { %1592 = vmatmul.bf16.gmra.mxu2 %v6414_v26  ;;  %v3116_v39 = vpop.f32.mrf.mxu0 }
 0x457   : > { %v6475_v58 = vadd.f32 %v3116_v39, %v6223_v18  ;;  %v6488_v18 = vld [vmem:[#allocation2 + $0x88] sm:$0xff] }
 0x458   : > { %v2325_v15 = vpop.f32.mrf.mxu1  ;;  %v6479_v49 = vpop.f32.mrf.mxu3 }
 0x459   : > { %v1561_v33 = vpop.f32.mrf.mxu2  ;;  %7541 = vst [vmem:[#allocation114_spill] sm:$0xff] %v6479_v49  ;;  %3147 = vmatmul.bf16.gmra.mxu0 %v6477_v35 }
 0x45e   : > { %v3118_v10 = vpop.f32.mrf.mxu0 }
 0x45f   : > { %v6483_v31 = vadd.f32 %v3118_v10, %v6230_v37 }
 0x460   : > { %v2327_v36 = vpop.f32.mrf.mxu1  ;;  %v1728_v26 = vpop.f32.mrf.mxu3 }
 0x461   : > { %v1562_v46 = vpop.f32.mrf.mxu2 }
 0x463   : > { %2358 = vmatmul.bf16.gmra.mxu1 %v6267_v21 }
 0x465   : > { %2955 = vmatmul.bf16.gmra.mxu3 %v6323_v14 }
 0x466   : > { %1595 = vmatmul.bf16.gmra.mxu2 %v6430_v25  ;;  %v3121_v39 = vpop.f32.mrf.mxu0 }
 0x468   : > { %v2329_v49 = vpop.f32.mrf.mxu1  ;;  %v6492_v46 = vpop.f32.mrf.mxu3 }
 0x469   : > { %v1564_v33 = vpop.f32.mrf.mxu2  ;;  %7542 = vst [vmem:[#allocation115_spill] sm:$0xff] %v6492_v46  ;;  %3152 = vmatmul.bf16.gmra.mxu0 %v6488_v18  ;;  %v6504_v46 = vld [vmem:[#allocation2 + $0x90] sm:$0xff] }
 0x46a   : > { %v6490_v15 = vadd.f32 %v2327_v36, %v1564_v33 }
 0x46e   : > { %v3122_v10 = vpop.f32.mrf.mxu0 }
 0x470   : > { %v2332_v21 = vpop.f32.mrf.mxu1  ;;  %v6497_v23 = vpop.f32.mrf.mxu3 }
 0x471   : > { %v1566_v37 = vpop.f32.mrf.mxu2  ;;  %7543 = vst [vmem:[#allocation116_spill] sm:$0xff] %v6497_v23  ;;  %v5307_v21 = vld [vmem:[#allocation2] sm:$0xff] }
 0x472   : > { %v6495_v26 = vadd.f32 %v2329_v49, %v1566_v37 }
 0x473   : > { %2363 = vmatmul.bf16.gmra.mxu1 %v6277_v61 }
 0x475   : > { %2960 = vmatmul.bf16.gmra.mxu3 %v6335_v63 }
 0x476   : > { %1600 = vmatmul.bf16.gmra.mxu2 %v5306_v2  ;;  %v3124_v36 = vpop.f32.mrf.mxu0 }
 0x477   : > { %v6502_v39 = vadd.f32 %v3124_v36, %v6251_v17  ;;  %v6514_v17 = vld [vmem:[#allocation2 + $0x98] sm:$0xff] }
 0x478   : > { %v2333_v33 = vpop.f32.mrf.mxu1  ;;  %v6506_v29 = vpop.f32.mrf.mxu3 }
 0x479   : > { %v1569_v25 = vpop.f32.mrf.mxu2  ;;  %7544 = vst [vmem:[#allocation117_spill] sm:$0xff] %v6506_v29  ;;  %3155 = vmatmul.bf16.gmra.mxu0 %v6504_v46 }
 0x47e   : > { %v3126_v37 = vpop.f32.mrf.mxu0 }
 0x47f   : > { %v6510_v61 = vadd.f32 %v3126_v37, %v6258_v57 }
 0x480   : > { %v2335_v10 = vpop.f32.mrf.mxu1  ;;  %v1737_v2 = vpop.f32.mrf.mxu3 }
 0x481   : > { %v1570_v49 = vpop.f32.mrf.mxu2 }
 0x483   : > { %3236 = vmatmul.bf16.vlgmr.msra.gmra.mxu1 %v6295_v5 }
 0x485   : > { %2964 = vmatmul.bf16.gmra.mxu3 %v6355_v42 }
 0x486   : > { %2375 = vmatmul.bf16.vlgmr.msra.gmra.mxu2 %v5307_v21  ;;  %v3129_v36 = vpop.f32.mrf.mxu0  ;;  %v5308_v21 = vld [vmem:[#allocation2 + $0x8] sm:$0xff] }
 0x488   : > { %v2337_v29 = vpop.f32.mrf.mxu1  ;;  %v6518_v49 = vpop.f32.mrf.mxu3 }
 0x489   : > { %v1572_v25 = vpop.f32.mrf.mxu2  ;;  %7546 = vst [vmem:[#allocation119_spill] sm:$0xff] %v6518_v49  ;;  %3160 = vmatmul.bf16.gmra.mxu0 %v6514_v17 }
 0x48a   : > { %v6516_v33 = vadd.f32 %v2335_v10, %v1572_v25 }
 0x48c   : > { %7545 = vst [vmem:[#allocation118_spill] sm:$0xff] %v6516_v33 }
 0x48e   : > { %v3130_v37 = vpop.f32.mrf.mxu0 }
 0x490   : > { %v2340_v5 = vpop.f32.mrf.mxu1  ;;  %v6523_v23 = vpop.f32.mrf.mxu3 }
 0x491   : > { %v1574_v57 = vpop.f32.mrf.mxu2  ;;  %7548 = vst [vmem:[#allocation121_spill] sm:$0xff] %v6523_v23 }
 0x492   : > { %v6521_v2 = vadd.f32 %v2337_v29, %v1574_v57 }
 0x493   : > { %3241 = vmatmul.bf16.gmra.mxu1 %v6305_v20 }
 0x494   : > { %7547 = vst [vmem:[#allocation120_spill] sm:$0xff] %v6521_v2 }
 0x495   : > { %2969 = vmatmul.bf16.gmra.mxu3 %v6367_v60 }
 0x496   : > { %2380 = vmatmul.bf16.gmra.mxu2 %v5308_v21  ;;  %v3132_v25 = vpop.f32.mrf.mxu0 }
 0x497   : > { %v6528_v49 = vadd.f32 %v3132_v25, %v6279_v47  ;;  %v6540_v47 = vld [vmem:[#allocation2 + $0xa8] sm:$0xff] }
 0x498   : > { %v2341_v36 = vpop.f32.mrf.mxu1  ;;  %v6532_v37 = vpop.f32.mrf.mxu3 }
 0x499   : > { %v1577_v10 = vpop.f32.mrf.mxu2  ;;  %7549 = vst [vmem:[#allocation122_spill] sm:$0xff] %v6532_v37  ;;  %3163 = vmatmul.bf16.gmra.mxu0 %v6530_v0 }
 0x49a   : > { %v5309_v10 = vld [vmem:[#allocation2 + $0x10] sm:$0xff] }
 0x49e   : > { %v3134_v57 = vpop.f32.mrf.mxu0 }
 0x49f   : > { %v6536_v20 = vadd.f32 %v3134_v57, %v6286_v24 }
 0x4a0   : > { %v2343_v5 = vpop.f32.mrf.mxu1  ;;  %v1746_v21 = vpop.f32.mrf.mxu3 }
 0x4a1   : > { %v1578_v29 = vpop.f32.mrf.mxu2 }
 0x4a3   : > { %3245 = vmatmul.bf16.gmra.mxu1 %v6323_v14 }
 0x4a5   : > { %2973 = vmatmul.bf16.gmra.mxu3 %v6387_v56 }
 0x4a6   : > { %2384 = vmatmul.bf16.gmra.mxu2 %v5309_v10  ;;  %v3137_v36 = vpop.f32.mrf.mxu0  ;;  %v5310_v10 = vld [vmem:[#allocation2 + $0x18] sm:$0xff] }
 0x4a8   : > { %v2345_v23 = vpop.f32.mrf.mxu1  ;;  %v6544_v29 = vpop.f32.mrf.mxu3 }
 0x4a9   : > { %v1580_v25 = vpop.f32.mrf.mxu2  ;;  %7551 = vst [vmem:[#allocation124_spill] sm:$0xff] %v6544_v29  ;;  %3168 = vmatmul.bf16.gmra.mxu0 %v6540_v47 }
 0x4aa   : > { %v6542_v37 = vadd.f32 %v2343_v5, %v1580_v25 }
 0x4ac   : > { %7550 = vst [vmem:[#allocation123_spill] sm:$0xff] %v6542_v37  ;;  %v6556_v37 = vld [vmem:[#allocation2 + $0xb0] sm:$0xff] }
 0x4ae   : > { %v3138_v57 = vpop.f32.mrf.mxu0 }
 0x4b0   : > { %v2348_v14 = vpop.f32.mrf.mxu1  ;;  %v6549_v2 = vpop.f32.mrf.mxu3 }
 0x4b1   : > { %v1582_v24 = vpop.f32.mrf.mxu2  ;;  %7553 = vst [vmem:[#allocation126_spill] sm:$0xff] %v6549_v2 }
 0x4b2   : > { %v6547_v21 = vadd.f32 %v2345_v23, %v1582_v24 }
 0x4b3   : > { %3250 = vmatmul.bf16.gmra.mxu1 %v6335_v63 }
 0x4b4   : > { %7552 = vst [vmem:[#allocation125_spill] sm:$0xff] %v6547_v21 }
 0x4b5   : > { %2978 = vmatmul.bf16.gmra.mxu3 %v6399_v30 }
 0x4b6   : > { %2389 = vmatmul.bf16.gmra.mxu2 %v5310_v10  ;;  %v3140_v25 = vpop.f32.mrf.mxu0 }
 0x4b7   : > { %v6554_v29 = vadd.f32 %v3140_v25, %v6307_v34  ;;  %v6566_v34 = vld [vmem:[#allocation2 + $0xb8] sm:$0xff] }
 0x4b8   : > { %v2349_v36 = vpop.f32.mrf.mxu1  ;;  %v6558_v57 = vpop.f32.mrf.mxu3 }
 0x4b9   : > { %v1585_v5 = vpop.f32.mrf.mxu2  ;;  %7554 = vst [vmem:[#allocation127_spill] sm:$0xff] %v6558_v57  ;;  %3171 = vmatmul.bf16.gmra.mxu0 %v6556_v37 }
 0x4ba   : > { %v5311_v5 = vld [vmem:[#allocation2 + $0x20] sm:$0xff] }
 0x4be   : > { %v3142_v24 = vpop.f32.mrf.mxu0 }
 0x4bf   : > { %v6562_v63 = vadd.f32 %v3142_v24, %v6314_v48  ;;  %v3557_v48 = vlaneseq }
 0x4c0   : > { %v2351_v14 = vpop.f32.mrf.mxu1  ;;  %v1755_v10 = vpop.f32.mrf.mxu3 }
 0x4c1   : > { %v1586_v23 = vpop.f32.mrf.mxu2 }
 0x4c3   : > { %3254 = vmatmul.bf16.gmra.mxu1 %v6355_v42  ;;  %v6574_v42 = vshrl.u32 %v3557_v48, 7 }
 0x4c5   : > { %2982 = vmatmul.bf16.gmra.mxu3 %v6420_v43  ;;  %vm3559_vm5 = vcmp.lt.s32.totalorder %v6574_v42, 1  ;;  %vm3672_vm6 = vcmp.lt.s32.totalorder %v6574_v42, 7 }
 0x4c6   : > { %2393 = vmatmul.bf16.gmra.mxu2 %v5311_v5  ;;  %v3145_v36 = vpop.f32.mrf.mxu0  ;;  %v2089_v5 = vadd.f32 %v5923_v16, %v5963_v40 }
 0x4c8   : > { %v2353_v2 = vpop.f32.mrf.mxu1  ;;  %v2947_v23 = vpop.f32.mrf.mxu3 }
 0x4c9   : > { %v1588_v25 = vpop.f32.mrf.mxu2  ;;  %v6571_v21 = vadd.f32 %v2947_v23, %v5950_v3  ;;  %3176 = vmatmul.bf16.gmra.mxu0 %v6566_v34 }
 0x4ca   : > { %v6568_v57 = vadd.f32 %v2351_v14, %v1588_v25 }
 0x4cb   : > { %7556 = vst [vmem:[#allocation129_spill] sm:$0xff] %v6571_v21  ;;  %v7432_v3 = vrot.slane %v6571_v21, 7 }
 0x4cc   : > { %7555 = vst [vmem:[#allocation128_spill] sm:$0xff] %v6568_v57  ;;  %v5312_v57 = vld [vmem:[#allocation2 + $0x28] sm:$0xff] }
 0x4ce   : > { %v3146_v10 = vpop.f32.mrf.mxu0 }
 0x4cf   : > { %v6594_v10 = vld [vmem:[#allocation2 + $0xc0] sm:$0xff] }
 0x4d0   : > { %v2356_v36 = vpop.f32.mrf.mxu1  ;;  %v2949_v14 = vpop.f32.mrf.mxu3 }
 0x4d1   : > { %v1590_v24 = vpop.f32.mrf.mxu2  ;;  %v3384_v25 = vadd.f32 %v2949_v14, %v2089_v5 }
 0x4d2   : > { %v6578_v33 = vadd.f32 %v2353_v2, %v1590_v24 }
 0x4d3   : > { %3259 = vmatmul.bf16.gmra.mxu1 %v6367_v60  ;;  %v3510_v23 = vrot.slane %v3384_v25, 7 }
 0x4d5   : > { %v3590_v48 = vsel %vm3559_vm5, %v7432_v3, %v3510_v23  ;;  %2987 = vmatmul.bf16.gmra.mxu3 %v6433_v4 }
 0x4d6   : > { %2398 = vmatmul.bf16.gmra.mxu2 %v5312_v57  ;;  %v6589_v16 = vadd.f32 %v3590_v48, %v6426_v22  ;;  %v3148_v2 = vpop.f32.mrf.mxu0  ;;  %v5313_v48 = vld [vmem:[#allocation2 + $0x30] sm:$0xff] }
 0x4d7   : > { %v6592_v60 = vadd.f32 %v3148_v2, %v6337_v62  ;;  %v6603_v62 = vld [vmem:[#allocation2 + $0xc8] sm:$0xff] }
 0x4d8   : > { %v2357_v24 = vpop.f32.mrf.mxu1  ;;  %v2952_v5 = vpop.f32.mrf.mxu3 }
 0x4d9   : > { %v1593_v40 = vpop.f32.mrf.mxu2  ;;  %3179 = vmatmul.bf16.gmra.mxu0 %v6594_v10 }
 0x4de   : > { %v3150_v36 = vpop.f32.mrf.mxu0 }
 0x4df   : > { %v6598_v25 = vadd.f32 %v3150_v36, %v6344_v41 }
 0x4e0   : > { %v2359_v14 = vpop.f32.mrf.mxu1  ;;  %v2953_v23 = vpop.f32.mrf.mxu3 }
 0x4e1   : > { %v1594_v57 = vpop.f32.mrf.mxu2  ;;  %v3388_v22 = vadd.f32 %v2953_v23, %v5985_v6 }
 0x4e3   : > { %3263 = vmatmul.bf16.gmra.mxu1 %v6387_v56  ;;  %v3511_v36 = vrot.slane %v3388_v22, 7 }
 0x4e5   : > { %2991 = vmatmul.bf16.gmra.mxu3 %v6449_v27 }
 0x4e6   : > { %2402 = vmatmul.bf16.gmra.mxu2 %v5313_v48  ;;  %v3153_v2 = vpop.f32.mrf.mxu0 }
 0x4e8   : > { %v2361_v5 = vpop.f32.mrf.mxu1  ;;  %v2956_v57 = vpop.f32.mrf.mxu3 }
 0x4e9   : > { %v1596_v40 = vpop.f32.mrf.mxu2  ;;  %v3389_v41 = vadd.f32 %v2956_v57, %v5992_v11  ;;  %3184 = vmatmul.bf16.gmra.mxu0 %v6603_v62  ;;  %v5314_v57 = vld [vmem:[#allocation2 + $0x38] sm:$0xff] }
 0x4ea   : > { %v6605_v24 = vadd.f32 %v2359_v14, %v1596_v40 }
 0x4eb   : > { %v3512_v6 = vrot.slane %v3389_v41, 7 }
 0x4ed   : > { %v3589_v56 = vsel %vm3559_vm5, %v3511_v36, %v3512_v6 }
 0x4ee   : > { %v6612_v23 = vadd.f32 %v3589_v56, %v6447_v32  ;;  %v3154_v3 = vpop.f32.mrf.mxu0 }
 0x4f0   : > { %v2364_v14 = vpop.f32.mrf.mxu1  ;;  %v2958_v40 = vpop.f32.mrf.mxu3 }
 0x4f1   : > { %v1598_v48 = vpop.f32.mrf.mxu2  ;;  %v3392_v2 = vadd.f32 %v2958_v40, %v6007_v1  ;;  %v6627_v1 = vld [vmem:[#allocation2 + $0xd0] sm:$0xff] }
 0x4f2   : > { %v6614_v21 = vadd.f32 %v2361_v5, %v1598_v48 }
 0x4f3   : > { %3268 = vmatmul.bf16.gmra.mxu1 %v6399_v30  ;;  %v3513_v11 = vrot.slane %v3392_v2, 7  ;;  %v5315_v2 = vld [vmem:[#allocation2 + $0x40] sm:$0xff] }
 0x4f5   : > { %v3588_v22 = vsel %vm3559_vm5, %v3512_v6, %v3513_v11  ;;  %2996 = vmatmul.bf16.gmra.mxu3 %v6460_v13 }
 0x4f6   : > { %2407 = vmatmul.bf16.gmra.mxu2 %v5314_v57  ;;  %v6622_v32 = vadd.f32 %v3588_v22, %v6455_v44  ;;  %v3156_v5 = vpop.f32.mrf.mxu0 }
 0x4f7   : > { %v6625_v36 = vadd.f32 %v3156_v5, %v6369_v51  ;;  %v6636_v51 = vld [vmem:[#allocation2 + $0xd8] sm:$0xff] }
 0x4f8   : > { %v2365_v41 = vpop.f32.mrf.mxu1  ;;  %v2961_v30 = vpop.f32.mrf.mxu3 }
 0x4f9   : > { %v1601_v3 = vpop.f32.mrf.mxu2  ;;  %3187 = vmatmul.bf16.gmra.mxu0 %v6627_v1 }
 0x4fe   : > { %v3158_v48 = vpop.f32.mrf.mxu0 }
 0x4ff   : > { %v6631_v6 = vadd.f32 %v3158_v48, %v6376_v52 }
 0x500   : > { %v3237_v14 = vpop.f32.mrf.mxu1  ;;  %v2962_v40 = vpop.f32.mrf.mxu3 }
 0x501   : > { %v1602_v56 = vpop.f32.mrf.mxu2  ;;  %v3396_v44 = vadd.f32 %v2962_v40, %v6024_v53 }
 0x503   : > { %3272 = vmatmul.bf16.gmra.mxu1 %v6420_v43  ;;  %v3514_v53 = vrot.slane %v3396_v44, 7 }
 0x505   : > { %3000 = vmatmul.bf16.gmra.mxu3 %v6477_v35 }
 0x506   : > { %2411 = vmatmul.bf16.gmra.mxu2 %v5315_v2  ;;  %v3161_v57 = vpop.f32.mrf.mxu0 }
 0x508   : > { %v3239_v3 = vpop.f32.mrf.mxu1  ;;  %v2965_v5 = vpop.f32.mrf.mxu3 }
 0x509   : > { %v2376_v11 = vpop.f32.mrf.mxu2  ;;  %v3397_v52 = vadd.f32 %v2965_v5, %v6032_v28  ;;  %3192 = vmatmul.bf16.gmra.mxu0 %v6636_v51  ;;  %v5316_v5 = vld [vmem:[#allocation2 + $0x48] sm:$0xff] }
 0x50a   : > { %v2377_v22 = vadd.f32 %v2376_v11, %v6101_v9 }
 0x50b   : > { %v3515_v30 = vrot.slane %v3397_v52, 7 }
 0x50c   : > { %v3383_v41 = vadd.f32 %v3237_v14, %v2377_v22 }
 0x50d   : > { %v3587_v43 = vsel %vm3559_vm5, %v3514_v53, %v3515_v30 }
 0x50e   : > { %v6644_v56 = vadd.f32 %v3587_v43, %v6475_v58  ;;  %v3162_v40 = vpop.f32.mrf.mxu0  ;;  %v3624_v28 = vrot.slane %v3383_v41, 1  ;;  %v6664_v43 = vld [vmem:[#allocation2 + $0xe0] sm:$0xff] }
 0x510   : > { %v3242_v9 = vpop.f32.mrf.mxu1  ;;  %v2967_v11 = vpop.f32.mrf.mxu3 }
 0x511   : > { %v2378_v48 = vpop.f32.mrf.mxu2  ;;  %v3400_v14 = vadd.f32 %v2967_v11, %v6043_v50 }
 0x512   : > { %v2379_v2 = vadd.f32 %v2378_v48, %v6108_v38 }
 0x513   : > { %3277 = vmatmul.bf16.gmra.mxu1 %v6433_v4  ;;  %v3516_v22 = vrot.slane %v3400_v14, 7 }
 0x514   : > { %v3386_v57 = vadd.f32 %v3239_v3, %v2379_v2 }
 0x515   : > { %v3586_v38 = vsel %vm3559_vm5, %v3515_v30, %v3516_v22  ;;  %3005 = vmatmul.bf16.gmra.mxu3 %v6488_v18 }
 0x516   : > { %v3625_v44 = vrot.slane %v3386_v57, 1  ;;  %2416 = vmatmul.bf16.gmra.mxu2 %v5316_v5  ;;  %v6658_v50 = vadd.f32 %v3586_v38, %v6483_v31  ;;  %v3164_v52 = vpop.f32.mrf.mxu0  ;;  %v6678_v5 = vld [vmem:[#allocation2 + $0xe8] sm:$0xff] }
 0x517   : > { %v6662_v53 = vadd.f32 %v3164_v52, %v6401_v19 }
 0x518   : > { %v6652_v58 = vsel %vm3672_vm6, %v3624_v28, %v3625_v44  ;;  %v3244_v41 = vpop.f32.mrf.mxu1  ;;  %v2970_v48 = vpop.f32.mrf.mxu3  ;;  %v7557_v28 = vld [vmem:[#allocation25_spill] sm:$0xff] }
 0x519   : > { %v2381_v3 = vpop.f32.mrf.mxu2  ;;  %3195 = vmatmul.bf16.gmra.mxu0 %v6664_v43 }
 0x51a   : > { %v2382_v4 = vadd.f32 %v2381_v3, %v6117_v8 }
 0x51c   : > { %v3387_v40 = vadd.f32 %v3242_v9, %v2382_v4  ;;  %v5317_v9 = vld [vmem:[#allocation2 + $0x50] sm:$0xff] }
 0x51e   : > { %v3626_v30 = vrot.slane %v3387_v40, 1  ;;  %v3166_v57 = vpop.f32.mrf.mxu0 }
 0x51f   : > { %v6673_v14 = vadd.f32 %v3166_v57, %v6408_v12  ;;  %v7558_v12 = vld [vmem:[#allocation28_spill] sm:$0xff]  ;;  %v7559_v57 = vld [vmem:[#allocation50_spill] sm:$0xff] }
 0x520   : > { %v3703_v2 = vsel %vm3672_vm6, %v3625_v44, %v3626_v30  ;;  %v3246_v8 = vpop.f32.mrf.mxu1  ;;  %v2971_v19 = vpop.f32.mrf.mxu3 }
 0x521   : > { %v6670_v31 = vadd.f32 %v3703_v2, %v6589_v16  ;;  %v2383_v11 = vpop.f32.mrf.mxu2  ;;  %v3404_v22 = vadd.f32 %v2971_v19, %v7557_v28 }
 0x523   : > { %3281 = vmatmul.bf16.gmra.mxu1 %v6449_v27  ;;  %v3517_v48 = vrot.slane %v3404_v22, 7 }
 0x525   : > { %3009 = vmatmul.bf16.gmra.mxu3 %v6504_v46 }
 0x526   : > { %2420 = vmatmul.bf16.gmra.mxu2 %v5317_v9  ;;  %v3169_v16 = vpop.f32.mrf.mxu0 }
 0x528   : > { %v3248_v3 = vpop.f32.mrf.mxu1  ;;  %v2974_v52 = vpop.f32.mrf.mxu3 }
 0x529   : > { %v2385_v44 = vpop.f32.mrf.mxu2  ;;  %v3405_v41 = vadd.f32 %v2974_v52, %v7558_v12  ;;  %3200 = vmatmul.bf16.gmra.mxu0 %v6678_v5  ;;  %v5318_v52 = vld [vmem:[#allocation2 + $0x58] sm:$0xff] }
 0x52a   : > { %v2386_v38 = vadd.f32 %v2385_v44, %v6135_v45 }
 0x52b   : > { %v3518_v40 = vrot.slane %v3405_v41, 7 }
 0x52c   : > { %v3391_v4 = vadd.f32 %v3246_v8, %v2386_v38  ;;  %v7560_v8 = vld [vmem:[#allocation31_spill] sm:$0xff] }
 0x52d   : > { %v3585_v27 = vsel %vm3559_vm5, %v3517_v48, %v3518_v40  ;;  %v7561_v48 = vld [vmem:[#allocation52_spill] sm:$0xff] }
 0x52e   : > { %v6686_v30 = vadd.f32 %v3585_v27, %v6502_v39  ;;  %v3170_v11 = vpop.f32.mrf.mxu0  ;;  %v3627_v16 = vrot.slane %v3391_v4, 1 }
 0x530   : > { %v3251_v45 = vpop.f32.mrf.mxu1  ;;  %v2976_v28 = vpop.f32.mrf.mxu3 }
 0x531   : > { %v2387_v2 = vpop.f32.mrf.mxu2  ;;  %v3408_v44 = vadd.f32 %v2976_v28, %v7560_v8 }
 0x532   : > { %v2388_v19 = vadd.f32 %v2387_v2, %v7559_v57  ;;  %v6706_v57 = vld [vmem:[#allocation2 + $0xf0] sm:$0xff] }
 0x533   : > { %3286 = vmatmul.bf16.gmra.mxu1 %v6460_v13  ;;  %v3519_v38 = vrot.slane %v3408_v44, 7 }
 0x534   : > { %v3394_v9 = vadd.f32 %v3248_v3, %v2388_v19 }
 0x535   : > { %v3584_v12 = vsel %vm3559_vm5, %v3518_v40, %v3519_v38  ;;  %3014 = vmatmul.bf16.gmra.mxu3 %v6514_v17  ;;  %v7562_v38 = vld [vmem:[#allocation34_spill] sm:$0xff] }
 0x536   : > { %v3628_v22 = vrot.slane %v3394_v9, 1  ;;  %2425 = vmatmul.bf16.gmra.mxu2 %v5318_v52  ;;  %v6700_v3 = vadd.f32 %v3584_v12, %v6510_v61  ;;  %v3172_v4 = vpop.f32.mrf.mxu0  ;;  %v7563_v12 = vld [vmem:[#allocation56_spill] sm:$0xff] }
 0x537   : > { %v6704_v11 = vadd.f32 %v3172_v4, %v6435_v7 }
 0x538   : > { %v3702_v39 = vsel %vm3672_vm6, %v3627_v16, %v3628_v22  ;;  %v3253_v2 = vpop.f32.mrf.mxu1  ;;  %v2979_v19 = vpop.f32.mrf.mxu3 }
 0x539   : > { %v6697_v41 = vadd.f32 %v3702_v39, %v6612_v23  ;;  %v2390_v13 = vpop.f32.mrf.mxu2  ;;  %3203 = vmatmul.bf16.gmra.mxu0 %v6706_v57  ;;  %v6720_v39 = vld [vmem:[#allocation2 + $0xf8] sm:$0xff] }
 0x53a   : > { %v2391_v27 = vadd.f32 %v2390_v13, %v7561_v48 }
 0x53c   : > { %v3395_v40 = vadd.f32 %v3251_v45, %v2391_v27  ;;  %v5319_v45 = vld [vmem:[#allocation2 + $0x60] sm:$0xff] }
 0x53e   : > { %v3629_v28 = vrot.slane %v3395_v40, 1  ;;  %v3174_v8 = vpop.f32.mrf.mxu0 }
 0x53f   : > { %v6715_v16 = vadd.f32 %v3174_v8, %v6440_v59  ;;  %v7564_v59 = vld [vmem:[#allocation37_spill] sm:$0xff]  ;;  %v7565_v8 = vld [vmem:[#allocation58_spill] sm:$0xff] }
 0x540   : > { %v3701_v23 = vsel %vm3672_vm6, %v3628_v22, %v3629_v28  ;;  %v3255_v44 = vpop.f32.mrf.mxu1  ;;  %v2980_v7 = vpop.f32.mrf.mxu3 }
 0x541   : > { %v6712_v61 = vadd.f32 %v3701_v23, %v6622_v32  ;;  %v2392_v9 = vpop.f32.mrf.mxu2  ;;  %v3412_v52 = vadd.f32 %v2980_v7, %v7562_v38 }
 0x543   : > { %3290 = vmatmul.bf16.gmra.mxu1 %v6477_v35  ;;  %v3520_v19 = vrot.slane %v3412_v52, 7 }
 0x545   : > { %3018 = vmatmul.bf16.gmra.mxu3 %v6530_v0 }
 0x546   : > { %2429 = vmatmul.bf16.gmra.mxu2 %v5319_v45  ;;  %v3177_v32 = vpop.f32.mrf.mxu0 }
 0x548   : > { %v3257_v4 = vpop.f32.mrf.mxu1  ;;  %v2983_v48 = vpop.f32.mrf.mxu3 }
 0x549   : > { %v2394_v22 = vpop.f32.mrf.mxu2  ;;  %v3413_v2 = vadd.f32 %v2983_v48, %v7564_v59  ;;  %3208 = vmatmul.bf16.gmra.mxu0 %v6720_v39  ;;  %v5320_v48 = vld [vmem:[#allocation2 + $0x68] sm:$0xff] }
 0x54a   : > { %v2395_v13 = vadd.f32 %v2394_v22, %v7563_v12 }
 0x54b   : > { %v3521_v40 = vrot.slane %v3413_v2, 7 }
 0x54c   : > { %v3399_v27 = vadd.f32 %v3255_v44, %v2395_v13  ;;  %v7566_v44 = vld [vmem:[#allocation39_spill] sm:$0xff] }
 0x54d   : > { %v3583_v35 = vsel %vm3559_vm5, %v3520_v19, %v3521_v40  ;;  %v7567_v19 = vld [vmem:[#allocation60_spill] sm:$0xff] }
 0x54e   : > { %v6728_v28 = vadd.f32 %v3583_v35, %v6528_v49  ;;  %v3178_v9 = vpop.f32.mrf.mxu0  ;;  %v3630_v12 = vrot.slane %v3399_v27, 1 }
 0x550   : > { %v3260_v38 = vpop.f32.mrf.mxu1  ;;  %v2985_v45 = vpop.f32.mrf.mxu3 }
 0x551   : > { %v2396_v23 = vpop.f32.mrf.mxu2  ;;  %v3416_v32 = vadd.f32 %v2985_v45, %v7566_v44 }
 0x552   : > { %v2397_v7 = vadd.f32 %v2396_v23, %v7565_v8  ;;  %v6748_v8 = vld [vmem:[#allocation2 + $0x100] sm:$0xff] }
 0x553   : > { %3295 = vmatmul.bf16.gmra.mxu1 %v6488_v18  ;;  %v3522_v13 = vrot.slane %v3416_v32, 7 }
 0x554   : > { %v3402_v22 = vadd.f32 %v3257_v4, %v2397_v7 }
 0x555   : > { %v3582_v59 = vsel %vm3559_vm5, %v3521_v40, %v3522_v13  ;;  %3023 = vmatmul.bf16.gmra.mxu3 %v6540_v47  ;;  %v7568_v13 = vld [vmem:[#allocation42_spill] sm:$0xff] }
 0x556   : > { %v3631_v52 = vrot.slane %v3402_v22, 1  ;;  %2434 = vmatmul.bf16.gmra.mxu2 %v5320_v48  ;;  %v6742_v4 = vadd.f32 %v3582_v59, %v6536_v20  ;;  %v3180_v27 = vpop.f32.mrf.mxu0  ;;  %v7569_v59 = vld [vmem:[#allocation62_spill] sm:$0xff] }
 0x557   : > { %v6746_v9 = vadd.f32 %v3180_v27, %v6462_v55 }
 0x558   : > { %v3700_v49 = vsel %vm3672_vm6, %v3630_v12, %v3631_v52  ;;  %v3262_v23 = vpop.f32.mrf.mxu1  ;;  %v2988_v7 = vpop.f32.mrf.mxu3 }
 0x559   : > { %v6739_v2 = vadd.f32 %v3700_v49, %v6644_v56  ;;  %v2399_v18 = vpop.f32.mrf.mxu2  ;;  %3211 = vmatmul.bf16.gmra.mxu0 %v6748_v8  ;;  %v6762_v49 = vld [vmem:[#allocation2 + $0x108] sm:$0xff] }
 0x55a   : > { %v2400_v35 = vadd.f32 %v2399_v18, %v7567_v19 }
 0x55c   : > { %v3403_v40 = vadd.f32 %v3260_v38, %v2400_v35  ;;  %v5321_v38 = vld [vmem:[#allocation2 + $0x70] sm:$0xff] }
 0x55e   : > { %v3632_v45 = vrot.slane %v3403_v40, 1  ;;  %v3182_v44 = vpop.f32.mrf.mxu0 }
 0x55f   : > { %v6757_v12 = vadd.f32 %v3182_v44, %v6467_v54  ;;  %v7570_v54 = vld [vmem:[#allocation45_spill] sm:$0xff]  ;;  %v7571_v44 = vld [vmem:[#allocation64_spill] sm:$0xff] }
 0x560   : > { %v3699_v56 = vsel %vm3672_vm6, %v3631_v52, %v3632_v45  ;;  %v3264_v32 = vpop.f32.mrf.mxu1  ;;  %v2989_v55 = vpop.f32.mrf.mxu3 }
 0x561   : > { %v6754_v20 = vadd.f32 %v3699_v56, %v6658_v50  ;;  %v2401_v22 = vpop.f32.mrf.mxu2  ;;  %v3420_v48 = vadd.f32 %v2989_v55, %v7568_v13 }
 0x563   : > { %3299 = vmatmul.bf16.gmra.mxu1 %v6504_v46  ;;  %v3523_v7 = vrot.slane %v3420_v48, 7 }
 0x565   : > { %3027 = vmatmul.bf16.gmra.mxu3 %v6556_v37 }
 0x566   : > { %2438 = vmatmul.bf16.gmra.mxu2 %v5321_v38  ;;  %v3185_v50 = vpop.f32.mrf.mxu0 }
 0x568   : > { %v3266_v27 = vpop.f32.mrf.mxu1  ;;  %v2992_v19 = vpop.f32.mrf.mxu3 }
 0x569   : > { %v2403_v52 = vpop.f32.mrf.mxu2  ;;  %v3421_v23 = vadd.f32 %v2992_v19, %v7570_v54  ;;  %3216 = vmatmul.bf16.gmra.mxu0 %v6762_v49  ;;  %v5322_v19 = vld [vmem:[#allocation2 + $0x78] sm:$0xff] }
 0x56a   : > { %v2404_v18 = vadd.f32 %v2403_v52, %v7569_v59 }
 0x56b   : > { %v3524_v40 = vrot.slane %v3421_v23, 7  ;;  %v6780_v23 = vld [vmem:[#allocation2 + $0x110] sm:$0xff] }
 0x56c   : > { %v3407_v35 = vadd.f32 %v3264_v32, %v2404_v18  ;;  %v7572_v32 = vld [vmem:[#allocation47_spill] sm:$0xff] }
 0x56d   : > { %v3581_v46 = vsel %vm3559_vm5, %v3523_v7, %v3524_v40 }
 0x56e   : > { %v6770_v45 = vadd.f32 %v3581_v46, %v6554_v29  ;;  %v3186_v22 = vpop.f32.mrf.mxu0  ;;  %v3633_v59 = vrot.slane %v3407_v35, 1  ;;  %v7573_v46 = vld [vmem:[#allocation66_spill] sm:$0xff] }
 0x570   : > { %v3269_v13 = vpop.f32.mrf.mxu1  ;;  %v2994_v38 = vpop.f32.mrf.mxu3 }
 0x571   : > { %v2405_v56 = vpop.f32.mrf.mxu2  ;;  %v3424_v50 = vadd.f32 %v2994_v38, %v7572_v32 }
 0x572   : > { %v2406_v55 = vadd.f32 %v2405_v56, %v7571_v44 }
 0x573   : > { %3304 = vmatmul.bf16.gmra.mxu1 %v6514_v17  ;;  %v3525_v18 = vrot.slane %v3424_v50, 7 }
 0x574   : > { %v3410_v52 = vadd.f32 %v3266_v27, %v2406_v55 }
 0x575   : > { %v3580_v54 = vsel %vm3559_vm5, %v3524_v40, %v3525_v18  ;;  %3032 = vmatmul.bf16.gmra.mxu3 %v6566_v34 }
 0x576   : > { %v3634_v48 = vrot.slane %v3410_v52, 1  ;;  %2443 = vmatmul.bf16.gmra.mxu2 %v5322_v19  ;;  %v6786_v17 = vadd.f32 %v3580_v54, %v6562_v63  ;;  %v3188_v7 = vpop.f32.mrf.mxu0  ;;  %v7575_v54 = vld [vmem:[#allocation9_spill] sm:$0xff] }
 0x577   : > { %v6790_v44 = vadd.f32 %v3188_v7, %v6490_v15  ;;  %v7574_v15 = vld [vmem:[#allocation53_spill] sm:$0xff]  ;;  %v7577_v7 = vld [vmem:[#allocation68_spill] sm:$0xff] }
 0x578   : > { %v3698_v29 = vsel %vm3672_vm6, %v3633_v59, %v3634_v48  ;;  %v3271_v22 = vpop.f32.mrf.mxu1  ;;  %v2997_v55 = vpop.f32.mrf.mxu3 }
 0x579   : > { %v6783_v27 = vadd.f32 %v3698_v29, %v6686_v30  ;;  %v2408_v35 = vpop.f32.mrf.mxu2  ;;  %3219 = vmatmul.bf16.gmra.mxu0 %v6780_v23 }
 0x57a   : > { %v2409_v56 = vadd.f32 %v2408_v35, %v7573_v46 }
 0x57c   : > { %v3411_v40 = vadd.f32 %v3269_v13, %v2409_v56  ;;  %v5323_v13 = vld [vmem:[#allocation2 + $0x80] sm:$0xff] }
 0x57e   : > { %v3635_v38 = vrot.slane %v3411_v40, 1  ;;  %v3190_v32 = vpop.f32.mrf.mxu0 }
 0x57f   : > { %v6799_v59 = vadd.f32 %v3190_v32, %v6495_v26 }
 0x580   : > { %v3697_v30 = vsel %vm3672_vm6, %v3634_v48, %v3635_v38  ;;  %v3273_v50 = vpop.f32.mrf.mxu1  ;;  %v2998_v18 = vpop.f32.mrf.mxu3 }
 0x581   : > { %v6796_v52 = vadd.f32 %v3697_v30, %v6700_v3  ;;  %v2410_v63 = vpop.f32.mrf.mxu2  ;;  %v3428_v19 = vadd.f32 %v2998_v18, %v7574_v15  ;;  %v7576_v3 = vld [vmem:[#allocation41_spill] sm:$0xff]  ;;  %v7578_v18 = vld [vmem:[#allocation11_spill] sm:$0xff]  ;;  %v7579_v15 = vld [vmem:[#allocation44_spill] sm:$0xff] }
 0x582   : > { %v2141_v35 = vadd.f32 %v7576_v3, %v7575_v54 }
 0x583   : > { %3308 = vmatmul.bf16.gmra.mxu1 %v6530_v0  ;;  %v3526_v40 = vrot.slane %v3428_v19, 7 }
 0x585   : > { %3036 = vmatmul.bf16.gmra.mxu3 %v6594_v10 }
 0x586   : > { %2447 = vmatmul.bf16.gmra.mxu2 %v5323_v13  ;;  %v3193_v48 = vpop.f32.mrf.mxu0  ;;  %v2143_v13 = vadd.f32 %v7579_v15, %v7578_v18  ;;  %v7582_v18 = vld [vmem:[#allocation118_spill] sm:$0xff] }
 0x587   : > { %v7580_v48 = vld [vmem:[#allocation70_spill] sm:$0xff] }
 0x588   : > { %v3275_v56 = vpop.f32.mrf.mxu1  ;;  %v3001_v22 = vpop.f32.mrf.mxu3 }
 0x589   : > { %v2412_v29 = vpop.f32.mrf.mxu2  ;;  %v3429_v55 = vadd.f32 %v3001_v22, %v2141_v35  ;;  %v5324_v22 = vld [vmem:[#allocation2 + $0x88] sm:$0xff] }
 0x58a   : > { %v2413_v46 = vadd.f32 %v2412_v29, %v7577_v7 }
 0x58b   : > { %v3527_v38 = vrot.slane %v3429_v55, 7 }
 0x58c   : > { %v3415_v26 = vadd.f32 %v3273_v50, %v2413_v46 }
 0x58d   : > { %v3579_v0 = vsel %vm3559_vm5, %v3526_v40, %v3527_v38 }
 0x58e   : > { %v6810_v30 = vadd.f32 %v3579_v0, %v6592_v60  ;;  %v3194_v32 = vpop.f32.mrf.mxu0  ;;  %v3636_v19 = vrot.slane %v3415_v26, 1  ;;  %v7581_v0 = vld [vmem:[#allocation72_spill] sm:$0xff] }
 0x590   : > { %v3278_v29 = vpop.f32.mrf.mxu1  ;;  %v3003_v3 = vpop.f32.mrf.mxu3 }
 0x591   : > { %v2414_v63 = vpop.f32.mrf.mxu2  ;;  %v3432_v50 = vadd.f32 %v3003_v3, %v2143_v13 }
 0x592   : > { %v2415_v54 = vadd.f32 %v2414_v63, %v7580_v48 }
 0x593   : > { %3313 = vmatmul.bf16.gmra.mxu1 %v6540_v47  ;;  %v3528_v46 = vrot.slane %v3432_v50, 7  ;;  %v7584_v50 = vld [vmem:[#allocation49_spill] sm:$0xff] }
 0x594   : > { %v3418_v7 = vadd.f32 %v3275_v56, %v2415_v54 }
 0x595   : > { %v3578_v55 = vsel %vm3559_vm5, %v3527_v38, %v3528_v46  ;;  %3041 = vmatmul.bf16.gmra.mxu3 %v6603_v62 }
 0x596   : > { %v3637_v35 = vrot.slane %v3418_v7, 1  ;;  %2452 = vmatmul.bf16.gmra.mxu2 %v5324_v22  ;;  %v6825_v56 = vadd.f32 %v3578_v55, %v6598_v25  ;;  %v3196_v26 = vpop.f32.mrf.mxu0  ;;  %v7583_v7 = vld [vmem:[#allocation13_spill] sm:$0xff]  ;;  %v7585_v22 = vld [vmem:[#allocation120_spill] sm:$0xff] }
 0x597   : > { %v6829_v15 = vadd.f32 %v3196_v26, %v7582_v18  ;;  %v7586_v26 = vld [vmem:[#allocation15_spill] sm:$0xff] }
 0x598   : > { %v3696_v60 = vsel %vm3672_vm6, %v3636_v19, %v3637_v35  ;;  %v3280_v32 = vpop.f32.mrf.mxu1  ;;  %v3006_v13 = vpop.f32.mrf.mxu3  ;;  %v2147_v19 = vadd.f32 %v7584_v50, %v7583_v7 }
 0x599   : > { %v6822_v40 = vadd.f32 %v3696_v60, %v6728_v28  ;;  %v2417_v47 = vpop.f32.mrf.mxu2  ;;  %v7588_v32 = vld [vmem:[#allocation74_spill] sm:$0xff] }
 0x59a   : > { %v2418_v63 = vadd.f32 %v2417_v47, %v7581_v0  ;;  %v7587_v0 = vld [vmem:[#allocation51_spill] sm:$0xff] }
 0x59c   : > { %v3419_v48 = vadd.f32 %v3278_v29, %v2418_v63  ;;  %v5325_v29 = vld [vmem:[#allocation2 + $0x90] sm:$0xff]  ;;  %v2150_v63 = vadd.f32 %v7587_v0, %v7586_v26 }
 0x59e   : > { %v3638_v54 = vrot.slane %v3419_v48, 1  ;;  %v3198_v25 = vpop.f32.mrf.mxu0 }
 0x59f   : > { %v6839_v60 = vadd.f32 %v3198_v25, %v7585_v22  ;;  %v7589_v22 = vld [vmem:[#allocation17_spill] sm:$0xff] }
 0x5a0   : > { %v3695_v38 = vsel %vm3672_vm6, %v3637_v35, %v3638_v54  ;;  %v3282_v46 = vpop.f32.mrf.mxu1  ;;  %v3007_v55 = vpop.f32.mrf.mxu3 }
 0x5a1   : > { %v6834_v28 = vadd.f32 %v3695_v38, %v6742_v4  ;;  %v2419_v3 = vpop.f32.mrf.mxu2  ;;  %v3436_v47 = vadd.f32 %v3007_v55, %v2147_v19  ;;  %v7590_v55 = vld [vmem:[#allocation55_spill] sm:$0xff] }
 0x5a3   : > { %3317 = vmatmul.bf16.gmra.mxu1 %v6556_v37  ;;  %v3529_v3 = vrot.slane %v3436_v47, 7 }
 0x5a5   : > { %3045 = vmatmul.bf16.gmra.mxu3 %v6627_v1 }
 0x5a6   : > { %2456 = vmatmul.bf16.gmra.mxu2 %v5325_v29  ;;  %v3201_v4 = vpop.f32.mrf.mxu0  ;;  %v2152_v29 = vadd.f32 %v7590_v55, %v7589_v22  ;;  %v7593_v22 = vld [vmem:[#allocation123_spill] sm:$0xff] }
 0x5a7   : > { %v7591_v4 = vld [vmem:[#allocation76_spill] sm:$0xff] }
 0x5a8   : > { %v3284_v13 = vpop.f32.mrf.mxu1  ;;  %v3010_v48 = vpop.f32.mrf.mxu3 }
 0x5a9   : > { %v2421_v35 = vpop.f32.mrf.mxu2  ;;  %v3437_v38 = vadd.f32 %v3010_v48, %v2150_v63  ;;  %v5326_v48 = vld [vmem:[#allocation2 + $0x98] sm:$0xff] }
 0x5aa   : > { %v2422_v18 = vadd.f32 %v2421_v35, %v7588_v32 }
 0x5ab   : > { %v3530_v25 = vrot.slane %v3437_v38, 7 }
 0x5ac   : > { %v3423_v54 = vadd.f32 %v3282_v46, %v2422_v18 }
 0x5ad   : > { %v3577_v37 = vsel %vm3559_vm5, %v3529_v3, %v3530_v25 }
 0x5ae   : > { %v6849_v7 = vadd.f32 %v3577_v37, %v6625_v36  ;;  %v3202_v19 = vpop.f32.mrf.mxu0  ;;  %v3639_v47 = vrot.slane %v3423_v54, 1  ;;  %v7592_v37 = vld [vmem:[#allocation78_spill] sm:$0xff] }
 0x5b0   : > { %v3287_v35 = vpop.f32.mrf.mxu1  ;;  %v3012_v0 = vpop.f32.mrf.mxu3 }
 0x5b1   : > { %v2423_v50 = vpop.f32.mrf.mxu2  ;;  %v3440_v46 = vadd.f32 %v3012_v0, %v2152_v29 }
 0x5b2   : > { %v2424_v26 = vadd.f32 %v2423_v50, %v7591_v4 }
 0x5b3   : > { %3322 = vmatmul.bf16.gmra.mxu1 %v6566_v34  ;;  %v3531_v18 = vrot.slane %v3440_v46, 7  ;;  %v7595_v46 = vld [vmem:[#allocation57_spill] sm:$0xff] }
 0x5b4   : > { %v3426_v32 = vadd.f32 %v3284_v13, %v2424_v26 }
 0x5b5   : > { %v3576_v38 = vsel %vm3559_vm5, %v3530_v25, %v3531_v18  ;;  %3050 = vmatmul.bf16.gmra.mxu3 %v6636_v51 }
 0x5b6   : > { %v3640_v63 = vrot.slane %v3426_v32, 1  ;;  %2461 = vmatmul.bf16.gmra.mxu2 %v5326_v48  ;;  %v6864_v13 = vadd.f32 %v3576_v38, %v6631_v6  ;;  %v3204_v54 = vpop.f32.mrf.mxu0  ;;  %v7594_v32 = vld [vmem:[#allocation19_spill] sm:$0xff]  ;;  %v7596_v48 = vld [vmem:[#allocation125_spill] sm:$0xff] }
 0x5b7   : > { %v6868_v55 = vadd.f32 %v3204_v54, %v7593_v22  ;;  %v7597_v54 = vld [vmem:[#allocation21_spill] sm:$0xff] }
 0x5b8   : > { %v3694_v36 = vsel %vm3672_vm6, %v3639_v47, %v3640_v63  ;;  %v3289_v19 = vpop.f32.mrf.mxu1  ;;  %v3015_v29 = vpop.f32.mrf.mxu3  ;;  %v2156_v47 = vadd.f32 %v7595_v46, %v7594_v32 }
 0x5b9   : > { %v6861_v3 = vadd.f32 %v3694_v36, %v6770_v45  ;;  %v2426_v34 = vpop.f32.mrf.mxu2  ;;  %v7599_v19 = vld [vmem:[#allocation80_spill] sm:$0xff] }
 0x5ba   : > { %v2427_v50 = vadd.f32 %v2426_v34, %v7592_v37  ;;  %v7598_v37 = vld [vmem:[#allocation59_spill] sm:$0xff] }
 0x5bc   : > { %v3427_v4 = vadd.f32 %v3287_v35, %v2427_v50  ;;  %v5327_v35 = vld [vmem:[#allocation2 + $0xa0] sm:$0xff]  ;;  %v2159_v50 = vadd.f32 %v7598_v37, %v7597_v54 }
 0x5be   : > { %v3641_v26 = vrot.slane %v3427_v4, 1  ;;  %v3206_v6 = vpop.f32.mrf.mxu0 }
 0x5bf   : > { %v6878_v36 = vadd.f32 %v3206_v6, %v7596_v48  ;;  %v7600_v48 = vld [vmem:[#allocation23_spill] sm:$0xff] }
 0x5c0   : > { %v3693_v25 = vsel %vm3672_vm6, %v3640_v63, %v3641_v26  ;;  %v3291_v18 = vpop.f32.mrf.mxu1  ;;  %v3016_v38 = vpop.f32.mrf.mxu3 }
 0x5c1   : > { %v6873_v45 = vadd.f32 %v3693_v25, %v6786_v17  ;;  %v2428_v0 = vpop.f32.mrf.mxu2  ;;  %v3444_v34 = vadd.f32 %v3016_v38, %v2156_v47  ;;  %v7601_v38 = vld [vmem:[#allocation61_spill] sm:$0xff] }
 0x5c3   : > { %3326 = vmatmul.bf16.gmra.mxu1 %v6594_v10  ;;  %v3532_v0 = vrot.slane %v3444_v34, 7 }
 0x5c5   : > { %3054 = vmatmul.bf16.gmra.mxu3 %v6664_v43 }
 0x5c6   : > { %2465 = vmatmul.bf16.gmra.mxu2 %v5327_v35  ;;  %v3209_v17 = vpop.f32.mrf.mxu0  ;;  %v2161_v35 = vadd.f32 %v7601_v38, %v7600_v48  ;;  %v7604_v48 = vld [vmem:[#allocation128_spill] sm:$0xff] }
 0x5c7   : > { %v7602_v17 = vld [vmem:[#allocation82_spill] sm:$0xff] }
 0x5c8   : > { %v3293_v29 = vpop.f32.mrf.mxu1  ;;  %v3019_v4 = vpop.f32.mrf.mxu3 }
 0x5c9   : > { %v2430_v63 = vpop.f32.mrf.mxu2  ;;  %v3445_v25 = vadd.f32 %v3019_v4, %v2159_v50  ;;  %v5328_v4 = vld [vmem:[#allocation2 + $0xa8] sm:$0xff] }
 0x5ca   : > { %v2431_v22 = vadd.f32 %v2430_v63, %v7599_v19 }
 0x5cb   : > { %v3533_v6 = vrot.slane %v3445_v25, 7 }
 0x5cc   : > { %v3431_v26 = vadd.f32 %v3291_v18, %v2431_v22 }
 0x5cd   : > { %v3575_v10 = vsel %vm3559_vm5, %v3532_v0, %v3533_v6 }
 0x5ce   : > { %v6888_v32 = vadd.f32 %v3575_v10, %v6662_v53  ;;  %v3210_v47 = vpop.f32.mrf.mxu0  ;;  %v3642_v34 = vrot.slane %v3431_v26, 1  ;;  %v7603_v10 = vld [vmem:[#allocation84_spill] sm:$0xff] }
 0x5d0   : > { %v3296_v63 = vpop.f32.mrf.mxu1  ;;  %v3021_v37 = vpop.f32.mrf.mxu3 }
 0x5d1   : > { %v2432_v46 = vpop.f32.mrf.mxu2  ;;  %v3448_v18 = vadd.f32 %v3021_v37, %v2161_v35 }
 0x5d2   : > { %v2433_v54 = vadd.f32 %v2432_v46, %v7602_v17 }
 0x5d3   : > { %3331 = vmatmul.bf16.gmra.mxu1 %v6603_v62  ;;  %v3534_v22 = vrot.slane %v3448_v18, 7  ;;  %v7606_v18 = vld [vmem:[#allocation63_spill] sm:$0xff] }
 0x5d4   : > { %v3434_v19 = vadd.f32 %v3293_v29, %v2433_v54 }
 0x5d5   : > { %v3574_v25 = vsel %vm3559_vm5, %v3533_v6, %v3534_v22  ;;  %3059 = vmatmul.bf16.gmra.mxu3 %v6678_v5 }
 0x5d6   : > { %v3643_v50 = vrot.slane %v3434_v19, 1  ;;  %2470 = vmatmul.bf16.gmra.mxu2 %v5328_v4  ;;  %v6903_v29 = vadd.f32 %v3574_v25, %v6673_v14  ;;  %v3212_v26 = vpop.f32.mrf.mxu0  ;;  %v7605_v19 = vld [vmem:[#allocation26_spill] sm:$0xff] }
 0x5d7   : > { %v6907_v38 = vadd.f32 %v3212_v26, %v7604_v48  ;;  %v7608_v26 = vld [vmem:[#allocation65_spill] sm:$0xff] }
 0x5d8   : > { %v3692_v53 = vsel %vm3672_vm6, %v3642_v34, %v3643_v50  ;;  %v3298_v47 = vpop.f32.mrf.mxu1  ;;  %v3024_v35 = vpop.f32.mrf.mxu3  ;;  %v2165_v34 = vadd.f32 %v7606_v18, %v7605_v19  ;;  %v7610_v18 = vld [vmem:[#allocation32_spill] sm:$0xff] }
 0x5d9   : > { %v6900_v0 = vadd.f32 %v3692_v53, %v6810_v30  ;;  %v2435_v62 = vpop.f32.mrf.mxu2 }
 0x5da   : > { %v2436_v46 = vadd.f32 %v2435_v62, %v7603_v10  ;;  %v7607_v62 = vld [vmem:[#allocation29_spill] sm:$0xff] }
 0x5db   : > { %v2168_v10 = vadd.f32 %v7608_v26, %v7607_v62 }
 0x5dc   : > { %v3435_v17 = vadd.f32 %v3296_v63, %v2436_v46  ;;  %v5329_v63 = vld [vmem:[#allocation2 + $0xb0] sm:$0xff]  ;;  %v7609_v46 = vld [vmem:[#allocation86_spill] sm:$0xff] }
 0x5de   : > { %v3644_v54 = vrot.slane %v3435_v17, 1  ;;  %v3214_v14 = vpop.f32.mrf.mxu0 }
 0x5df   : > { %v6917_v4 = vadd.f32 %v3214_v14, %v6578_v33 }
 0x5e0   : > { %v3691_v6 = vsel %vm3672_vm6, %v3643_v50, %v3644_v54  ;;  %v3300_v22 = vpop.f32.mrf.mxu1  ;;  %v3025_v53 = vpop.f32.mrf.mxu3 }
 0x5e1   : > { %v6912_v30 = vadd.f32 %v3691_v6, %v6825_v56  ;;  %v2437_v37 = vpop.f32.mrf.mxu2  ;;  %v3452_v25 = vadd.f32 %v3025_v53, %v2165_v34  ;;  %v7611_v34 = vld [vmem:[#allocation67_spill] sm:$0xff] }
 0x5e2   : > { %v2170_v53 = vadd.f32 %v7611_v34, %v7610_v18 }
 0x5e3   : > { %3335 = vmatmul.bf16.gmra.mxu1 %v6627_v1  ;;  %v3535_v54 = vrot.slane %v3452_v25, 7 }
 0x5e5   : > { %3063 = vmatmul.bf16.gmra.mxu3 %v6706_v57 }
 0x5e6   : > { %2474 = vmatmul.bf16.gmra.mxu2 %v5329_v63  ;;  %v3217_v56 = vpop.f32.mrf.mxu0  ;;  %v7612_v63 = vld [vmem:[#allocation88_spill] sm:$0xff] }
 0x5e8   : > { %v3302_v48 = vpop.f32.mrf.mxu1  ;;  %v3028_v35 = vpop.f32.mrf.mxu3 }
 0x5e9   : > { %v2439_v50 = vpop.f32.mrf.mxu2  ;;  %v3453_v33 = vadd.f32 %v3028_v35, %v2168_v10 }
 0x5ea   : > { %v2440_v47 = vadd.f32 %v2439_v50, %v7609_v46 }
 0x5eb   : > { %v3536_v6 = vrot.slane %v3453_v33, 7 }
 0x5ec   : > { %v3439_v17 = vadd.f32 %v3300_v22, %v2440_v47  ;;  %v5330_v47 = vld [vmem:[#allocation2 + $0xb8] sm:$0xff] }
 0x5ed   : > { %v3573_v1 = vsel %vm3559_vm5, %v3535_v54, %v3536_v6  ;;  %v7613_v54 = vld [vmem:[#allocation90_spill] sm:$0xff] }
 0x5ee   : > { %v6927_v37 = vadd.f32 %v3573_v1, %v6704_v11  ;;  %v3218_v19 = vpop.f32.mrf.mxu0  ;;  %v3645_v25 = vrot.slane %v3439_v17, 1 }
 0x5f0   : > { %v3305_v50 = vpop.f32.mrf.mxu1  ;;  %v3030_v62 = vpop.f32.mrf.mxu3 }
 0x5f1   : > { %v2441_v14 = vpop.f32.mrf.mxu2  ;;  %v3456_v22 = vadd.f32 %v3030_v62, %v2170_v53 }
 0x5f2   : > { %v2442_v56 = vadd.f32 %v2441_v14, %v7612_v63 }
 0x5f3   : > { %3340 = vmatmul.bf16.gmra.mxu1 %v6636_v51  ;;  %v3537_v46 = vrot.slane %v3456_v22, 7 }
 0x5f4   : > { %v3442_v26 = vadd.f32 %v3302_v48, %v2442_v56  ;;  %v7615_v56 = vld [vmem:[#allocation69_spill] sm:$0xff] }
 0x5f5   : > { %v3572_v35 = vsel %vm3559_vm5, %v3536_v6, %v3537_v46  ;;  %3068 = vmatmul.bf16.gmra.mxu3 %v6720_v39  ;;  %v7616_v46 = vld [vmem:[#allocation38_spill] sm:$0xff] }
 0x5f6   : > { %v3646_v10 = vrot.slane %v3442_v26, 1  ;;  %2479 = vmatmul.bf16.gmra.mxu2 %v5330_v47  ;;  %v6942_v48 = vadd.f32 %v3572_v35, %v6715_v16  ;;  %v3220_v17 = vpop.f32.mrf.mxu0  ;;  %v7614_v16 = vld [vmem:[#allocation35_spill] sm:$0xff] }
 0x5f7   : > { %v6946_v19 = vadd.f32 %v3220_v17, %v6605_v24  ;;  %v2174_v62 = vadd.f32 %v7615_v56, %v7614_v16  ;;  %v5331_v24 = vld [vmem:[#allocation2 + $0xc0] sm:$0xff]  ;;  %v7617_v47 = vld [vmem:[#allocation71_spill] sm:$0xff]  ;;  %v7621_v16 = vld [vmem:[#allocation94_spill] sm:$0xff] }
 0x5f8   : > { %v3690_v11 = vsel %vm3672_vm6, %v3645_v25, %v3646_v10  ;;  %v3307_v14 = vpop.f32.mrf.mxu1  ;;  %v3033_v18 = vpop.f32.mrf.mxu3 }
 0x5f9   : > { %v6939_v33 = vadd.f32 %v3690_v11, %v6849_v7  ;;  %v2444_v51 = vpop.f32.mrf.mxu2  ;;  %v7618_v11 = vld [vmem:[#allocation92_spill] sm:$0xff] }
 0x5fa   : > { %v2445_v1 = vadd.f32 %v2444_v51, %v7613_v54 }
 0x5fc   : > { %v3443_v34 = vadd.f32 %v3305_v50, %v2445_v1 }
 0x5fe   : > { %v3647_v53 = vrot.slane %v3443_v34, 1 }
 0x600   : > { %v3689_v6 = vsel %vm3672_vm6, %v3646_v10, %v3647_v53  ;;  %v3309_v26 = vpop.f32.mrf.mxu1  ;;  %v3034_v22 = vpop.f32.mrf.mxu3  ;;  %v2177_v10 = vadd.f32 %v7617_v47, %v7616_v46  ;;  %v7619_v53 = vld [vmem:[#allocation40_spill] sm:$0xff]  ;;  %v5332_v47 = vld [vmem:[#allocation2 + $0xc8] sm:$0xff] }
 0x601   : > { %v6951_v7 = vadd.f32 %v3689_v6, %v6864_v13  ;;  %v2446_v63 = vpop.f32.mrf.mxu2  ;;  %v3460_v25 = vadd.f32 %v3034_v22, %v2174_v62  ;;  %v7620_v6 = vld [vmem:[#allocation73_spill] sm:$0xff] }
 0x602   : > { %v2179_v63 = vadd.f32 %v7620_v6, %v7619_v53  ;;  %v7623_v6 = vld [vmem:[#allocation43_spill] sm:$0xff] }
 0x603   : > { %3344 = vmatmul.bf16.gmra.mxu1 %v6664_v43  ;;  %v3538_v1 = vrot.slane %v3460_v25, 7 }
 0x605   : > { %3072 = vmatmul.bf16.gmra.mxu3 %v6748_v8 }
 0x606   : > { %2483 = vmatmul.bf16.gmra.mxu2 %v5331_v24 }
 0x608   : > { %v3311_v35 = vpop.f32.mrf.mxu1  ;;  %v3037_v51 = vpop.f32.mrf.mxu3 }
 0x609   : > { %v2448_v50 = vpop.f32.mrf.mxu2  ;;  %v3461_v54 = vadd.f32 %v3037_v51, %v2177_v10 }
 0x60a   : > { %v2449_v13 = vadd.f32 %v2448_v50, %v7618_v11 }
 0x60b   : > { %v3539_v14 = vrot.slane %v3461_v54, 7  ;;  %v6981_v54 = vld [vmem:[#allocation2 + $0x118] sm:$0xff] }
 0x60c   : > { %v3447_v17 = vadd.f32 %v3309_v26, %v2449_v13  ;;  %3224 = vmatmul.bf16.gmra.mxu0 %v6981_v54 }
 0x60d   : > { %v3571_v18 = vsel %vm3559_vm5, %v3538_v1, %v3539_v14 }
 0x60e   : > { %v6963_v43 = vadd.f32 %v3571_v18, %v6746_v9  ;;  %v3648_v26 = vrot.slane %v3447_v17, 1 }
 0x610   : > { %v3314_v62 = vpop.f32.mrf.mxu1  ;;  %v3039_v22 = vpop.f32.mrf.mxu3 }
 0x611   : > { %v2450_v34 = vpop.f32.mrf.mxu2  ;;  %v3464_v50 = vadd.f32 %v3039_v22, %v2179_v63 }
 0x612   : > { %v2451_v56 = vadd.f32 %v2450_v34, %v7621_v16 }
 0x613   : > { %3349 = vmatmul.bf16.gmra.mxu1 %v6678_v5  ;;  %v3540_v46 = vrot.slane %v3464_v50, 7  ;;  %v7622_v5 = vld [vmem:[#allocation96_spill] sm:$0xff]  ;;  %v7625_v50 = vld [vmem:[#allocation46_spill] sm:$0xff] }
 0x614   : > { %v3450_v24 = vadd.f32 %v3311_v35, %v2451_v56 }
 0x615   : > { %v3570_v10 = vsel %vm3559_vm5, %v3539_v14, %v3540_v46  ;;  %3077 = vmatmul.bf16.gmra.mxu3 %v6762_v49  ;;  %v7627_v46 = vld [vmem:[#allocation98_spill] sm:$0xff] }
 0x616   : > { %v3649_v25 = vrot.slane %v3450_v24, 1  ;;  %2488 = vmatmul.bf16.gmra.mxu2 %v5332_v47  ;;  %v6975_v11 = vadd.f32 %v3570_v10, %v6757_v12  ;;  %v5333_v24 = vld [vmem:[#allocation2 + $0xd0] sm:$0xff] }
 0x618   : > { %v3688_v9 = vsel %vm3672_vm6, %v3648_v26, %v3649_v25  ;;  %v3316_v17 = vpop.f32.mrf.mxu1  ;;  %v3042_v1 = vpop.f32.mrf.mxu3  ;;  %v7626_v26 = vld [vmem:[#allocation77_spill] sm:$0xff] }
 0x619   : > { %v2453_v13 = vpop.f32.mrf.mxu2  ;;  %v6978_v35 = vadd.f32 %v3688_v9, %v6888_v32  ;;  %v7624_v32 = vld [vmem:[#allocation75_spill] sm:$0xff] }
 0x61a   : > { %v2454_v51 = vadd.f32 %v2453_v13, %v7622_v5  ;;  %v2183_v63 = vadd.f32 %v7624_v32, %v7623_v6 }
 0x61c   : > { %v3451_v18 = vadd.f32 %v3314_v62, %v2454_v51 }
 0x61e   : > { %v3650_v34 = vrot.slane %v3451_v18, 1  ;;  %v7628_v18 = vld [vmem:[#allocation48_spill] sm:$0xff] }
 0x620   : > { %v3687_v14 = vsel %vm3672_vm6, %v3649_v25, %v3650_v34  ;;  %v3318_v16 = vpop.f32.mrf.mxu1  ;;  %v3043_v56 = vpop.f32.mrf.mxu3  ;;  %v2186_v25 = vadd.f32 %v7626_v26, %v7625_v50  ;;  %v7629_v34 = vld [vmem:[#allocation79_spill] sm:$0xff]  ;;  %v5334_v50 = vld [vmem:[#allocation2 + $0xd8] sm:$0xff] }
 0x621   : > { %v6987_v12 = vadd.f32 %v3687_v14, %v6903_v29  ;;  %v2455_v53 = vpop.f32.mrf.mxu2  ;;  %v3468_v22 = vadd.f32 %v3043_v56, %v2183_v63  ;;  %v2188_v14 = vadd.f32 %v7629_v34, %v7628_v18  ;;  %v7632_v18 = vld [vmem:[#allocation54_spill] sm:$0xff] }
 0x622   : > { %v7630_v53 = vld [vmem:[#allocation100_spill] sm:$0xff] }
 0x623   : > { %3353 = vmatmul.bf16.gmra.mxu1 %v6706_v57  ;;  %v3541_v5 = vrot.slane %v3468_v22, 7 }
 0x625   : > { %3081 = vmatmul.bf16.gmra.mxu3 %v6780_v23 }
 0x626   : > { %2492 = vmatmul.bf16.gmra.mxu2 %v5333_v24 }
 0x628   : > { %v3320_v47 = vpop.f32.mrf.mxu1  ;;  %v3046_v9 = vpop.f32.mrf.mxu3 }
 0x629   : > { %v2457_v62 = vpop.f32.mrf.mxu2  ;;  %v3469_v13 = vadd.f32 %v3046_v9, %v2186_v25 }
 0x62a   : > { %v2458_v29 = vadd.f32 %v2457_v62, %v7627_v46 }
 0x62b   : > { %v3542_v51 = vrot.slane %v3469_v13, 7 }
 0x62c   : > { %v3455_v10 = vadd.f32 %v3318_v16, %v2458_v29  ;;  %v7631_v29 = vld [vmem:[#allocation102_spill] sm:$0xff] }
 0x62d   : > { %v3569_v17 = vsel %vm3559_vm5, %v3541_v5, %v3542_v51 }
 0x62e   : > { %v6999_v57 = vadd.f32 %v3569_v17, %v6790_v44  ;;  %v3651_v16 = vrot.slane %v3455_v10, 1 }
 0x630   : > { %v3323_v32 = vpop.f32.mrf.mxu1  ;;  %v3048_v63 = vpop.f32.mrf.mxu3 }
 0x631   : > { %v2459_v1 = vpop.f32.mrf.mxu2  ;;  %v3472_v24 = vadd.f32 %v3048_v63, %v2188_v14 }
 0x632   : > { %v2460_v6 = vadd.f32 %v2459_v1, %v7630_v53 }
 0x633   : > { %3358 = vmatmul.bf16.gmra.mxu1 %v6720_v39  ;;  %v3543_v62 = vrot.slane %v3472_v24, 7 }
 0x634   : > { %v3458_v56 = vadd.f32 %v3320_v47, %v2460_v6  ;;  %v5335_v6 = vld [vmem:[#allocation2 + $0xe0] sm:$0xff] }
 0x635   : > { %v3568_v26 = vsel %vm3559_vm5, %v3542_v51, %v3543_v62  ;;  %3086 = vmatmul.bf16.gmra.mxu3 %v6981_v54 }
 0x636   : > { %v3652_v22 = vrot.slane %v3458_v56, 1  ;;  %2497 = vmatmul.bf16.gmra.mxu2 %v5334_v50  ;;  %v7014_v46 = vadd.f32 %v3568_v26, %v6799_v59  ;;  %v7635_v56 = vld [vmem:[#allocation83_spill] sm:$0xff] }
 0x638   : > { %v3686_v44 = vsel %vm3672_vm6, %v3651_v16, %v3652_v22  ;;  %v3325_v9 = vpop.f32.mrf.mxu1  ;;  %v3051_v10 = vpop.f32.mrf.mxu3  ;;  %v7636_v16 = vld [vmem:[#allocation104_spill] sm:$0xff] }
 0x639   : > { %v7011_v25 = vadd.f32 %v3686_v44, %v6927_v37  ;;  %v2462_v39 = vpop.f32.mrf.mxu2  ;;  %v7633_v37 = vld [vmem:[#allocation81_spill] sm:$0xff]  ;;  %v7637_v9 = vld [vmem:[#allocation12_spill] sm:$0xff] }
 0x63a   : > { %v2463_v47 = vadd.f32 %v2462_v39, %v7631_v29  ;;  %v2192_v34 = vadd.f32 %v7633_v37, %v7632_v18  ;;  %v7638_v10 = vld [vmem:[#allocation85_spill] sm:$0xff] }
 0x63c   : > { %v3459_v13 = vadd.f32 %v3323_v32, %v2463_v47  ;;  %v7634_v32 = vld [vmem:[#allocation10_spill] sm:$0xff] }
 0x63d   : > { %v2195_v24 = vadd.f32 %v7635_v56, %v7634_v32 }
 0x63e   : > { %v3653_v5 = vrot.slane %v3459_v13, 1  ;;  %v2197_v13 = vadd.f32 %v7638_v10, %v7637_v9 }
 0x640   : > { %v3685_v17 = vsel %vm3672_vm6, %v3652_v22, %v3653_v5  ;;  %v3327_v14 = vpop.f32.mrf.mxu1  ;;  %v3052_v59 = vpop.f32.mrf.mxu3  ;;  %v7639_v5 = vld [vmem:[#allocation106_spill] sm:$0xff] }
 0x641   : > { %v7020_v51 = vadd.f32 %v3685_v17, %v6942_v48  ;;  %v2464_v1 = vpop.f32.mrf.mxu2  ;;  %v3476_v53 = vadd.f32 %v3052_v59, %v2192_v34 }
 0x643   : > { %3362 = vmatmul.bf16.gmra.mxu1 %v6748_v8  ;;  %v3544_v26 = vrot.slane %v3476_v53, 7 }
 0x646   : > { %2501 = vmatmul.bf16.gmra.mxu2 %v5335_v6  ;;  %v5336_v6 = vld [vmem:[#allocation2 + $0xe8] sm:$0xff] }
 0x648   : > { %v3329_v62 = vpop.f32.mrf.mxu1  ;;  %v3055_v48 = vpop.f32.mrf.mxu3 }
 0x649   : > { %v2466_v63 = vpop.f32.mrf.mxu2  ;;  %v3477_v44 = vadd.f32 %v3055_v48, %v2195_v24 }
 0x64a   : > { %v2467_v22 = vadd.f32 %v2466_v63, %v7636_v16  ;;  %v7640_v16 = vld [vmem:[#allocation108_spill] sm:$0xff] }
 0x64b   : > { %v3545_v39 = vrot.slane %v3477_v44, 7 }
 0x64c   : > { %v3463_v50 = vadd.f32 %v3327_v14, %v2467_v22 }
 0x64d   : > { %v3567_v29 = vsel %vm3559_vm5, %v3544_v26, %v3545_v39 }
 0x64e   : > { %v7031_v47 = vadd.f32 %v3567_v29, %v6829_v15  ;;  %v3654_v14 = vrot.slane %v3463_v50, 1  ;;  %v7641_v29 = vld [vmem:[#allocation14_spill] sm:$0xff] }
 0x650   : > { %v3332_v1 = vpop.f32.mrf.mxu1  ;;  %v3057_v18 = vpop.f32.mrf.mxu3 }
 0x651   : > { %v2468_v8 = vpop.f32.mrf.mxu2  ;;  %v3480_v34 = vadd.f32 %v3057_v18, %v2197_v13  ;;  %v5337_v13 = vld [vmem:[#allocation2 + $0xf0] sm:$0xff] }
 0x652   : > { %v2469_v17 = vadd.f32 %v2468_v8, %v7639_v5 }
 0x653   : > { %3367 = vmatmul.bf16.gmra.mxu1 %v6762_v49  ;;  %v3546_v53 = vrot.slane %v3480_v34, 7 }
 0x654   : > { %v3466_v37 = vadd.f32 %v3329_v62, %v2469_v17  ;;  %v7643_v17 = vld [vmem:[#allocation16_spill] sm:$0xff] }
 0x655   : > { %v3566_v63 = vsel %vm3559_vm5, %v3545_v39, %v3546_v53 }
 0x656   : > { %v3655_v59 = vrot.slane %v3466_v37, 1  ;;  %2506 = vmatmul.bf16.gmra.mxu2 %v5336_v6  ;;  %v7045_v56 = vadd.f32 %v3566_v63, %v6839_v60  ;;  %v7645_v37 = vld [vmem:[#allocation109_spill] sm:$0xff] }
 0x658   : > { %v3684_v15 = vsel %vm3672_vm6, %v3654_v14, %v3655_v59  ;;  %v3334_v22 = vpop.f32.mrf.mxu1  ;;  %v3060_v62 = vpop.f32.mrf.mxu3 }
 0x659   : > { %v7042_v32 = vadd.f32 %v3684_v15, %v6963_v43  ;;  %v2471_v24 = vpop.f32.mrf.mxu2  ;;  %v7642_v43 = vld [vmem:[#allocation87_spill] sm:$0xff]  ;;  %v7648_v62 = vld [vmem:[#allocation110_spill] sm:$0xff] }
 0x65a   : > { %v2472_v49 = vadd.f32 %v2471_v24, %v7640_v16  ;;  %v2201_v8 = vadd.f32 %v7642_v43, %v7641_v29  ;;  %v7646_v16 = vld [vmem:[#allocation18_spill] sm:$0xff] }
 0x65c   : > { %v3467_v48 = vadd.f32 %v3332_v1, %v2472_v49  ;;  %v7644_v1 = vld [vmem:[#allocation89_spill] sm:$0xff]  ;;  %v7647_v49 = vld [vmem:[#allocation91_spill] sm:$0xff] }
 0x65d   : > { %v2204_v18 = vadd.f32 %v7644_v1, %v7643_v17  ;;  %v2206_v22 = vadd.f32 %v7647_v49, %v7646_v16  ;;  %v7649_v1 = vld [vmem:[#allocation111_spill] sm:$0xff]  ;;  %v7652_v49 = vld [vmem:[#allocation22_spill] sm:$0xff] }
 0x65e   : > { %v3656_v50 = vrot.slane %v3467_v48, 1 }
 0x660   : > { %v3683_v44 = vsel %vm3672_vm6, %v3655_v59, %v3656_v50  ;;  %v3336_v9 = vpop.f32.mrf.mxu1  ;;  %v3061_v60 = vpop.f32.mrf.mxu3 }
 0x661   : > { %v7051_v26 = vadd.f32 %v3683_v44, %v6975_v11  ;;  %v2473_v39 = vpop.f32.mrf.mxu2  ;;  %v3484_v10 = vadd.f32 %v3061_v60, %v2201_v8  ;;  %v5338_v60 = vld [vmem:[#allocation2 + $0xf8] sm:$0xff] }
 0x663   : > { %3371 = vmatmul.bf16.gmra.mxu1 %v6780_v23  ;;  %v3547_v6 = vrot.slane %v3484_v10, 7 }
 0x666   : > { %2510 = vmatmul.bf16.gmra.mxu2 %v5337_v13 }
 0x668   : > { %v3338_v14 = vpop.f32.mrf.mxu1  ;;  %v3064_v11 = vpop.f32.mrf.mxu3 }
 0x669   : > { %v2475_v5 = vpop.f32.mrf.mxu2  ;;  %v3485_v53 = vadd.f32 %v3064_v11, %v2204_v18 }
 0x66a   : > { %v2476_v34 = vadd.f32 %v2475_v5, %v7645_v37 }
 0x66b   : > { %v3548_v15 = vrot.slane %v3485_v53, 7 }
 0x66c   : > { %v3471_v59 = vadd.f32 %v3336_v9, %v2476_v34 }
 0x66d   : > { %v3565_v63 = vsel %vm3559_vm5, %v3547_v6, %v3548_v15  ;;  %v7650_v6 = vld [vmem:[#allocation20_spill] sm:$0xff] }
 0x66e   : > { %v7062_v24 = vadd.f32 %v3565_v63, %v6868_v55  ;;  %v3657_v43 = vrot.slane %v3471_v59, 1 }
 0x670   : > { %v3341_v50 = vpop.f32.mrf.mxu1  ;;  %v3066_v44 = vpop.f32.mrf.mxu3 }
 0x671   : > { %v2477_v23 = vpop.f32.mrf.mxu2  ;;  %v3488_v29 = vadd.f32 %v3066_v44, %v2206_v22  ;;  %v7653_v22 = vld [vmem:[#allocation95_spill] sm:$0xff] }
 0x672   : > { %v2478_v48 = vadd.f32 %v2477_v23, %v7648_v62  ;;  %v2213_v62 = vadd.f32 %v7653_v22, %v7652_v49  ;;  %v7658_v22 = vld [vmem:[#allocation114_spill] sm:$0xff] }
 0x673   : > { %3376 = vmatmul.bf16.gmra.mxu1 %v6981_v54  ;;  %v3549_v9 = vrot.slane %v3488_v29, 7 }
 0x674   : > { %v3474_v39 = vadd.f32 %v3338_v14, %v2478_v48  ;;  %v7654_v48 = vld [vmem:[#allocation112_spill] sm:$0xff] }
 0x675   : > { %v3564_v10 = vsel %vm3559_vm5, %v3548_v15, %v3549_v9 }
 0x676   : > { %v3658_v8 = vrot.slane %v3474_v39, 1  ;;  %2515 = vmatmul.bf16.gmra.mxu2 %v5338_v60  ;;  %v7076_v5 = vadd.f32 %v3564_v10, %v6878_v36  ;;  %v3222_v60 = vpop.f32.mrf.mxu0 }
 0x678   : > { %v3682_v55 = vsel %vm3672_vm6, %v3657_v43, %v3658_v8  ;;  %v3343_v18 = vpop.f32.mrf.mxu1  ;;  %v3069_v37 = vpop.f32.mrf.mxu3 }
 0x679   : > { %v7073_v13 = vadd.f32 %v3682_v55, %v6999_v57  ;;  %v2480_v17 = vpop.f32.mrf.mxu2  ;;  %v7651_v57 = vld [vmem:[#allocation93_spill] sm:$0xff] }
 0x67a   : > { %v2481_v54 = vadd.f32 %v2480_v17, %v7649_v1  ;;  %v2210_v15 = vadd.f32 %v7651_v57, %v7650_v6  ;;  %v7655_v17 = vld [vmem:[#allocation24_spill] sm:$0xff]  ;;  %v7656_v1 = vld [vmem:[#allocation97_spill] sm:$0xff] }
 0x67b   : > { %v7657_v18 = vld [vmem:[#allocation113_spill] sm:$0xff] }
 0x67c   : > { %v3475_v34 = vadd.f32 %v3341_v50, %v2481_v54  ;;  %v2215_v54 = vadd.f32 %v7656_v1, %v7655_v17 }
 0x67e   : > { %v3659_v14 = vrot.slane %v3475_v34, 1 }
 0x680   : > { %v3681_v11 = vsel %vm3672_vm6, %v3658_v8, %v3659_v14  ;;  %v3345_v63 = vpop.f32.mrf.mxu1  ;;  %v3070_v36 = vpop.f32.mrf.mxu3 }
 0x681   : > { %v7082_v59 = vadd.f32 %v3681_v11, %v7014_v46  ;;  %v2482_v53 = vpop.f32.mrf.mxu2  ;;  %v3492_v23 = vadd.f32 %v3070_v36, %v2210_v15 }
 0x683   : > { %v3550_v8 = vrot.slane %v3492_v23, 7 }
 0x688   : > { %v3347_v44 = vpop.f32.mrf.mxu1  ;;  %v3073_v39 = vpop.f32.mrf.mxu3 }
 0x689   : > { %v2484_v16 = vpop.f32.mrf.mxu2  ;;  %v3493_v43 = vadd.f32 %v3073_v39, %v2213_v62  ;;  %v3225_v49 = vpop.f32.mrf.mxu0 }
 0x68a   : > { %v2485_v50 = vadd.f32 %v2484_v16, %v7654_v48 }
 0x68b   : > { %v3551_v46 = vrot.slane %v3493_v43, 7 }
 0x68c   : > { %v3479_v29 = vadd.f32 %v3345_v63, %v2485_v50 }
 0x68d   : > { %v3563_v9 = vsel %vm3559_vm5, %v3550_v8, %v3551_v46 }
 0x68e   : > { %v7092_v55 = vadd.f32 %v3563_v9, %v6907_v38  ;;  %v3660_v6 = vrot.slane %v3479_v29, 1  ;;  %v7660_v9 = vld [vmem:[#allocation99_spill] sm:$0xff] }
 0x690   : > { %v3350_v34 = vpop.f32.mrf.mxu1  ;;  %v3075_v14 = vpop.f32.mrf.mxu3 }
 0x691   : > { %v2486_v10 = vpop.f32.mrf.mxu2  ;;  %v3496_v53 = vadd.f32 %v3075_v14, %v2215_v54 }
 0x692   : > { %v2487_v37 = vadd.f32 %v2486_v10, %v7657_v18  ;;  %v7661_v18 = vld [vmem:[#allocation30_spill] sm:$0xff] }
 0x693   : > { %v3552_v15 = vrot.slane %v3496_v53, 7 }
 0x694   : > { %v3482_v11 = vadd.f32 %v3347_v44, %v2487_v37  ;;  %v7662_v37 = vld [vmem:[#allocation101_spill] sm:$0xff] }
 0x695   : > { %v3562_v38 = vsel %vm3559_vm5, %v3551_v46, %v3552_v15  ;;  %v7659_v46 = vld [vmem:[#allocation27_spill] sm:$0xff]  ;;  %v2222_v14 = vadd.f32 %v7662_v37, %v7661_v18  ;;  %v7667_v37 = vld [vmem:[#allocation117_spill] sm:$0xff] }
 0x696   : > { %v3661_v57 = vrot.slane %v3482_v11, 1  ;;  %v7105_v23 = vadd.f32 %v3562_v38, %v6917_v4  ;;  %v2219_v4 = vadd.f32 %v7660_v9, %v7659_v46 }
 0x698   : > { %v3680_v63 = vsel %vm3672_vm6, %v3660_v6, %v3661_v57  ;;  %v3352_v48 = vpop.f32.mrf.mxu1  ;;  %v3078_v50 = vpop.f32.mrf.mxu3 }
 0x699   : > { %v7102_v36 = vadd.f32 %v3680_v63, %v7031_v47  ;;  %v2489_v16 = vpop.f32.mrf.mxu2  ;;  %v3226_v47 = vpop.f32.mrf.mxu0  ;;  %v7666_v50 = vld [vmem:[#allocation116_spill] sm:$0xff] }
 0x69a   : > { %v2490_v62 = vadd.f32 %v2489_v16, %v7658_v22  ;;  %v7664_v22 = vld [vmem:[#allocation33_spill] sm:$0xff] }
 0x69c   : > { %v3483_v44 = vadd.f32 %v3350_v34, %v2490_v62  ;;  %v7663_v34 = vld [vmem:[#allocation115_spill] sm:$0xff] }
 0x69d   : > { %v7665_v62 = vld [vmem:[#allocation103_spill] sm:$0xff] }
 0x69e   : > { %v3662_v39 = vrot.slane %v3483_v44, 1  ;;  %v2224_v48 = vadd.f32 %v7665_v62, %v7664_v22  ;;  %v7670_v62 = vld [vmem:[#allocation129_spill] sm:$0xff] }
 0x6a0   : > { %v3679_v29 = vsel %vm3672_vm6, %v3661_v57, %v3662_v39  ;;  %v3354_v10 = vpop.f32.mrf.mxu1  ;;  %v3079_v17 = vpop.f32.mrf.mxu3 }
 0x6a1   : > { %v7111_v43 = vadd.f32 %v3679_v29, %v7045_v56  ;;  %v2491_v8 = vpop.f32.mrf.mxu2  ;;  %v3500_v1 = vadd.f32 %v3079_v17, %v2219_v4 }
 0x6a3   : > { %v3553_v56 = vrot.slane %v3500_v1, 7 }
 0x6a8   : > { %v3356_v53 = vpop.f32.mrf.mxu1  ;;  %v3082_v6 = vpop.f32.mrf.mxu3 }
 0x6a9   : > { %v2493_v54 = vpop.f32.mrf.mxu2  ;;  %v3501_v15 = vadd.f32 %v3082_v6, %v2222_v14 }
 0x6aa   : > { %v2494_v11 = vadd.f32 %v2493_v54, %v7663_v34 }
 0x6ab   : > { %v3554_v63 = vrot.slane %v3501_v15, 7  ;;  %v7668_v15 = vld [vmem:[#allocation36_spill] sm:$0xff] }
 0x6ac   : > { %v3487_v57 = vadd.f32 %v3354_v10, %v2494_v11  ;;  %v3505_v10 = vadd.f32 %v3222_v60, %v6614_v21 }
 0x6ad   : > { %v3561_v38 = vsel %vm3559_vm5, %v3553_v56, %v3554_v63  ;;  %v7669_v56 = vld [vmem:[#allocation105_spill] sm:$0xff] }
 0x6ae   : > { %v7121_v16 = vadd.f32 %v3561_v38, %v6946_v19  ;;  %v3663_v46 = vrot.slane %v3487_v57, 1 }
 0x6b0   : > { %v3359_v39 = vpop.f32.mrf.mxu1  ;;  %v3084_v29 = vpop.f32.mrf.mxu3 }
 0x6b1   : > { %v2495_v49 = vpop.f32.mrf.mxu2  ;;  %v3504_v47 = vadd.f32 %v3084_v29, %v2224_v48  ;;  %v7671_v48 = vrot.slane %v7670_v62, 7 }
 0x6b2   : > { %v2496_v44 = vadd.f32 %v2495_v49, %v7666_v50 }
 0x6b3   : > { %v3555_v4 = vrot.slane %v3504_v47, 7  ;;  %v3776_v47 = vmul.f32 %v6670_v31, %v6670_v31 }
 0x6b4   : > { %v3490_v8 = vadd.f32 %v3356_v53, %v2496_v44  ;;  %v7672_v44 = vld [vmem:[#allocation107_spill] sm:$0xff] }
 0x6b5   : > { %v3560_v19 = vsel %vm3559_vm5, %v3554_v63, %v3555_v4  ;;  %v3777_v4 = vmul.f32 %v6697_v41, %v6697_v41 }
 0x6b6   : > { %v3664_v9 = vrot.slane %v3490_v8, 1  ;;  %v7134_v54 = vadd.f32 %v3560_v19, %v3505_v10  ;;  %v3778_v19 = vmul.f32 %v6712_v61, %v6712_v61 }
 0x6b8   : > { %v3678_v17 = vsel %vm3672_vm6, %v3663_v46, %v3664_v9  ;;  %v3361_v34 = vpop.f32.mrf.mxu1  ;;  %v3087_v11 = vpop.f32.mrf.mxu3 }
 0x6b9   : > { %v7132_v1 = vadd.f32 %v3678_v17, %v7062_v24  ;;  %v2498_v18 = vpop.f32.mrf.mxu2  ;;  %v2228_v24 = vadd.f32 %v7669_v56, %v7668_v15  ;;  %v3779_v34 = vmul.f32 %v6739_v2, %v6739_v2  ;;  %v3781_v15 = vmul.f32 %v6783_v27, %v6783_v27 }
 0x6ba   : > { %v2499_v14 = vadd.f32 %v2498_v18, %v7667_v37 }
 0x6bc   : > { %v3491_v53 = vadd.f32 %v3359_v39, %v2499_v14 }
 0x6be   : > { %v3665_v6 = vrot.slane %v3491_v53, 1 }
 0x6c0   : > { %v3677_v21 = vsel %vm3672_vm6, %v3664_v9, %v3665_v6  ;;  %v7144_v63 = vpop.f32.mrf.mxu1  ;;  %v3088_v38 = vpop.f32.mrf.mxu3  ;;  %v3780_v6 = vmul.f32 %v6754_v20, %v6754_v20 }
 0x6c1   : > { %v7140_v60 = vadd.f32 %v3677_v21, %v7076_v5  ;;  %v2500_v57 = vpop.f32.mrf.mxu2  ;;  %v3508_v49 = vadd.f32 %v3088_v38, %v2228_v24  ;;  %v3782_v38 = vmul.f32 %v6796_v52, %v6796_v52 }
 0x6c3   : > { %v3556_v22 = vrot.slane %v3508_v49, 7 }
 0x6c5   : > { %v3591_v50 = vsel %vm3559_vm5, %v3556_v22, %v7671_v48 }
 0x6c6   : > { %v3592_v39 = vadd.f32 %v3591_v50, %v7672_v44  ;;  %v3783_v50 = vmul.f32 %v6822_v40, %v6822_v40 }
 0x6c8   : > { %v7153_v5 = vpop.f32.mrf.mxu1  ;;  %v7156_v8 = vadd.f32 %v6652_v58, %v3592_v39 }
 0x6c9   : > { %v7151_v29 = vpop.f32.mrf.mxu2 }
 0x6ca   : > { %v3737_v46 = vadd.f32 %v6670_v31, %v7156_v8  ;;  %v3775_v9 = vmul.f32 %v7156_v8, %v7156_v8 }
 0x6cc   : > { %v3738_v10 = vadd.f32 %v3737_v46, %v6697_v41  ;;  %v3807_v17 = vadd.f32 %v3776_v47, %v3775_v9  ;;  %v3784_v47 = vmul.f32 %v6834_v28, %v6834_v28 }
 0x6ce   : > { %v3739_v58 = vadd.f32 %v3738_v10, %v6712_v61  ;;  %v3808_v18 = vadd.f32 %v3807_v17, %v3777_v4  ;;  %v3785_v4 = vmul.f32 %v6861_v3, %v6861_v3 }
 0x6d0   : > { %v7170_v14 = vpop.f32.mrf.mxu1  ;;  %v3740_v11 = vadd.f32 %v3739_v58, %v6739_v2  ;;  %v3809_v53 = vadd.f32 %v3808_v18, %v3778_v19  ;;  %v3786_v19 = vmul.f32 %v6873_v45, %v6873_v45 }
 0x6d1   : > { %v2504_v37 = vpop.f32.mrf.mxu2 }
 0x6d2   : > { %v3741_v21 = vadd.f32 %v3740_v11, %v6754_v20  ;;  %v3810_v57 = vadd.f32 %v3809_v53, %v3779_v34  ;;  %v3787_v53 = vmul.f32 %v6900_v0, %v6900_v0 }
 0x6d4   : > { %v3742_v56 = vadd.f32 %v3741_v21, %v6783_v27  ;;  %v3811_v24 = vadd.f32 %v3810_v57, %v3780_v6  ;;  %v3788_v57 = vmul.f32 %v6912_v30, %v6912_v30 }
 0x6d6   : > { %v3743_v49 = vadd.f32 %v3742_v56, %v6796_v52  ;;  %v3812_v22 = vadd.f32 %v3811_v24, %v3781_v15  ;;  %v3789_v24 = vmul.f32 %v6939_v33, %v6939_v33 }
 0x6d8   : > { %v3370_v48 = vpop.f32.mrf.mxu1  ;;  %v3744_v44 = vadd.f32 %v3743_v49, %v6822_v40  ;;  %v3813_v39 = vadd.f32 %v3812_v22, %v3782_v38  ;;  %v3790_v22 = vmul.f32 %v6951_v7, %v6951_v7 }
 0x6d9   : > { %v2507_v62 = vpop.f32.mrf.mxu2 }
 0x6da   : > { %v3814_v46 = vadd.f32 %v3813_v39, %v3783_v50  ;;  %v3745_v9 = vadd.f32 %v3744_v44, %v6834_v28 }
 0x6dc   : > { %v3746_v10 = vadd.f32 %v3745_v9, %v6861_v3  ;;  %v3815_v17 = vadd.f32 %v3814_v46, %v3784_v47  ;;  %v3791_v46 = vmul.f32 %v6978_v35, %v6978_v35 }
 0x6de   : > { %v3747_v18 = vadd.f32 %v3746_v10, %v6873_v45  ;;  %v3816_v34 = vadd.f32 %v3815_v17, %v3785_v4  ;;  %v3792_v4 = vmul.f32 %v6987_v12, %v6987_v12 }
 0x6e0   : > { %v3372_v11 = vpop.f32.mrf.mxu1  ;;  %v3748_v6 = vadd.f32 %v3747_v18, %v6900_v0  ;;  %v3817_v21 = vadd.f32 %v3816_v34, %v3786_v19  ;;  %v3793_v19 = vmul.f32 %v7011_v25, %v7011_v25  ;;  %v7673_v34 = vld [vmem:[#allocation121_spill] sm:$0xff] }
 0x6e1   : > { %v2509_v58 = vpop.f32.mrf.mxu2 }
 0x6e2   : > { %v3749_v15 = vadd.f32 %v3748_v6, %v6912_v30  ;;  %v3818_v56 = vadd.f32 %v3817_v21, %v3787_v53  ;;  %v2505_v53 = vadd.f32 %v2504_v37, %v7673_v34  ;;  %v3794_v6 = vmul.f32 %v7020_v51, %v7020_v51 }
 0x6e4   : > { %v3750_v38 = vadd.f32 %v3749_v15, %v6939_v33  ;;  %v3819_v49 = vadd.f32 %v3818_v56, %v3788_v57  ;;  %v7674_v56 = vld [vmem:[#allocation119_spill] sm:$0xff]  ;;  %v3498_v37 = vadd.f32 %v7153_v5, %v2505_v53 }
 0x6e6   : > { %v3751_v50 = vadd.f32 %v3750_v38, %v6951_v7  ;;  %v3820_v44 = vadd.f32 %v3819_v49, %v3789_v24  ;;  %v2503_v24 = vadd.f32 %v7151_v29, %v7674_v56  ;;  %v7675_v38 = vld [vmem:[#allocation122_spill] sm:$0xff]  ;;  %v3667_v53 = vrot.slane %v3498_v37, 1 }
 0x6e7   : > { %v2508_v49 = vadd.f32 %v2507_v62, %v7675_v38  ;;  %v7678_v38 = vld [vmem:[#allocation127_spill] sm:$0xff] }
 0x6e8   : > { %v3374_v39 = vpop.f32.mrf.mxu1  ;;  %v3752_v47 = vadd.f32 %v3751_v50, %v6978_v35  ;;  %v3821_v9 = vadd.f32 %v3820_v44, %v3790_v22  ;;  %v3795_v50 = vmul.f32 %v7042_v32, %v7042_v32  ;;  %v3495_v29 = vadd.f32 %v7144_v63, %v2503_v24 }
 0x6e9   : > { %v2511_v48 = vpop.f32.mrf.mxu2  ;;  %v3499_v62 = vadd.f32 %v7170_v14, %v2508_v49 }
 0x6ea   : > { %v3753_v10 = vadd.f32 %v3752_v47, %v6987_v12  ;;  %v3822_v17 = vadd.f32 %v3821_v9, %v3791_v46  ;;  %v7676_v46 = vld [vmem:[#allocation126_spill] sm:$0xff]  ;;  %v3666_v63 = vrot.slane %v3495_v29, 1 }
 0x6eb   : > { %v3668_v24 = vrot.slane %v3499_v62, 1  ;;  %v3801_v62 = vmul.f32 %v7132_v1, %v7132_v1 }
 0x6ec   : > { %v3754_v58 = vadd.f32 %v3753_v10, %v7011_v25  ;;  %v3823_v18 = vadd.f32 %v3822_v17, %v3792_v4  ;;  %v3796_v4 = vmul.f32 %v7051_v26, %v7051_v26 }
 0x6ee   : > { %v3755_v57 = vadd.f32 %v3754_v58, %v7020_v51  ;;  %v3824_v15 = vadd.f32 %v3823_v18, %v3793_v19  ;;  %v7677_v19 = vld [vmem:[#allocation124_spill] sm:$0xff]  ;;  %v3797_v18 = vmul.f32 %v7073_v13, %v7073_v13 }
 0x6ef   : > { %v2512_v58 = vadd.f32 %v2511_v48, %v7677_v19 }
 0x6f0   : > { %v3377_v22 = vpop.f32.mrf.mxu1  ;;  %v3756_v44 = vadd.f32 %v3755_v57, %v7042_v32  ;;  %v3825_v47 = vadd.f32 %v3824_v15, %v3794_v6 }
 0x6f1   : > { %v2513_v21 = vpop.f32.mrf.mxu2  ;;  %v3503_v14 = vadd.f32 %v3372_v11, %v2512_v58 }
 0x6f2   : > { %v2514_v9 = vadd.f32 %v2513_v21, %v7676_v46  ;;  %v3757_v10 = vadd.f32 %v3756_v44, %v7051_v26  ;;  %v3826_v17 = vadd.f32 %v3825_v47, %v3795_v50  ;;  %v3798_v21 = vmul.f32 %v7082_v59, %v7082_v59 }
 0x6f3   : > { %v3799_v50 = vmul.f32 %v7102_v36, %v7102_v36 }
 0x6f4   : > { %v3758_v34 = vadd.f32 %v3757_v10, %v7073_v13  ;;  %v3827_v5 = vadd.f32 %v3826_v17, %v3796_v4  ;;  %v3506_v6 = vadd.f32 %v3374_v39, %v2514_v9  ;;  %v3676_v39 = vsel %vm3672_vm6, %v3666_v63, %v3667_v53 }
 0x6f5   : > { %v3800_v9 = vmul.f32 %v7111_v43, %v7111_v43  ;;  %v3675_v10 = vsel %vm3672_vm6, %v3667_v53, %v3668_v24  ;;  %v3669_v17 = vrot.slane %v3503_v14, 1  ;;  %v7255_v19 = vadd.f32 %v3676_v39, %v7092_v55 }
 0x6f6   : > { %v3759_v15 = vadd.f32 %v3758_v34, %v7082_v59  ;;  %v3828_v56 = vadd.f32 %v3827_v5, %v3797_v18  ;;  %v3670_v37 = vrot.slane %v3506_v6, 1  ;;  %v3802_v34 = vmul.f32 %v7140_v60, %v7140_v60 }
 0x6f7   : > { %v7263_v5 = vadd.f32 %v3675_v10, %v7105_v23 }
 0x6f8   : > { %v3379_v49 = vpop.f32.mrf.mxu1  ;;  %v3760_v44 = vadd.f32 %v3759_v15, %v7102_v36  ;;  %v3829_v47 = vadd.f32 %v3828_v56, %v3798_v21  ;;  %v3674_v18 = vsel %vm3672_vm6, %v3669_v17, %v3670_v37 }
 0x6f9   : > { %v2516_v57 = vpop.f32.mrf.mxu2  ;;  %v7271_v15 = vadd.f32 %v3674_v18, %v7121_v16  ;;  %v3804_v23 = vmul.f32 %v7263_v5, %v7263_v5 }
 0x6fa   : > { %v2517_v48 = vadd.f32 %v2516_v57, %v7678_v38  ;;  %v3761_v4 = vadd.f32 %v3760_v44, %v7111_v43  ;;  %v3830_v11 = vadd.f32 %v3829_v47, %v3799_v50  ;;  %v3803_v57 = vmul.f32 %v7255_v19, %v7255_v19 }
 0x6fb   : > { %v3805_v42 = vmul.f32 %v7271_v15, %v7271_v15 }
 0x6fc   : > { %v3507_v46 = vadd.f32 %v3377_v22, %v2517_v48  ;;  %v3762_v58 = vadd.f32 %v3761_v4, %v7132_v1  ;;  %v3831_v22 = vadd.f32 %v3830_v11, %v3800_v9 }
 0x6fe   : > { %v3671_v29 = vrot.slane %v3507_v46, 1  ;;  %v3763_v6 = vadd.f32 %v3762_v58, %v7140_v60  ;;  %v3832_v21 = vadd.f32 %v3831_v22, %v3801_v62 }
 0x700   : > { %v3673_v55 = vsel %vm3672_vm6, %v3670_v37, %v3671_v29  ;;  %v3764_v56 = vadd.f32 %v3763_v6, %v7255_v19  ;;  %v3833_v63 = vadd.f32 %v3832_v21, %v3802_v34 }
 0x701   : > { %v2518_v53 = vpop.f32.mrf.mxu2  ;;  %v7277_v24 = vadd.f32 %v3673_v55, %v7134_v54 }
 0x702   : > { %v3765_v14 = vadd.f32 %v3764_v56, %v7263_v5  ;;  %v3834_v38 = vadd.f32 %v3833_v63, %v3803_v57 }
 0x703   : > { %v3806_v16 = vmul.f32 %v7277_v24, %v7277_v24 }
 0x704   : > { %v3766_v48 = vadd.f32 %v3765_v14, %v7271_v15  ;;  %v3835_v49 = vadd.f32 %v3834_v38, %v3804_v23  ;;  %v5339_v38 = vld [vmem:[%s7430_s3] sm:$0xf] }
 0x706   : > { %v3767_v50 = vadd.f32 %v3766_v48, %v7277_v24  ;;  %v3836_v44 = vadd.f32 %v3835_v49, %v3805_v42 }
 0x708   : > { %v3768_v47 = vrot.slane %v3767_v50, 4  ;;  %v3837_v39 = vadd.f32 %v3836_v44, %v3806_v16 }
 0x70a   : > { %v3769_v37 = vadd.f32 %v3768_v47, %v3767_v50  ;;  %v3838_v54 = vrot.slane %v3837_v39, 4 }
 0x70c   : > { %v3770_v46 = vrot.slane %v3769_v37, 2  ;;  %v3839_v9 = vadd.f32 %v3838_v54, %v3837_v39 }
 0x70e   : > { %v3771_v4 = vadd.f32 %v3770_v46, %v3769_v37  ;;  %v3840_v11 = vrot.slane %v3839_v9, 2 }
 0x710   : > { %v3772_v10 = vrot.slane %v3771_v4, 1  ;;  %v3841_v17 = vadd.f32 %v3840_v11, %v3839_v9 }
 0x712   : > { %v3773_v29 = vadd.f32 %v3772_v10, %v3771_v4  ;;  %v3842_v62 = vrot.slane %v3841_v17, 1 }
 0x714   : > { %v3774_v58 = vmul.f32 0.00390625, %v3773_v29  ;;  %v3843_v22 = vadd.f32 %v3842_v62, %v3841_v17 }
 0x716   : > { %v3844_v18 = vmul.f32 0.00390625, %v3843_v22  ;;  %v3845_v34 = vmul.f32 %v3774_v58, %v3774_v58 }
 0x718   : > { %v3846_v53 = vsub.f32 %v3844_v18, %v3845_v34 }
 0x71a   : > { %v3847_v6 = vadd.f32 1e-05, %v3846_v53 }
 0x71c   : > { %5297 = vrsqrt.f32 %v3847_v6  ;;  %vm3854_vm8 = vweird.f32 %v3847_v6 }
 0x722   : > { %v5298_v21 = vpop.eup %5297 }
 0x723   : > { %v3849_v55 = vmul.f32 %v5298_v21, %v3847_v6  ;;  %vm3855_vm7 = vweird.f32 %v5298_v21 }
 0x724   : > { %vm3856_vm9 = vmor %vm3854_vm8, %vm3855_vm7 }
 0x725   : > { %v3850_v57 = vmul.f32 %v5298_v21, %v3849_v55 }
 0x727   : > { %v3851_v56 = vmul.f32 0.5, %v3850_v57 }
 0x729   : > { %v3852_v63 = vsub.f32 1.5, %v3851_v56 }
 0x72b   : > { %v3853_v23 = vmul.f32 %v5298_v21, %v3852_v63 }
 0x72d   : > { %v3857_v14 = vsel %vm3856_vm9, %v5298_v21, %v3853_v23 }
 0x72e   : > { %v3858_v42 = vmul.f32 %v5339_v38, %v3857_v14 }
 0x730   : > { %v3859_v48 = vmul.f32 %v3858_v42, %v3774_v58  ;;  %v7289_v16 = vperm.slane %v3858_v42, 2 }
 0x732   : > { %v3861_v49 = vrot.slane %v3859_v48, 7  ;;  %v3865_v44 = vmul.f32 %v7289_v16, %v7156_v8  ;;  %v3881_v47 = vmul.f32 %v7289_v16, %v6978_v35  ;;  %v3866_v46 = vmul.f32 %v7289_v16, %v6670_v31 }
 0x733   : > { %v3882_v9 = vmul.f32 %v7289_v16, %v6987_v12  ;;  %v3867_v35 = vmul.f32 %v7289_v16, %v6697_v41  ;;  %v3883_v29 = vmul.f32 %v7289_v16, %v7011_v25  ;;  %v3868_v12 = vmul.f32 %v7289_v16, %v6712_v61 }
 0x734   : > { %v3863_v50 = vsub.f32 %v5339_v38, %v3861_v49  ;;  %v3873_v58 = vmul.f32 %v7289_v16, %v6822_v40  ;;  %v3884_v41 = vmul.f32 %v7289_v16, %v7020_v51  ;;  %v3889_v34 = vmul.f32 %v7289_v16, %v7102_v36 }
 0x735   : > { %v3874_v53 = vmul.f32 %v7289_v16, %v6834_v28  ;;  %v3890_v6 = vmul.f32 %v7289_v16, %v7111_v43  ;;  %v3875_v61 = vmul.f32 %v7289_v16, %v6861_v3  ;;  %v3891_v43 = vmul.f32 %v7289_v16, %v7132_v1 }
 0x736   : > { %v7295_v39 = vperm.slane %v3863_v50, 3  ;;  %v3876_v42 = vmul.f32 %v7289_v16, %v6873_v45  ;;  %v3892_v48 = vmul.f32 %v7289_v16, %v7140_v60  ;;  %v3893_v45 = vmul.f32 %v7289_v16, %v7255_v19 }
 0x738   : > { %v3898_v37 = vadd.f32 %v7295_v39, %v3865_v44  ;;  %v3914_v54 = vadd.f32 %v7295_v39, %v3881_v47  ;;  %v3899_v10 = vadd.f32 %v7295_v39, %v3866_v46  ;;  %v3915_v8 = vadd.f32 %v7295_v39, %v3882_v9 }
 0x739   : > { %v3900_v62 = vadd.f32 %v7295_v39, %v3867_v35  ;;  %v3916_v31 = vadd.f32 %v7295_v39, %v3883_v29  ;;  %v3906_v25 = vadd.f32 %v7295_v39, %v3873_v58  ;;  %v3901_v21 = vadd.f32 %v7295_v39, %v3868_v12 }
 0x73a   : > { %v3930_v4 = vmax.f32 %v3898_v37, 0.0  ;;  %v3946_v11 = vmax.f32 %v3914_v54, 0.0  ;;  %v3931_v22 = vmax.f32 %v3899_v10, 0.0  ;;  %v3947_v18 = vmax.f32 %v3915_v8, 0.0 }
 0x73b   : > { %v3932_v40 = vmax.f32 %v3900_v62, 0.0  ;;  %v3917_v55 = vadd.f32 %v7295_v39, %v3884_v41  ;;  %v3922_v51 = vadd.f32 %v7295_v39, %v3889_v34  ;;  %v3948_v57 = vmax.f32 %v3916_v31, 0.0 }
 0x73c   : > { %v5243_v17 = vpack.i.bf16 %v3946_v11, %v3930_v4  ;;  %v3938_v36 = vmax.f32 %v3906_v25, 0.0  ;;  %v3907_v56 = vadd.f32 %v7295_v39, %v3874_v53  ;;  %v3923_v63 = vadd.f32 %v7295_v39, %v3890_v6 }
 0x73d   : > { %v5245_v28 = vpack.i.bf16 %v3947_v18, %v3931_v22  ;;  %v3954_v23 = vmax.f32 %v3922_v51, 0.0  ;;  %v3908_v3 = vadd.f32 %v7295_v39, %v3875_v61  ;;  %v3924_v50 = vadd.f32 %v7295_v39, %v3891_v43 }
 0x73e   : > { %5244 = vxpose.xlu0.b32.start [1/16] (narrow) %v5243_v17, 32  ;;  %v3939_v14 = vmax.f32 %v3907_v56, 0.0  ;;  %v3955_v38 = vmax.f32 %v3923_v63, 0.0  ;;  %v3877_v47 = vmul.f32 %v7289_v16, %v6900_v0  ;;  %v3909_v37 = vadd.f32 %v7295_v39, %v3876_v42 }
 0x73f   : > { %v7338_v49 = vpack.i.bf16 %v3954_v23, %v3938_v36  ;;  %v3940_v44 = vmax.f32 %v3908_v3, 0.0  ;;  %v3925_v54 = vadd.f32 %v7295_v39, %v3892_v48  ;;  %v3956_v46 = vmax.f32 %v3924_v50, 0.0 }
 0x740   : > { %v7343_v1 = vpack.i.bf16 %v3955_v38, %v3939_v14  ;;  %v3910_v60 = vadd.f32 %v7295_v39, %v3877_v47  ;;  %v3878_v9 = vmul.f32 %v7289_v16, %v6912_v30  ;;  %v3894_v4 = vmul.f32 %v7289_v16, %v7263_v5 }
 0x741   : > { %v3941_v0 = vmax.f32 %v3909_v37, 0.0  ;;  %v3957_v11 = vmax.f32 %v3925_v54, 0.0  ;;  %v3926_v10 = vadd.f32 %v7295_v39, %v3893_v45  ;;  %v3879_v8 = vmul.f32 %v7289_v16, %v6939_v33 }
 0x742   : > { %v5263_v35 = vpack.i.bf16 %v3956_v46, %v3940_v44  ;;  %v3942_v17 = vmax.f32 %v3910_v60, 0.0  ;;  %v3911_v19 = vadd.f32 %v7295_v39, %v3878_v9  ;;  %v3927_v29 = vadd.f32 %v7295_v39, %v3894_v4 }
 0x743   : > { %v5265_v62 = vpack.i.bf16 %v3957_v11, %v3941_v0  ;;  %v3958_v31 = vmax.f32 %v3926_v10, 0.0  ;;  %v3895_v30 = vmul.f32 %v7289_v16, %v7271_v15  ;;  %v3912_v5 = vadd.f32 %v7295_v39, %v3879_v8 }
 0x744   : > { %v3943_v12 = vmax.f32 %v3911_v19, 0.0  ;;  %v3959_v58 = vmax.f32 %v3927_v29, 0.0  ;;  %v3880_v22 = vmul.f32 %v7289_v16, %v6951_v7  ;;  %v3896_v33 = vmul.f32 %v7289_v16, %v7277_v24 }
 0x745   : > { %v5247_v18 = vpack.i.bf16 %v3948_v57, %v3932_v40  ;;  %v5267_v41 = vpack.i.bf16 %v3958_v31, %v3942_v17  ;;  %v3928_v34 = vadd.f32 %v7295_v39, %v3895_v30  ;;  %v3944_v25 = vmax.f32 %v3912_v5, 0.0 }
 0x746   : > { %5246 = vxpose.xlu0.b32.cont [2/16] (narrow) %v5245_v28, 32  ;;  %v5269_v53 = vpack.i.bf16 %v3959_v58, %v3943_v12  ;;  %v3913_v6 = vadd.f32 %v7295_v39, %v3880_v22  ;;  %v3929_v15 = vadd.f32 %v7295_v39, %v3896_v33  ;;  %v3933_v56 = vmax.f32 %v3901_v21, 0.0 }
 0x747   : > { %v3960_v61 = vmax.f32 %v3928_v34, 0.0  ;;  %v3949_v63 = vmax.f32 %v3917_v55, 0.0  ;;  %v3869_v24 = vmul.f32 %v7289_v16, %v6739_v2  ;;  %v3885_v40 = vmul.f32 %v7289_v16, %v7042_v32 }
 0x748   : > { %v3945_v51 = vmax.f32 %v3913_v6, 0.0  ;;  %v3961_v36 = vmax.f32 %v3929_v15, 0.0  ;;  %v3870_v21 = vmul.f32 %v7289_v16, %v6754_v20  ;;  %v3886_v55 = vmul.f32 %v7289_v16, %v7051_v26 }
 0x749   : > { %v5271_v7 = vpack.i.bf16 %v3960_v61, %v3944_v25  ;;  %v5249_v57 = vpack.i.bf16 %v3949_v63, %v3933_v56  ;;  %v3902_v23 = vadd.f32 %v7295_v39, %v3869_v24  ;;  %v3918_v43 = vadd.f32 %v7295_v39, %v3885_v40 }
 0x74a   : > { %v5273_v28 = vpack.i.bf16 %v3961_v36, %v3945_v51  ;;  %v3903_v2 = vadd.f32 %v7295_v39, %v3870_v21  ;;  %v3919_v42 = vadd.f32 %v7295_v39, %v3886_v55  ;;  %v3871_v50 = vmul.f32 %v7289_v16, %v6783_v27 }
 0x74b   : > { %v3934_v3 = vmax.f32 %v3902_v23, 0.0  ;;  %v3950_v14 = vmax.f32 %v3918_v43, 0.0  ;;  %v3887_v44 = vmul.f32 %v7289_v16, %v7073_v13  ;;  %v3872_v45 = vmul.f32 %v7289_v16, %v6796_v52 }
 0x74c   : > { %v3935_v32 = vmax.f32 %v3903_v2, 0.0  ;;  %v3951_v48 = vmax.f32 %v3919_v42, 0.0  ;;  %v3904_v20 = vadd.f32 %v7295_v39, %v3871_v50  ;;  %v3888_v46 = vmul.f32 %v7289_v16, %v7082_v59 }
 0x74d   : > { %v5251_v38 = vpack.i.bf16 %v3950_v14, %v3934_v3  ;;  %v3920_v37 = vadd.f32 %v7295_v39, %v3887_v44  ;;  %v3905_v27 = vadd.f32 %v7295_v39, %v3872_v45 }
 0x74e   : > { %5248 = vxpose.xlu0.b32.cont [3/16] (narrow) %v5247_v18, 32  ;;  %v5253_v47 = vpack.i.bf16 %v3951_v48, %v3935_v32  ;;  %v3936_v26 = vmax.f32 %v3904_v20, 0.0  ;;  %v3921_v13 = vadd.f32 %v7295_v39, %v3888_v46 }
 0x74f   : > { %v3952_v54 = vmax.f32 %v3920_v37, 0.0  ;;  %v3937_v9 = vmax.f32 %v3905_v27, 0.0 }
 0x750   : > { %v3953_v4 = vmax.f32 %v3921_v13, 0.0 }
 0x751   : > { %v5255_v60 = vpack.i.bf16 %v3952_v54, %v3936_v26 }
 0x752   : > { %v5257_v0 = vpack.i.bf16 %v3953_v4, %v3937_v9 }
 0x756   : > { %5250 = vxpose.xlu0.b32.cont [4/16] (narrow) %v5249_v57, 32 }
 0x75e   : > { %5252 = vxpose.xlu0.b32.cont [5/16] (narrow) %v5251_v38, 32 }
 0x766   : > { %5254 = vxpose.xlu0.b32.cont [6/16] (narrow) %v5253_v47, 32 }
 0x76e   : > { %5256 = vxpose.xlu0.b32.cont [7/16] (narrow) %v5255_v60, 32 }
 0x776   : > { %5258 = vxpose.xlu0.b32.cont [8/16] (narrow) %v5257_v0, 32 }
 0x77e   : > { %5260 = vxpose.xlu0.b32.cont [9/16] (narrow) %v7338_v49, 32 }
 0x786   : > { %5262 = vxpose.xlu0.b32.cont [10/16] (narrow) %v7343_v1, 32 }
 0x78e   : > { %5264 = vxpose.xlu0.b32.cont [11/16] (narrow) %v5263_v35, 32 }
 0x796   : > { %5266 = vxpose.xlu0.b32.cont [12/16] (narrow) %v5265_v62, 32 }
 0x79e   : > { %5268 = vxpose.xlu0.b32.cont [13/16] (narrow) %v5267_v41, 32 }
 0x7a6   : > { %5270 = vxpose.xlu0.b32.cont [14/16] (narrow) %v5269_v53, 32 }
 0x7ae   : > { %5272 = vxpose.xlu0.b32.cont [15/16] (narrow) %v5271_v7, 32 }
 0x7b6   : > { %5274 = vxpose.xlu0.b32.end [16/16] (narrow) %v5273_v28, 32 }
 0x7e2   : > { %v5275_v52 = vpop.trf.xlu0 }
 0x7e3   : > { %v5279_v59 = vunpack.i.h.bf16 %v5275_v52  ;;  %v5276_v16 = vunpack.i.l.bf16 %v5275_v52 }
 0x7e5   : > { %v4026_v39 = vpack.c.bf16 %v5279_v59, %v5276_v16 }
 0x7e7   : > { %4030 = vst [vmem:[%s207_s30] sm:$0xff] %v4026_v39 }
 0x7ea   : > { %v5280_v11 = vpop.trf.xlu0 }
 0x7eb   : > { %v5284_v10 = vunpack.i.h.bf16 %v5280_v11  ;;  %v5281_v49 = vunpack.i.l.bf16 %v5280_v11 }
 0x7ed   : > { %v4027_v8 = vpack.c.bf16 %v5284_v10, %v5281_v49 }
 0x7ef   : > { %4031 = vst [vmem:[%s207_s30 + $0x8] sm:$0xff] %v4027_v8 }
 0x7f2   : > { %v5285_v1 = vpop.trf.xlu0 }
 0x7f3   : > { %v5289_v35 = vunpack.i.h.bf16 %v5285_v1  ;;  %v5286_v17 = vunpack.i.l.bf16 %v5285_v1 }
 0x7f5   : > { %v4028_v19 = vpack.c.bf16 %v5289_v35, %v5286_v17 }
 0x7f7   : > { %4032 = vst [vmem:[%s207_s30 + $0x10] sm:$0xff] %v4028_v19 }
 0x7fa   : > { %v5290_v29 = vpop.trf.xlu0 }
 0x7fb   : > { %v5294_v62 = vunpack.i.h.bf16 %v5290_v29  ;;  %v5291_v31 = vunpack.i.l.bf16 %v5290_v29 }
 0x7fd   : > { %v4029_v30 = vpack.c.bf16 %v5294_v62, %v5291_v31 }
 0x7ff   : > { %4033 = vst [vmem:[%s207_s30 + $0x18] sm:$0xff] %v4029_v30 }
 0x800   : > { %5397 = shalt.err (!%p5394_p8)
}
 0x801   : > { %s5442_s27 = smov 128   ;;  %s5443_s28 = smov 8  }
 0x802   : > { %5192 = dma.vmem_to_hbm [thread:$0]  (%p5507_p5), %s4048_s9, 512, %s4050_s10, %s4035_s11, %s5442_s27, %s5442_s27, %s5443_s28  }
 0x803 PF: > { %p5204_p9 = scmp.ge.s32.totalorder %s5436_s18, 2  ;;  %s4064_s29 = sand.u32 1, %s5424_s15  }
 0x804   : > { %s4065_s30 = scalar_lea.sflag [#allocation5], %s4064_s29 }
 0x805   : > { %p5199_p10 = pnand %p5204_p9, %p5511_p6 }
 0x807   : > { %p5200_p11 = pneg %p5199_p10 }
 0x809   : > { %5419 = dma.done.wait (%p5200_p11), %s4065_s30, 512  }
 0x80a   : > { %5421 = vsyncadd (%p5200_p11), %s4065_s30, 4294966784  ;;  %p15_p12 = scmp.ge.s32.totalorder %s5494_s21, 4   ;;  %s7679_s15 = smov %s5428_s16 }
 0x80b   : > { %s7680_s16 = smov %s5432_s17  ;;  %s7681_s17 = smov %s5505_s24 }
 0x80c   : > { %s7682_s18 = smov %s5494_s21  ;;  %17 = sbr.rel (!%p15_p12) target bundleno = 4 (0x4), region = 81 }
 0x811   :  { %4071 = vsyncpa [#allocation4], 1 }
 0x812   :  { %4073 = vsyncpa [#allocation4 + $0x1], 1 }
 0x813   :  { %4074 = vsyncpa [#allocation5], 1 }
 0x814   :  { %4076 = vsyncpa [#allocation5 + $0x1], 1 }

</bundles_post_ra>
